<compile_context>
chip_gen: v5e
topology: v5e:2x2
jax: 0.10.0
libtpu: 0.0.40
codegen_flags: <defaults>
</compile_context>

<pallas_src>
import functools

import jax
import jax.numpy as jnp
from jax.experimental import pallas as pl
from jax.experimental.pallas import tpu as pltpu

_VMEM_LIMIT_BYTES = 40 * 1024 * 1024    # safe on v5e/v6e (128 MiB) and v7x (64 MiB)
_FUSED_VMEM_BUDGET = 28 * 1024 * 1024   # use the single fused kernel below this estimate


# ---------------------------------------------------------------------------
# Shared in-kernel helpers
# ---------------------------------------------------------------------------
def _shift_lanes(x, s):
    """result[..., i] = x[..., (i + s) % n] for a static shift s (callers mask wrap)."""
    n = x.shape[-1]
    s = s % n
    if s == 0:
        return x
    # TODO(synk): pltpu.roll would keep this purely on the XLU slot; two static slices +
    # concatenate are used instead so the shift direction is unambiguous.
    return jnp.concatenate([x[..., s:], x[..., :s]], axis=-1)


def _conv7x7_sigmoid(mp, col, row, w77_ref, H, W):
    """sigmoid(7x7 'same' conv, zero padded) of a row-major flattened (1, H*W) map.

    col / row: (1, H*W) int32 column / row index of every flattened position.
    w77_ref  : (7, 7) conv taps in SMEM.
    """
    zero = jnp.zeros_like(mp)
    # 7 horizontal taps: lane shift + column-boundary mask (shared across the 7 rows).
    xs = []
    for dw in range(-3, 4):
        shifted = _shift_lanes(mp, dw)
        valid = jnp.logical_and(col + dw >= 0, col + dw <= W - 1)
        xs.append(jnp.where(valid, shifted, zero))
    # 7 vertical taps: combine the masked horizontals, shift by whole rows, mask rows.
    acc = None
    for dh in range(-3, 4):
        inner = None
        for j in range(7):                       # j <-> dw = j - 3
            term = xs[j] * w77_ref[dh + 3, j]
            inner = term if inner is None else inner + term
        inner = _shift_lanes(inner, dh * W)
        valid = jnp.logical_and(row + dh >= 0, row + dh <= H - 1)
        contrib = jnp.where(valid, inner, zero)
        acc = contrib if acc is None else acc + contrib
    return 1.0 / (1.0 + jnp.exp(-acc))


def _channel_mlp_sigmoid(chmax_col, w1t_ref, w2_ref):
    """ChannelAttention MLP: sigmoid(fc2(relu(fc1(chmax)))) in column layout.

    chmax_col: (C, 1) f32.  w1t_ref: (C, Ch) = fc1^T.  w2_ref: (C, Ch) = fc2.
    """
    h = jnp.sum(w1t_ref[...].astype(jnp.float32) * chmax_col, axis=0, keepdims=True)
    h = jnp.maximum(h, 0.0)                                                    # (1, Ch)
    pre = jnp.sum(w2_ref[...].astype(jnp.float32) * h, axis=1, keepdims=True)  # (C, 1)
    return 1.0 / (1.0 + jnp.exp(-pre))


# ---------------------------------------------------------------------------
# Fused per-batch kernel (primary path)
# ---------------------------------------------------------------------------
def _lfem_fused_kernel(d_ref, e_ref, l_ref, col_ref, row_ref, w1t_ref, w2_ref,
                       w77_ref, o_ref, *, H, W):
    # d/e/l/o: (1, C, N) lane-dense per-batch blocks.  col/row: (1, N) int32.
    # w1t/w2: (C, Ch) in VMEM.  w77: (7, 7) taps in SMEM.
    l32 = l_ref[0].astype(jnp.float32)                                  # (C, N)
    prod = d_ref[0].astype(jnp.float32) * e_ref[0].astype(jnp.float32) * l32
    mp = jnp.max(prod, axis=0, keepdims=True)                           # (1, N)

    sa = _conv7x7_sigmoid(mp, col_ref[...], row_ref[...], w77_ref, H, W)  # (1, N)

    lf = l32 * (1.0 + sa)                                               # l_f = l + l*sa
    chmax = jnp.max(lf, axis=1, keepdims=True)                          # (C, 1)
    lca = _channel_mlp_sigmoid(chmax, w1t_ref, w2_ref)                  # (C, 1)

    o_ref[0] = (l32 * lca).astype(o_ref.dtype)


# ---------------------------------------------------------------------------
# Multi-pass fallback kernels (used when the per-batch slice does not fit VMEM)
# ---------------------------------------------------------------------------
def _fuse_max_kernel(d_ref, e_ref, l_ref, o_ref):
    # blocks: (1, C, TN) -> (1, 1, TN) channel max of d * e * l
    prod = (d_ref[...].astype(jnp.float32) * e_ref[...].astype(jnp.float32)
            * l_ref[...].astype(jnp.float32))
    o_ref[...] = jnp.max(prod, axis=1, keepdims=True).astype(o_ref.dtype)


def _sa_conv_kernel(mp_ref, col_ref, row_ref, w77_ref, o_ref, *, H, W):
    # mp/o blocks: (1, 1, N) lane-dense single-channel map.
    mp = mp_ref[0].astype(jnp.float32)                                  # (1, N)
    sa = _conv7x7_sigmoid(mp, col_ref[...], row_ref[...], w77_ref, H, W)
    o_ref[0] = sa.astype(o_ref.dtype)


def _chmax_mlp_kernel(l_ref, sa_ref, w1t_ref, w2_ref, o_ref, acc_ref, *, tn, n_total):
    # l: (1, C, TN), sa: (1, 1, TN), acc scratch: (C, TN), o: (1, C, 1) = l_ca.
    n = pl.program_id(1)

    @pl.when(n == 0)
    def _():
        acc_ref[...] = jnp.full(acc_ref.shape, -jnp.inf, acc_ref.dtype)

    lf = l_ref[0].astype(jnp.float32) * (1.0 + sa_ref[0].astype(jnp.float32))
    if n_total % tn != 0:
        # Mask the garbage lanes of the overhanging tail tile.
        lane = jax.lax.broadcasted_iota(jnp.int32, lf.shape, 1) + n * tn
        lf = jnp.where(lane < n_total, lf, -jnp.inf)
    acc_ref[...] = jnp.maximum(acc_ref[...], lf)

    @pl.when(n == pl.num_programs(1) - 1)
    def _():
        chmax = jnp.max(acc_ref[...], axis=1, keepdims=True)            # (C, 1)
        o_ref[0] = _channel_mlp_sigmoid(chmax, w1t_ref, w2_ref).astype(o_ref.dtype)


def _scale_kernel(l_ref, ca_ref, o_ref):
    # l: (1, C, TN), ca: (1, C, 1), o: (1, C, TN)
    o_ref[...] = (l_ref[...].astype(jnp.float32)
                  * ca_ref[...].astype(jnp.float32)).astype(o_ref.dtype)


def _pick_tile_n(n, c, itemsize, max_block_bytes, max_tn):
    """Largest multiple-of-128 spatial tile keeping a (C, TN) block under max_block_bytes.
    Prefers an exact divisor of n; otherwise a cdiv grid with a masked tail tile is used
    (never one huge untiled block)."""
    cap = max(128, min(max_tn, max_block_bytes // max(1, c * itemsize)))
    cap = (cap // 128) * 128
    n_pad = ((n + 127) // 128) * 128
    tn = min(cap, n_pad)
    for t in range(tn, 127, -128):
        if n % t == 0 and 2 * t >= tn:
            return t
    return tn


def _lfem_multipass(d3, e3, l3, col, row, w77, w1t, w2, H, W, max_tn, max_block_bytes):
    B, C, N = d3.shape
    dt = d3.dtype
    ch = w1t.shape[1]
    TN = _pick_tile_n(N, C, dt.itemsize, max_block_bytes, max_tn)
    n_tiles = pl.cdiv(N, TN)

    par2 = pltpu.CompilerParams(dimension_semantics=("parallel", "parallel"),
                                vmem_limit_bytes=_VMEM_LIMIT_BYTES)

    # K1: maxmap[b, 0, n] = max_c (d * e * l)
    maxmap = pl.pallas_call(
        _fuse_max_kernel,
        out_shape=jax.ShapeDtypeStruct((B, 1, N), jnp.float32),
        grid=(B, n_tiles),
        in_specs=[pl.BlockSpec((1, C, TN), lambda b, n: (b, 0, n)) for _ in range(3)],
        out_specs=pl.BlockSpec((1, 1, TN), lambda b, n: (b, 0, n)),
        compiler_params=par2,
    )(d3, e3, l3)

    # K2: sa = sigmoid(conv7x7(maxmap)) on the tiny single-channel map, lane-dense.
    conv_vmem_est = 32 * N * 4
    if conv_vmem_est <= _VMEM_LIMIT_BYTES // 2:
        sa3 = pl.pallas_call(
            functools.partial(_sa_conv_kernel, H=H, W=W),
            out_shape=jax.ShapeDtypeStruct((B, 1, N), jnp.float32),
            grid=(B,),
            in_specs=[pl.BlockSpec((1, 1, N), lambda b: (b, 0, 0)),
                      pl.BlockSpec((1, N), lambda b: (0, 0)),
                      pl.BlockSpec((1, N), lambda b: (0, 0)),
                      pl.BlockSpec(memory_space=pltpu.MemorySpace.SMEM)],
            out_specs=pl.BlockSpec((1, 1, N), lambda b: (b, 0, 0)),
            compiler_params=pltpu.CompilerParams(
                dimension_semantics=("parallel",),
                vmem_limit_bytes=_VMEM_LIMIT_BYTES),
        )(maxmap, col, row, w77)
    else:
        # TODO(synk): halo-tiled in-kernel conv for extremely large maps; for now use a
        # tiny XLA conv on the (B, 1, H, W) map (<0.1% of total HBM traffic).
        conv = jax.lax.conv_general_dilated(
            maxmap.reshape(B, 1, H, W), w77.reshape(1, 1, 7, 7),
            window_strides=(1, 1), padding=((3, 3), (3, 3)),
            dimension_numbers=("NCHW", "OIHW", "NCHW"))
        sa3 = jax.nn.sigmoid(conv).reshape(B, 1, N)

    # K3: running elementwise max of l_f into a lane-dense scratch; one cross-lane reduce
    #     + the squeeze-excite MLP fused into the last grid step.  Output is l_ca (B,C,1).
    lca = pl.pallas_call(
        functools.partial(_chmax_mlp_kernel, tn=TN, n_total=N),
        out_shape=jax.ShapeDtypeStruct((B, C, 1), jnp.float32),
        grid=(B, n_tiles),
        in_specs=[pl.BlockSpec((1, C, TN), lambda b, n: (b, 0, n)),
                  pl.BlockSpec((1, 1, TN), lambda b, n: (b, 0, n)),
                  pl.BlockSpec((C, ch), lambda b, n: (0, 0)),
                  pl.BlockSpec((C, ch), lambda b, n: (0, 0))],
        out_specs=pl.BlockSpec((1, C, 1), lambda b, n: (b, 0, 0)),
        scratch_shapes=[pltpu.VMEM((C, TN), jnp.float32)],
        compiler_params=pltpu.CompilerParams(
            dimension_semantics=("parallel", "arbitrary"),
            vmem_limit_bytes=_VMEM_LIMIT_BYTES),
    )(l3, sa3, w1t, w2)

    # K4: out = l * l_ca (channel gains broadcast along the lane-dense spatial axis).
    out3 = pl.pallas_call(
        _scale_kernel,
        out_shape=jax.ShapeDtypeStruct((B, C, N), dt),
        grid=(B, n_tiles),
        in_specs=[pl.BlockSpec((1, C, TN), lambda b, n: (b, 0, n)),
                  pl.BlockSpec((1, C, 1), lambda b, n: (b, 0, 0))],
        out_specs=pl.BlockSpec((1, C, TN), lambda b, n: (b, 0, n)),
        compiler_params=par2,
    )(l3, lca)
    return out3


# ---------------------------------------------------------------------------
# Public wrapper
# ---------------------------------------------------------------------------
def lfem_forward(d, e, l, sa_weight, fc1_weight, fc2_weight, *,
                 force_multipass=False, max_tn=8192, max_block_bytes=2 << 20):
    """d, e, l: (B, C, H, W).  sa_weight: (1, 1, 7, 7).
    fc1_weight: (C//16, C, 1, 1).  fc2_weight: (C, C//16, 1, 1)."""
    B, C, H, W = d.shape
    N = H * W
    dt = d.dtype
    ch = fc1_weight.shape[0]

    # Free views: big tensors stay NCHW-contiguous, spatial flattened onto the lane axis
    # (never padded / transposed / copied in the wrapper).
    d3 = d.reshape(B, C, N)
    e3 = e.reshape(B, C, N)
    l3 = l.reshape(B, C, N)

    # Tiny side inputs (a few KB each).
    idx = jnp.arange(N, dtype=jnp.int32)
    row = (idx // W).reshape(1, N)
    col = (idx - (idx // W) * W).reshape(1, N)
    w77 = sa_weight.reshape(7, 7).astype(jnp.float32)
    w1t = jnp.transpose(fc1_weight.reshape(ch, C)).astype(jnp.float32)   # (C, Ch) = fc1^T
    w2 = fc2_weight.reshape(C, ch).astype(jnp.float32)                   # (C, Ch)

    # Per-batch VMEM estimate for the fused path: d/e/l/out double-buffered blocks plus
    # ~4 live f32 (C, N) temporaries and the (1, N)-sized conv intermediates.
    fused_bytes = 4 * 2 * C * N * dt.itemsize + 4 * C * N * 4 + 24 * N * 4
    if force_multipass or fused_bytes > _FUSED_VMEM_BUDGET:
        out3 = _lfem_multipass(d3, e3, l3, col, row, w77, w1t, w2, H, W,
                               max_tn, max_block_bytes)
        return out3.reshape(B, C, H, W)

    out3 = pl.pallas_call(
        functools.partial(_lfem_fused_kernel, H=H, W=W),
        out_shape=jax.ShapeDtypeStruct((B, C, N), dt),
        grid=(B,),
        in_specs=[
            pl.BlockSpec((1, C, N), lambda b: (b, 0, 0)),            # d
            pl.BlockSpec((1, C, N), lambda b: (b, 0, 0)),            # e
            pl.BlockSpec((1, C, N), lambda b: (b, 0, 0)),            # l
            pl.BlockSpec((1, N), lambda b: (0, 0)),                  # col index
            pl.BlockSpec((1, N), lambda b: (0, 0)),                  # row index
            pl.BlockSpec((C, ch), lambda b: (0, 0)),                 # fc1^T
            pl.BlockSpec((C, ch), lambda b: (0, 0)),                 # fc2
            pl.BlockSpec(memory_space=pltpu.MemorySpace.SMEM),       # 7x7 taps
        ],
        out_specs=pl.BlockSpec((1, C, N), lambda b: (b, 0, 0)),
        compiler_params=pltpu.CompilerParams(
            dimension_semantics=("parallel",),
            vmem_limit_bytes=_VMEM_LIMIT_BYTES),
    )(d3, e3, l3, col, row, w1t, w2, w77)

    return out3.reshape(B, C, H, W)


# ---------------------------------------------------------------------------
# Pure-JAX reference of LFEM.forward (matches the PyTorch module)
# ---------------------------------------------------------------------------
def _reference(d, e, l, sa_weight, fc1_weight, fc2_weight):
    mul_fuse = d * e * l
    m = jnp.max(mul_fuse, axis=1, keepdims=True)                   # (B, 1, H, W)
    conv = jax.lax.conv_general_dilated(
        m, sa_weight, window_strides=(1, 1), padding=((3, 3), (3, 3)),
        dimension_numbers=("NCHW", "OIHW", "NCHW"),
        precision=jax.lax.Precision.HIGHEST)
    sa = jax.nn.sigmoid(conv)
    l_f = l + l * sa
    chmax = jnp.max(l_f, axis=(2, 3))                              # (B, C)
    w1 = fc1_weight[:, :, 0, 0]
    w2 = fc2_weight[:, :, 0, 0]
    hidden = jnp.maximum(chmax @ w1.T, 0.0)
    l_ca = jax.nn.sigmoid(hidden @ w2.T)                           # (B, C)
    return l * l_ca[:, :, None, None]


if __name__ == "__main__":
    def _run_case(B, C, H, W, force_multipass=False, max_tn=8192):
        key = jax.random.PRNGKey(0)
        kd, ke, kl, ks, k1, k2 = jax.random.split(key, 6)
        d = jax.random.normal(kd, (B, C, H, W), dtype=jnp.float32)
        e = jax.random.normal(ke, (B, C, H, W), dtype=jnp.float32)
        l = jax.random.normal(kl, (B, C, H, W), dtype=jnp.float32)
        sa_w = jax.random.normal(ks, (1, 1, 7, 7), dtype=jnp.float32) * 0.1
        fc1_w = jax.random.normal(k1, (C // 16, C, 1, 1), dtype=jnp.float32) * 0.1
        fc2_w = jax.random.normal(k2, (C, C // 16, 1, 1), dtype=jnp.float32) * 0.1

        out = lfem_forward(d, e, l, sa_w, fc1_w, fc2_w,
                           force_multipass=force_multipass, max_tn=max_tn)
        out = jax.block_until_ready(out)
        ref = _reference(d, e, l, sa_w, fc1_w, fc2_w)
        assert out.shape == (B, C, H, W)
        max_err = float(jnp.max(jnp.abs(out - ref)))
        assert jnp.allclose(out, ref, atol=1e-4, rtol=1e-4), (B, C, H, W, max_err)

    # Primary fused single-kernel path (infeature must be >= 16; C=32 -> hidden 2).
    _run_case(2, 32, 32, 32)
    # Odd spatial size: exercises the conv boundary masks on a non-128-multiple N.
    _run_case(1, 32, 20, 20)
    # Forced multi-pass fallback with small tiles: exercises the tiled reduction path.
    _run_case(2, 32, 32, 32, force_multipass=True, max_tn=256)
    # Forced multi-pass with a masked tail tile (N not divisible by TN).
    _run_case(1, 32, 20, 20, force_multipass=True, max_tn=256)

    print("KERNEL_OK")
</pallas_src>

<mosaic_0001>
module attributes {stable_mosaic.version = 11 : i64} {
  func.func @_lfem_fused_kernel(%arg0: i32, %arg1: memref<1x32x1024xf32, #tpu.memory_space<vmem>>, %arg2: memref<1x32x1024xf32, #tpu.memory_space<vmem>>, %arg3: memref<1x32x1024xf32, #tpu.memory_space<vmem>>, %arg4: memref<1x1024xi32, #tpu.memory_space<vmem>>, %arg5: memref<1x1024xi32, #tpu.memory_space<vmem>>, %arg6: memref<32x2xf32, #tpu.memory_space<vmem>>, %arg7: memref<32x2xf32, #tpu.memory_space<vmem>>, %arg8: memref<7x7xf32, #tpu.memory_space<smem>>, %arg9: memref<1x32x1024xf32, #tpu.memory_space<vmem>>) attributes {dimension_semantics = [#tpu.dimension_semantics<parallel>], iteration_bounds = array<i64: 2>, scalar_prefetch = 0 : i64, scratch_operands = 0 : i64, tpu.core_type = #tpu.core_type<tc>, window_params = [{transform_indices = @transform_0, window_bounds = array<i64: 1, 32, 1024>}, {transform_indices = @transform_1, window_bounds = array<i64: 1, 32, 1024>}, {transform_indices = @transform_2, window_bounds = array<i64: 1, 32, 1024>}, {pipeline_mode = #tpu.pipeline_mode<synchronous>, transform_indices = @transform_3, window_bounds = array<i64: 1, 1024>}, {pipeline_mode = #tpu.pipeline_mode<synchronous>, transform_indices = @transform_4, window_bounds = array<i64: 1, 1024>}, {pipeline_mode = #tpu.pipeline_mode<synchronous>, transform_indices = @transform_5, window_bounds = array<i64: 32, 2>}, {pipeline_mode = #tpu.pipeline_mode<synchronous>, transform_indices = @transform_6, window_bounds = array<i64: 32, 2>}, {transform_indices = @transform_7, window_bounds = array<i64: 7, 7>}, {transform_indices = @transform_8, window_bounds = array<i64: 1, 32, 1024>}]} {
    %c0 = arith.constant 0 : index
    %c0_0 = arith.constant 0 : index
    %c0_1 = arith.constant 0 : index
    %0 = vector.load %arg3[%c0, %c0_0, %c0_1] : memref<1x32x1024xf32, #tpu.memory_space<vmem>>, vector<1x32x1024xf32>
    %1 = vector.shape_cast %0 : vector<1x32x1024xf32> to vector<32x1024xf32>
    %c0_2 = arith.constant 0 : index
    %c0_3 = arith.constant 0 : index
    %c0_4 = arith.constant 0 : index
    %2 = vector.load %arg1[%c0_2, %c0_3, %c0_4] : memref<1x32x1024xf32, #tpu.memory_space<vmem>>, vector<1x32x1024xf32>
    %3 = vector.shape_cast %2 : vector<1x32x1024xf32> to vector<32x1024xf32>
    %c0_5 = arith.constant 0 : index
    %c0_6 = arith.constant 0 : index
    %c0_7 = arith.constant 0 : index
    %4 = vector.load %arg2[%c0_5, %c0_6, %c0_7] : memref<1x32x1024xf32, #tpu.memory_space<vmem>>, vector<1x32x1024xf32>
    %5 = vector.shape_cast %4 : vector<1x32x1024xf32> to vector<32x1024xf32>
    %6 = arith.mulf %3, %5 : vector<32x1024xf32>
    %7 = arith.mulf %6, %1 : vector<32x1024xf32>
    %cst = arith.constant dense<0xFF800000> : vector<1024xf32>
    %8 = vector.multi_reduction <maximumf>, %7, %cst [0] : vector<32x1024xf32> to vector<1024xf32>
    %9 = vector.shape_cast %8 : vector<1024xf32> to vector<1x1024xf32>
    %c0_8 = arith.constant 0 : index
    %c0_9 = arith.constant 0 : index
    %10 = vector.load %arg4[%c0_8, %c0_9] : memref<1x1024xi32, #tpu.memory_space<vmem>>, vector<1x1024xi32>
    %c0_10 = arith.constant 0 : index
    %c0_11 = arith.constant 0 : index
    %11 = vector.load %arg5[%c0_10, %c0_11] : memref<1x1024xi32, #tpu.memory_space<vmem>>, vector<1x1024xi32>
    %cst_12 = arith.constant 0.000000e+00 : f32
    %12 = vector.broadcast %cst_12 : f32 to vector<1x1024xf32>
    %13 = vector.extract_strided_slice %9 {offsets = [0, 1021], sizes = [1, 3], strides = [1, 1]} : vector<1x1024xf32> to vector<1x3xf32>
    %14 = vector.extract_strided_slice %9 {offsets = [0, 0], sizes = [1, 1021], strides = [1, 1]} : vector<1x1024xf32> to vector<1x1021xf32>
    %15 = tpu.concatenate %13, %14 in 1 : vector<1x3xf32>, vector<1x1021xf32> -> vector<1x1024xf32>
    %c-3_i32 = arith.constant -3 : i32
    %16 = vector.broadcast %c-3_i32 : i32 to vector<1x1024xi32>
    %17 = arith.addi %10, %16 : vector<1x1024xi32>
    %c0_i32 = arith.constant 0 : i32
    %18 = vector.broadcast %c0_i32 : i32 to vector<1x1024xi32>
    %19 = arith.cmpi sge, %17, %18 : vector<1x1024xi32>
    %c-3_i32_13 = arith.constant -3 : i32
    %20 = vector.broadcast %c-3_i32_13 : i32 to vector<1x1024xi32>
    %21 = arith.addi %10, %20 : vector<1x1024xi32>
    %c31_i32 = arith.constant 31 : i32
    %22 = vector.broadcast %c31_i32 : i32 to vector<1x1024xi32>
    %23 = arith.cmpi sle, %21, %22 : vector<1x1024xi32>
    %24 = arith.andi %19, %23 : vector<1x1024xi1>
    %25 = arith.select %24, %15, %12 : vector<1x1024xi1>, vector<1x1024xf32>
    %26 = vector.extract_strided_slice %9 {offsets = [0, 1022], sizes = [1, 2], strides = [1, 1]} : vector<1x1024xf32> to vector<1x2xf32>
    %27 = vector.extract_strided_slice %9 {offsets = [0, 0], sizes = [1, 1022], strides = [1, 1]} : vector<1x1024xf32> to vector<1x1022xf32>
    %28 = tpu.concatenate %26, %27 in 1 : vector<1x2xf32>, vector<1x1022xf32> -> vector<1x1024xf32>
    %c-2_i32 = arith.constant -2 : i32
    %29 = vector.broadcast %c-2_i32 : i32 to vector<1x1024xi32>
    %30 = arith.addi %10, %29 : vector<1x1024xi32>
    %c0_i32_14 = arith.constant 0 : i32
    %31 = vector.broadcast %c0_i32_14 : i32 to vector<1x1024xi32>
    %32 = arith.cmpi sge, %30, %31 : vector<1x1024xi32>
    %c-2_i32_15 = arith.constant -2 : i32
    %33 = vector.broadcast %c-2_i32_15 : i32 to vector<1x1024xi32>
    %34 = arith.addi %10, %33 : vector<1x1024xi32>
    %c31_i32_16 = arith.constant 31 : i32
    %35 = vector.broadcast %c31_i32_16 : i32 to vector<1x1024xi32>
    %36 = arith.cmpi sle, %34, %35 : vector<1x1024xi32>
    %37 = arith.andi %32, %36 : vector<1x1024xi1>
    %38 = arith.select %37, %28, %12 : vector<1x1024xi1>, vector<1x1024xf32>
    %39 = vector.extract_strided_slice %9 {offsets = [0, 1023], sizes = [1, 1], strides = [1, 1]} : vector<1x1024xf32> to vector<1x1xf32>
    %40 = vector.extract_strided_slice %9 {offsets = [0, 0], sizes = [1, 1023], strides = [1, 1]} : vector<1x1024xf32> to vector<1x1023xf32>
    %41 = tpu.concatenate %39, %40 in 1 : vector<1x1xf32>, vector<1x1023xf32> -> vector<1x1024xf32>
    %c-1_i32 = arith.constant -1 : i32
    %42 = vector.broadcast %c-1_i32 : i32 to vector<1x1024xi32>
    %43 = arith.addi %10, %42 : vector<1x1024xi32>
    %c0_i32_17 = arith.constant 0 : i32
    %44 = vector.broadcast %c0_i32_17 : i32 to vector<1x1024xi32>
    %45 = arith.cmpi sge, %43, %44 : vector<1x1024xi32>
    %c-1_i32_18 = arith.constant -1 : i32
    %46 = vector.broadcast %c-1_i32_18 : i32 to vector<1x1024xi32>
    %47 = arith.addi %10, %46 : vector<1x1024xi32>
    %c31_i32_19 = arith.constant 31 : i32
    %48 = vector.broadcast %c31_i32_19 : i32 to vector<1x1024xi32>
    %49 = arith.cmpi sle, %47, %48 : vector<1x1024xi32>
    %50 = arith.andi %45, %49 : vector<1x1024xi1>
    %51 = arith.select %50, %41, %12 : vector<1x1024xi1>, vector<1x1024xf32>
    %c0_i32_20 = arith.constant 0 : i32
    %52 = vector.broadcast %c0_i32_20 : i32 to vector<1x1024xi32>
    %53 = arith.addi %10, %52 : vector<1x1024xi32>
    %c0_i32_21 = arith.constant 0 : i32
    %54 = vector.broadcast %c0_i32_21 : i32 to vector<1x1024xi32>
    %55 = arith.cmpi sge, %53, %54 : vector<1x1024xi32>
    %c0_i32_22 = arith.constant 0 : i32
    %56 = vector.broadcast %c0_i32_22 : i32 to vector<1x1024xi32>
    %57 = arith.addi %10, %56 : vector<1x1024xi32>
    %c31_i32_23 = arith.constant 31 : i32
    %58 = vector.broadcast %c31_i32_23 : i32 to vector<1x1024xi32>
    %59 = arith.cmpi sle, %57, %58 : vector<1x1024xi32>
    %60 = arith.andi %55, %59 : vector<1x1024xi1>
    %61 = arith.select %60, %9, %12 : vector<1x1024xi1>, vector<1x1024xf32>
    %62 = vector.extract_strided_slice %9 {offsets = [0, 1], sizes = [1, 1023], strides = [1, 1]} : vector<1x1024xf32> to vector<1x1023xf32>
    %63 = vector.extract_strided_slice %9 {offsets = [0, 0], sizes = [1, 1], strides = [1, 1]} : vector<1x1024xf32> to vector<1x1xf32>
    %64 = tpu.concatenate %62, %63 in 1 : vector<1x1023xf32>, vector<1x1xf32> -> vector<1x1024xf32>
    %c1_i32 = arith.constant 1 : i32
    %65 = vector.broadcast %c1_i32 : i32 to vector<1x1024xi32>
    %66 = arith.addi %10, %65 : vector<1x1024xi32>
    %c0_i32_24 = arith.constant 0 : i32
    %67 = vector.broadcast %c0_i32_24 : i32 to vector<1x1024xi32>
    %68 = arith.cmpi sge, %66, %67 : vector<1x1024xi32>
    %c1_i32_25 = arith.constant 1 : i32
    %69 = vector.broadcast %c1_i32_25 : i32 to vector<1x1024xi32>
    %70 = arith.addi %10, %69 : vector<1x1024xi32>
    %c31_i32_26 = arith.constant 31 : i32
    %71 = vector.broadcast %c31_i32_26 : i32 to vector<1x1024xi32>
    %72 = arith.cmpi sle, %70, %71 : vector<1x1024xi32>
    %73 = arith.andi %68, %72 : vector<1x1024xi1>
    %74 = arith.select %73, %64, %12 : vector<1x1024xi1>, vector<1x1024xf32>
    %75 = vector.extract_strided_slice %9 {offsets = [0, 2], sizes = [1, 1022], strides = [1, 1]} : vector<1x1024xf32> to vector<1x1022xf32>
    %76 = vector.extract_strided_slice %9 {offsets = [0, 0], sizes = [1, 2], strides = [1, 1]} : vector<1x1024xf32> to vector<1x2xf32>
    %77 = tpu.concatenate %75, %76 in 1 : vector<1x1022xf32>, vector<1x2xf32> -> vector<1x1024xf32>
    %c2_i32 = arith.constant 2 : i32
    %78 = vector.broadcast %c2_i32 : i32 to vector<1x1024xi32>
    %79 = arith.addi %10, %78 : vector<1x1024xi32>
    %c0_i32_27 = arith.constant 0 : i32
    %80 = vector.broadcast %c0_i32_27 : i32 to vector<1x1024xi32>
    %81 = arith.cmpi sge, %79, %80 : vector<1x1024xi32>
    %c2_i32_28 = arith.constant 2 : i32
    %82 = vector.broadcast %c2_i32_28 : i32 to vector<1x1024xi32>
    %83 = arith.addi %10, %82 : vector<1x1024xi32>
    %c31_i32_29 = arith.constant 31 : i32
    %84 = vector.broadcast %c31_i32_29 : i32 to vector<1x1024xi32>
    %85 = arith.cmpi sle, %83, %84 : vector<1x1024xi32>
    %86 = arith.andi %81, %85 : vector<1x1024xi1>
    %87 = arith.select %86, %77, %12 : vector<1x1024xi1>, vector<1x1024xf32>
    %88 = vector.extract_strided_slice %9 {offsets = [0, 3], sizes = [1, 1021], strides = [1, 1]} : vector<1x1024xf32> to vector<1x1021xf32>
    %89 = vector.extract_strided_slice %9 {offsets = [0, 0], sizes = [1, 3], strides = [1, 1]} : vector<1x1024xf32> to vector<1x3xf32>
    %90 = tpu.concatenate %88, %89 in 1 : vector<1x1021xf32>, vector<1x3xf32> -> vector<1x1024xf32>
    %c3_i32 = arith.constant 3 : i32
    %91 = vector.broadcast %c3_i32 : i32 to vector<1x1024xi32>
    %92 = arith.addi %10, %91 : vector<1x1024xi32>
    %c0_i32_30 = arith.constant 0 : i32
    %93 = vector.broadcast %c0_i32_30 : i32 to vector<1x1024xi32>
    %94 = arith.cmpi sge, %92, %93 : vector<1x1024xi32>
    %c3_i32_31 = arith.constant 3 : i32
    %95 = vector.broadcast %c3_i32_31 : i32 to vector<1x1024xi32>
    %96 = arith.addi %10, %95 : vector<1x1024xi32>
    %c31_i32_32 = arith.constant 31 : i32
    %97 = vector.broadcast %c31_i32_32 : i32 to vector<1x1024xi32>
    %98 = arith.cmpi sle, %96, %97 : vector<1x1024xi32>
    %99 = arith.andi %94, %98 : vector<1x1024xi1>
    %100 = arith.select %99, %90, %12 : vector<1x1024xi1>, vector<1x1024xf32>
    %c0_33 = arith.constant 0 : index
    %c0_34 = arith.constant 0 : index
    %101 = memref.load %arg8[%c0_33, %c0_34] : memref<7x7xf32, #tpu.memory_space<smem>>
    %102 = vector.broadcast %101 : f32 to vector<1x1024xf32>
    %103 = arith.mulf %25, %102 : vector<1x1024xf32>
    %c0_35 = arith.constant 0 : index
    %c1 = arith.constant 1 : index
    %104 = memref.load %arg8[%c0_35, %c1] : memref<7x7xf32, #tpu.memory_space<smem>>
    %105 = vector.broadcast %104 : f32 to vector<1x1024xf32>
    %106 = arith.mulf %38, %105 : vector<1x1024xf32>
    %107 = arith.addf %103, %106 : vector<1x1024xf32>
    %c0_36 = arith.constant 0 : index
    %c2 = arith.constant 2 : index
    %108 = memref.load %arg8[%c0_36, %c2] : memref<7x7xf32, #tpu.memory_space<smem>>
    %109 = vector.broadcast %108 : f32 to vector<1x1024xf32>
    %110 = arith.mulf %51, %109 : vector<1x1024xf32>
    %111 = arith.addf %107, %110 : vector<1x1024xf32>
    %c0_37 = arith.constant 0 : index
    %c3 = arith.constant 3 : index
    %112 = memref.load %arg8[%c0_37, %c3] : memref<7x7xf32, #tpu.memory_space<smem>>
    %113 = vector.broadcast %112 : f32 to vector<1x1024xf32>
    %114 = arith.mulf %61, %113 : vector<1x1024xf32>
    %115 = arith.addf %111, %114 : vector<1x1024xf32>
    %c0_38 = arith.constant 0 : index
    %c4 = arith.constant 4 : index
    %116 = memref.load %arg8[%c0_38, %c4] : memref<7x7xf32, #tpu.memory_space<smem>>
    %117 = vector.broadcast %116 : f32 to vector<1x1024xf32>
    %118 = arith.mulf %74, %117 : vector<1x1024xf32>
    %119 = arith.addf %115, %118 : vector<1x1024xf32>
    %c0_39 = arith.constant 0 : index
    %c5 = arith.constant 5 : index
    %120 = memref.load %arg8[%c0_39, %c5] : memref<7x7xf32, #tpu.memory_space<smem>>
    %121 = vector.broadcast %120 : f32 to vector<1x1024xf32>
    %122 = arith.mulf %87, %121 : vector<1x1024xf32>
    %123 = arith.addf %119, %122 : vector<1x1024xf32>
    %c0_40 = arith.constant 0 : index
    %c6 = arith.constant 6 : index
    %124 = memref.load %arg8[%c0_40, %c6] : memref<7x7xf32, #tpu.memory_space<smem>>
    %125 = vector.broadcast %124 : f32 to vector<1x1024xf32>
    %126 = arith.mulf %100, %125 : vector<1x1024xf32>
    %127 = arith.addf %123, %126 : vector<1x1024xf32>
    %128 = vector.extract_strided_slice %127 {offsets = [0, 928], sizes = [1, 96], strides = [1, 1]} : vector<1x1024xf32> to vector<1x96xf32>
    %129 = vector.extract_strided_slice %127 {offsets = [0, 0], sizes = [1, 928], strides = [1, 1]} : vector<1x1024xf32> to vector<1x928xf32>
    %130 = tpu.concatenate %128, %129 in 1 : vector<1x96xf32>, vector<1x928xf32> -> vector<1x1024xf32>
    %c-3_i32_41 = arith.constant -3 : i32
    %131 = vector.broadcast %c-3_i32_41 : i32 to vector<1x1024xi32>
    %132 = arith.addi %11, %131 : vector<1x1024xi32>
    %c0_i32_42 = arith.constant 0 : i32
    %133 = vector.broadcast %c0_i32_42 : i32 to vector<1x1024xi32>
    %134 = arith.cmpi sge, %132, %133 : vector<1x1024xi32>
    %c-3_i32_43 = arith.constant -3 : i32
    %135 = vector.broadcast %c-3_i32_43 : i32 to vector<1x1024xi32>
    %136 = arith.addi %11, %135 : vector<1x1024xi32>
    %c31_i32_44 = arith.constant 31 : i32
    %137 = vector.broadcast %c31_i32_44 : i32 to vector<1x1024xi32>
    %138 = arith.cmpi sle, %136, %137 : vector<1x1024xi32>
    %139 = arith.andi %134, %138 : vector<1x1024xi1>
    %140 = arith.select %139, %130, %12 : vector<1x1024xi1>, vector<1x1024xf32>
    %c1_45 = arith.constant 1 : index
    %c0_46 = arith.constant 0 : index
    %141 = memref.load %arg8[%c1_45, %c0_46] : memref<7x7xf32, #tpu.memory_space<smem>>
    %142 = vector.broadcast %141 : f32 to vector<1x1024xf32>
    %143 = arith.mulf %25, %142 : vector<1x1024xf32>
    %c1_47 = arith.constant 1 : index
    %c1_48 = arith.constant 1 : index
    %144 = memref.load %arg8[%c1_47, %c1_48] : memref<7x7xf32, #tpu.memory_space<smem>>
    %145 = vector.broadcast %144 : f32 to vector<1x1024xf32>
    %146 = arith.mulf %38, %145 : vector<1x1024xf32>
    %147 = arith.addf %143, %146 : vector<1x1024xf32>
    %c1_49 = arith.constant 1 : index
    %c2_50 = arith.constant 2 : index
    %148 = memref.load %arg8[%c1_49, %c2_50] : memref<7x7xf32, #tpu.memory_space<smem>>
    %149 = vector.broadcast %148 : f32 to vector<1x1024xf32>
    %150 = arith.mulf %51, %149 : vector<1x1024xf32>
    %151 = arith.addf %147, %150 : vector<1x1024xf32>
    %c1_51 = arith.constant 1 : index
    %c3_52 = arith.constant 3 : index
    %152 = memref.load %arg8[%c1_51, %c3_52] : memref<7x7xf32, #tpu.memory_space<smem>>
    %153 = vector.broadcast %152 : f32 to vector<1x1024xf32>
    %154 = arith.mulf %61, %153 : vector<1x1024xf32>
    %155 = arith.addf %151, %154 : vector<1x1024xf32>
    %c1_53 = arith.constant 1 : index
    %c4_54 = arith.constant 4 : index
    %156 = memref.load %arg8[%c1_53, %c4_54] : memref<7x7xf32, #tpu.memory_space<smem>>
    %157 = vector.broadcast %156 : f32 to vector<1x1024xf32>
    %158 = arith.mulf %74, %157 : vector<1x1024xf32>
    %159 = arith.addf %155, %158 : vector<1x1024xf32>
    %c1_55 = arith.constant 1 : index
    %c5_56 = arith.constant 5 : index
    %160 = memref.load %arg8[%c1_55, %c5_56] : memref<7x7xf32, #tpu.memory_space<smem>>
    %161 = vector.broadcast %160 : f32 to vector<1x1024xf32>
    %162 = arith.mulf %87, %161 : vector<1x1024xf32>
    %163 = arith.addf %159, %162 : vector<1x1024xf32>
    %c1_57 = arith.constant 1 : index
    %c6_58 = arith.constant 6 : index
    %164 = memref.load %arg8[%c1_57, %c6_58] : memref<7x7xf32, #tpu.memory_space<smem>>
    %165 = vector.broadcast %164 : f32 to vector<1x1024xf32>
    %166 = arith.mulf %100, %165 : vector<1x1024xf32>
    %167 = arith.addf %163, %166 : vector<1x1024xf32>
    %168 = vector.extract_strided_slice %167 {offsets = [0, 960], sizes = [1, 64], strides = [1, 1]} : vector<1x1024xf32> to vector<1x64xf32>
    %169 = vector.extract_strided_slice %167 {offsets = [0, 0], sizes = [1, 960], strides = [1, 1]} : vector<1x1024xf32> to vector<1x960xf32>
    %170 = tpu.concatenate %168, %169 in 1 : vector<1x64xf32>, vector<1x960xf32> -> vector<1x1024xf32>
    %c-2_i32_59 = arith.constant -2 : i32
    %171 = vector.broadcast %c-2_i32_59 : i32 to vector<1x1024xi32>
    %172 = arith.addi %11, %171 : vector<1x1024xi32>
    %c0_i32_60 = arith.constant 0 : i32
    %173 = vector.broadcast %c0_i32_60 : i32 to vector<1x1024xi32>
    %174 = arith.cmpi sge, %172, %173 : vector<1x1024xi32>
    %c-2_i32_61 = arith.constant -2 : i32
    %175 = vector.broadcast %c-2_i32_61 : i32 to vector<1x1024xi32>
    %176 = arith.addi %11, %175 : vector<1x1024xi32>
    %c31_i32_62 = arith.constant 31 : i32
    %177 = vector.broadcast %c31_i32_62 : i32 to vector<1x1024xi32>
    %178 = arith.cmpi sle, %176, %177 : vector<1x1024xi32>
    %179 = arith.andi %174, %178 : vector<1x1024xi1>
    %180 = arith.select %179, %170, %12 : vector<1x1024xi1>, vector<1x1024xf32>
    %181 = arith.addf %140, %180 : vector<1x1024xf32>
    %c2_63 = arith.constant 2 : index
    %c0_64 = arith.constant 0 : index
    %182 = memref.load %arg8[%c2_63, %c0_64] : memref<7x7xf32, #tpu.memory_space<smem>>
    %183 = vector.broadcast %182 : f32 to vector<1x1024xf32>
    %184 = arith.mulf %25, %183 : vector<1x1024xf32>
    %c2_65 = arith.constant 2 : index
    %c1_66 = arith.constant 1 : index
    %185 = memref.load %arg8[%c2_65, %c1_66] : memref<7x7xf32, #tpu.memory_space<smem>>
    %186 = vector.broadcast %185 : f32 to vector<1x1024xf32>
    %187 = arith.mulf %38, %186 : vector<1x1024xf32>
    %188 = arith.addf %184, %187 : vector<1x1024xf32>
    %c2_67 = arith.constant 2 : index
    %c2_68 = arith.constant 2 : index
    %189 = memref.load %arg8[%c2_67, %c2_68] : memref<7x7xf32, #tpu.memory_space<smem>>
    %190 = vector.broadcast %189 : f32 to vector<1x1024xf32>
    %191 = arith.mulf %51, %190 : vector<1x1024xf32>
    %192 = arith.addf %188, %191 : vector<1x1024xf32>
    %c2_69 = arith.constant 2 : index
    %c3_70 = arith.constant 3 : index
    %193 = memref.load %arg8[%c2_69, %c3_70] : memref<7x7xf32, #tpu.memory_space<smem>>
    %194 = vector.broadcast %193 : f32 to vector<1x1024xf32>
    %195 = arith.mulf %61, %194 : vector<1x1024xf32>
    %196 = arith.addf %192, %195 : vector<1x1024xf32>
    %c2_71 = arith.constant 2 : index
    %c4_72 = arith.constant 4 : index
    %197 = memref.load %arg8[%c2_71, %c4_72] : memref<7x7xf32, #tpu.memory_space<smem>>
    %198 = vector.broadcast %197 : f32 to vector<1x1024xf32>
    %199 = arith.mulf %74, %198 : vector<1x1024xf32>
    %200 = arith.addf %196, %199 : vector<1x1024xf32>
    %c2_73 = arith.constant 2 : index
    %c5_74 = arith.constant 5 : index
    %201 = memref.load %arg8[%c2_73, %c5_74] : memref<7x7xf32, #tpu.memory_space<smem>>
    %202 = vector.broadcast %201 : f32 to vector<1x1024xf32>
    %203 = arith.mulf %87, %202 : vector<1x1024xf32>
    %204 = arith.addf %200, %203 : vector<1x1024xf32>
    %c2_75 = arith.constant 2 : index
    %c6_76 = arith.constant 6 : index
    %205 = memref.load %arg8[%c2_75, %c6_76] : memref<7x7xf32, #tpu.memory_space<smem>>
    %206 = vector.broadcast %205 : f32 to vector<1x1024xf32>
    %207 = arith.mulf %100, %206 : vector<1x1024xf32>
    %208 = arith.addf %204, %207 : vector<1x1024xf32>
    %209 = vector.extract_strided_slice %208 {offsets = [0, 992], sizes = [1, 32], strides = [1, 1]} : vector<1x1024xf32> to vector<1x32xf32>
    %210 = vector.extract_strided_slice %208 {offsets = [0, 0], sizes = [1, 992], strides = [1, 1]} : vector<1x1024xf32> to vector<1x992xf32>
    %211 = tpu.concatenate %209, %210 in 1 : vector<1x32xf32>, vector<1x992xf32> -> vector<1x1024xf32>
    %c-1_i32_77 = arith.constant -1 : i32
    %212 = vector.broadcast %c-1_i32_77 : i32 to vector<1x1024xi32>
    %213 = arith.addi %11, %212 : vector<1x1024xi32>
    %c0_i32_78 = arith.constant 0 : i32
    %214 = vector.broadcast %c0_i32_78 : i32 to vector<1x1024xi32>
    %215 = arith.cmpi sge, %213, %214 : vector<1x1024xi32>
    %c-1_i32_79 = arith.constant -1 : i32
    %216 = vector.broadcast %c-1_i32_79 : i32 to vector<1x1024xi32>
    %217 = arith.addi %11, %216 : vector<1x1024xi32>
    %c31_i32_80 = arith.constant 31 : i32
    %218 = vector.broadcast %c31_i32_80 : i32 to vector<1x1024xi32>
    %219 = arith.cmpi sle, %217, %218 : vector<1x1024xi32>
    %220 = arith.andi %215, %219 : vector<1x1024xi1>
    %221 = arith.select %220, %211, %12 : vector<1x1024xi1>, vector<1x1024xf32>
    %222 = arith.addf %181, %221 : vector<1x1024xf32>
    %c3_81 = arith.constant 3 : index
    %c0_82 = arith.constant 0 : index
    %223 = memref.load %arg8[%c3_81, %c0_82] : memref<7x7xf32, #tpu.memory_space<smem>>
    %224 = vector.broadcast %223 : f32 to vector<1x1024xf32>
    %225 = arith.mulf %25, %224 : vector<1x1024xf32>
    %c3_83 = arith.constant 3 : index
    %c1_84 = arith.constant 1 : index
    %226 = memref.load %arg8[%c3_83, %c1_84] : memref<7x7xf32, #tpu.memory_space<smem>>
    %227 = vector.broadcast %226 : f32 to vector<1x1024xf32>
    %228 = arith.mulf %38, %227 : vector<1x1024xf32>
    %229 = arith.addf %225, %228 : vector<1x1024xf32>
    %c3_85 = arith.constant 3 : index
    %c2_86 = arith.constant 2 : index
    %230 = memref.load %arg8[%c3_85, %c2_86] : memref<7x7xf32, #tpu.memory_space<smem>>
    %231 = vector.broadcast %230 : f32 to vector<1x1024xf32>
    %232 = arith.mulf %51, %231 : vector<1x1024xf32>
    %233 = arith.addf %229, %232 : vector<1x1024xf32>
    %c3_87 = arith.constant 3 : index
    %c3_88 = arith.constant 3 : index
    %234 = memref.load %arg8[%c3_87, %c3_88] : memref<7x7xf32, #tpu.memory_space<smem>>
    %235 = vector.broadcast %234 : f32 to vector<1x1024xf32>
    %236 = arith.mulf %61, %235 : vector<1x1024xf32>
    %237 = arith.addf %233, %236 : vector<1x1024xf32>
    %c3_89 = arith.constant 3 : index
    %c4_90 = arith.constant 4 : index
    %238 = memref.load %arg8[%c3_89, %c4_90] : memref<7x7xf32, #tpu.memory_space<smem>>
    %239 = vector.broadcast %238 : f32 to vector<1x1024xf32>
    %240 = arith.mulf %74, %239 : vector<1x1024xf32>
    %241 = arith.addf %237, %240 : vector<1x1024xf32>
    %c3_91 = arith.constant 3 : index
    %c5_92 = arith.constant 5 : index
    %242 = memref.load %arg8[%c3_91, %c5_92] : memref<7x7xf32, #tpu.memory_space<smem>>
    %243 = vector.broadcast %242 : f32 to vector<1x1024xf32>
    %244 = arith.mulf %87, %243 : vector<1x1024xf32>
    %245 = arith.addf %241, %244 : vector<1x1024xf32>
    %c3_93 = arith.constant 3 : index
    %c6_94 = arith.constant 6 : index
    %246 = memref.load %arg8[%c3_93, %c6_94] : memref<7x7xf32, #tpu.memory_space<smem>>
    %247 = vector.broadcast %246 : f32 to vector<1x1024xf32>
    %248 = arith.mulf %100, %247 : vector<1x1024xf32>
    %249 = arith.addf %245, %248 : vector<1x1024xf32>
    %c0_i32_95 = arith.constant 0 : i32
    %250 = vector.broadcast %c0_i32_95 : i32 to vector<1x1024xi32>
    %251 = arith.addi %11, %250 : vector<1x1024xi32>
    %c0_i32_96 = arith.constant 0 : i32
    %252 = vector.broadcast %c0_i32_96 : i32 to vector<1x1024xi32>
    %253 = arith.cmpi sge, %251, %252 : vector<1x1024xi32>
    %c0_i32_97 = arith.constant 0 : i32
    %254 = vector.broadcast %c0_i32_97 : i32 to vector<1x1024xi32>
    %255 = arith.addi %11, %254 : vector<1x1024xi32>
    %c31_i32_98 = arith.constant 31 : i32
    %256 = vector.broadcast %c31_i32_98 : i32 to vector<1x1024xi32>
    %257 = arith.cmpi sle, %255, %256 : vector<1x1024xi32>
    %258 = arith.andi %253, %257 : vector<1x1024xi1>
    %259 = arith.select %258, %249, %12 : vector<1x1024xi1>, vector<1x1024xf32>
    %260 = arith.addf %222, %259 : vector<1x1024xf32>
    %c4_99 = arith.constant 4 : index
    %c0_100 = arith.constant 0 : index
    %261 = memref.load %arg8[%c4_99, %c0_100] : memref<7x7xf32, #tpu.memory_space<smem>>
    %262 = vector.broadcast %261 : f32 to vector<1x1024xf32>
    %263 = arith.mulf %25, %262 : vector<1x1024xf32>
    %c4_101 = arith.constant 4 : index
    %c1_102 = arith.constant 1 : index
    %264 = memref.load %arg8[%c4_101, %c1_102] : memref<7x7xf32, #tpu.memory_space<smem>>
    %265 = vector.broadcast %264 : f32 to vector<1x1024xf32>
    %266 = arith.mulf %38, %265 : vector<1x1024xf32>
    %267 = arith.addf %263, %266 : vector<1x1024xf32>
    %c4_103 = arith.constant 4 : index
    %c2_104 = arith.constant 2 : index
    %268 = memref.load %arg8[%c4_103, %c2_104] : memref<7x7xf32, #tpu.memory_space<smem>>
    %269 = vector.broadcast %268 : f32 to vector<1x1024xf32>
    %270 = arith.mulf %51, %269 : vector<1x1024xf32>
    %271 = arith.addf %267, %270 : vector<1x1024xf32>
    %c4_105 = arith.constant 4 : index
    %c3_106 = arith.constant 3 : index
    %272 = memref.load %arg8[%c4_105, %c3_106] : memref<7x7xf32, #tpu.memory_space<smem>>
    %273 = vector.broadcast %272 : f32 to vector<1x1024xf32>
    %274 = arith.mulf %61, %273 : vector<1x1024xf32>
    %275 = arith.addf %271, %274 : vector<1x1024xf32>
    %c4_107 = arith.constant 4 : index
    %c4_108 = arith.constant 4 : index
    %276 = memref.load %arg8[%c4_107, %c4_108] : memref<7x7xf32, #tpu.memory_space<smem>>
    %277 = vector.broadcast %276 : f32 to vector<1x1024xf32>
    %278 = arith.mulf %74, %277 : vector<1x1024xf32>
    %279 = arith.addf %275, %278 : vector<1x1024xf32>
    %c4_109 = arith.constant 4 : index
    %c5_110 = arith.constant 5 : index
    %280 = memref.load %arg8[%c4_109, %c5_110] : memref<7x7xf32, #tpu.memory_space<smem>>
    %281 = vector.broadcast %280 : f32 to vector<1x1024xf32>
    %282 = arith.mulf %87, %281 : vector<1x1024xf32>
    %283 = arith.addf %279, %282 : vector<1x1024xf32>
    %c4_111 = arith.constant 4 : index
    %c6_112 = arith.constant 6 : index
    %284 = memref.load %arg8[%c4_111, %c6_112] : memref<7x7xf32, #tpu.memory_space<smem>>
    %285 = vector.broadcast %284 : f32 to vector<1x1024xf32>
    %286 = arith.mulf %100, %285 : vector<1x1024xf32>
    %287 = arith.addf %283, %286 : vector<1x1024xf32>
    %288 = vector.extract_strided_slice %287 {offsets = [0, 32], sizes = [1, 992], strides = [1, 1]} : vector<1x1024xf32> to vector<1x992xf32>
    %289 = vector.extract_strided_slice %287 {offsets = [0, 0], sizes = [1, 32], strides = [1, 1]} : vector<1x1024xf32> to vector<1x32xf32>
    %290 = tpu.concatenate %288, %289 in 1 : vector<1x992xf32>, vector<1x32xf32> -> vector<1x1024xf32>
    %c1_i32_113 = arith.constant 1 : i32
    %291 = vector.broadcast %c1_i32_113 : i32 to vector<1x1024xi32>
    %292 = arith.addi %11, %291 : vector<1x1024xi32>
    %c0_i32_114 = arith.constant 0 : i32
    %293 = vector.broadcast %c0_i32_114 : i32 to vector<1x1024xi32>
    %294 = arith.cmpi sge, %292, %293 : vector<1x1024xi32>
    %c1_i32_115 = arith.constant 1 : i32
    %295 = vector.broadcast %c1_i32_115 : i32 to vector<1x1024xi32>
    %296 = arith.addi %11, %295 : vector<1x1024xi32>
    %c31_i32_116 = arith.constant 31 : i32
    %297 = vector.broadcast %c31_i32_116 : i32 to vector<1x1024xi32>
    %298 = arith.cmpi sle, %296, %297 : vector<1x1024xi32>
    %299 = arith.andi %294, %298 : vector<1x1024xi1>
    %300 = arith.select %299, %290, %12 : vector<1x1024xi1>, vector<1x1024xf32>
    %301 = arith.addf %260, %300 : vector<1x1024xf32>
    %c5_117 = arith.constant 5 : index
    %c0_118 = arith.constant 0 : index
    %302 = memref.load %arg8[%c5_117, %c0_118] : memref<7x7xf32, #tpu.memory_space<smem>>
    %303 = vector.broadcast %302 : f32 to vector<1x1024xf32>
    %304 = arith.mulf %25, %303 : vector<1x1024xf32>
    %c5_119 = arith.constant 5 : index
    %c1_120 = arith.constant 1 : index
    %305 = memref.load %arg8[%c5_119, %c1_120] : memref<7x7xf32, #tpu.memory_space<smem>>
    %306 = vector.broadcast %305 : f32 to vector<1x1024xf32>
    %307 = arith.mulf %38, %306 : vector<1x1024xf32>
    %308 = arith.addf %304, %307 : vector<1x1024xf32>
    %c5_121 = arith.constant 5 : index
    %c2_122 = arith.constant 2 : index
    %309 = memref.load %arg8[%c5_121, %c2_122] : memref<7x7xf32, #tpu.memory_space<smem>>
    %310 = vector.broadcast %309 : f32 to vector<1x1024xf32>
    %311 = arith.mulf %51, %310 : vector<1x1024xf32>
    %312 = arith.addf %308, %311 : vector<1x1024xf32>
    %c5_123 = arith.constant 5 : index
    %c3_124 = arith.constant 3 : index
    %313 = memref.load %arg8[%c5_123, %c3_124] : memref<7x7xf32, #tpu.memory_space<smem>>
    %314 = vector.broadcast %313 : f32 to vector<1x1024xf32>
    %315 = arith.mulf %61, %314 : vector<1x1024xf32>
    %316 = arith.addf %312, %315 : vector<1x1024xf32>
    %c5_125 = arith.constant 5 : index
    %c4_126 = arith.constant 4 : index
    %317 = memref.load %arg8[%c5_125, %c4_126] : memref<7x7xf32, #tpu.memory_space<smem>>
    %318 = vector.broadcast %317 : f32 to vector<1x1024xf32>
    %319 = arith.mulf %74, %318 : vector<1x1024xf32>
    %320 = arith.addf %316, %319 : vector<1x1024xf32>
    %c5_127 = arith.constant 5 : index
    %c5_128 = arith.constant 5 : index
    %321 = memref.load %arg8[%c5_127, %c5_128] : memref<7x7xf32, #tpu.memory_space<smem>>
    %322 = vector.broadcast %321 : f32 to vector<1x1024xf32>
    %323 = arith.mulf %87, %322 : vector<1x1024xf32>
    %324 = arith.addf %320, %323 : vector<1x1024xf32>
    %c5_129 = arith.constant 5 : index
    %c6_130 = arith.constant 6 : index
    %325 = memref.load %arg8[%c5_129, %c6_130] : memref<7x7xf32, #tpu.memory_space<smem>>
    %326 = vector.broadcast %325 : f32 to vector<1x1024xf32>
    %327 = arith.mulf %100, %326 : vector<1x1024xf32>
    %328 = arith.addf %324, %327 : vector<1x1024xf32>
    %329 = vector.extract_strided_slice %328 {offsets = [0, 64], sizes = [1, 960], strides = [1, 1]} : vector<1x1024xf32> to vector<1x960xf32>
    %330 = vector.extract_strided_slice %328 {offsets = [0, 0], sizes = [1, 64], strides = [1, 1]} : vector<1x1024xf32> to vector<1x64xf32>
    %331 = tpu.concatenate %329, %330 in 1 : vector<1x960xf32>, vector<1x64xf32> -> vector<1x1024xf32>
    %c2_i32_131 = arith.constant 2 : i32
    %332 = vector.broadcast %c2_i32_131 : i32 to vector<1x1024xi32>
    %333 = arith.addi %11, %332 : vector<1x1024xi32>
    %c0_i32_132 = arith.constant 0 : i32
    %334 = vector.broadcast %c0_i32_132 : i32 to vector<1x1024xi32>
    %335 = arith.cmpi sge, %333, %334 : vector<1x1024xi32>
    %c2_i32_133 = arith.constant 2 : i32
    %336 = vector.broadcast %c2_i32_133 : i32 to vector<1x1024xi32>
    %337 = arith.addi %11, %336 : vector<1x1024xi32>
    %c31_i32_134 = arith.constant 31 : i32
    %338 = vector.broadcast %c31_i32_134 : i32 to vector<1x1024xi32>
    %339 = arith.cmpi sle, %337, %338 : vector<1x1024xi32>
    %340 = arith.andi %335, %339 : vector<1x1024xi1>
    %341 = arith.select %340, %331, %12 : vector<1x1024xi1>, vector<1x1024xf32>
    %342 = arith.addf %301, %341 : vector<1x1024xf32>
    %c6_135 = arith.constant 6 : index
    %c0_136 = arith.constant 0 : index
    %343 = memref.load %arg8[%c6_135, %c0_136] : memref<7x7xf32, #tpu.memory_space<smem>>
    %344 = vector.broadcast %343 : f32 to vector<1x1024xf32>
    %345 = arith.mulf %25, %344 : vector<1x1024xf32>
    %c6_137 = arith.constant 6 : index
    %c1_138 = arith.constant 1 : index
    %346 = memref.load %arg8[%c6_137, %c1_138] : memref<7x7xf32, #tpu.memory_space<smem>>
    %347 = vector.broadcast %346 : f32 to vector<1x1024xf32>
    %348 = arith.mulf %38, %347 : vector<1x1024xf32>
    %349 = arith.addf %345, %348 : vector<1x1024xf32>
    %c6_139 = arith.constant 6 : index
    %c2_140 = arith.constant 2 : index
    %350 = memref.load %arg8[%c6_139, %c2_140] : memref<7x7xf32, #tpu.memory_space<smem>>
    %351 = vector.broadcast %350 : f32 to vector<1x1024xf32>
    %352 = arith.mulf %51, %351 : vector<1x1024xf32>
    %353 = arith.addf %349, %352 : vector<1x1024xf32>
    %c6_141 = arith.constant 6 : index
    %c3_142 = arith.constant 3 : index
    %354 = memref.load %arg8[%c6_141, %c3_142] : memref<7x7xf32, #tpu.memory_space<smem>>
    %355 = vector.broadcast %354 : f32 to vector<1x1024xf32>
    %356 = arith.mulf %61, %355 : vector<1x1024xf32>
    %357 = arith.addf %353, %356 : vector<1x1024xf32>
    %c6_143 = arith.constant 6 : index
    %c4_144 = arith.constant 4 : index
    %358 = memref.load %arg8[%c6_143, %c4_144] : memref<7x7xf32, #tpu.memory_space<smem>>
    %359 = vector.broadcast %358 : f32 to vector<1x1024xf32>
    %360 = arith.mulf %74, %359 : vector<1x1024xf32>
    %361 = arith.addf %357, %360 : vector<1x1024xf32>
    %c6_145 = arith.constant 6 : index
    %c5_146 = arith.constant 5 : index
    %362 = memref.load %arg8[%c6_145, %c5_146] : memref<7x7xf32, #tpu.memory_space<smem>>
    %363 = vector.broadcast %362 : f32 to vector<1x1024xf32>
    %364 = arith.mulf %87, %363 : vector<1x1024xf32>
    %365 = arith.addf %361, %364 : vector<1x1024xf32>
    %c6_147 = arith.constant 6 : index
    %c6_148 = arith.constant 6 : index
    %366 = memref.load %arg8[%c6_147, %c6_148] : memref<7x7xf32, #tpu.memory_space<smem>>
    %367 = vector.broadcast %366 : f32 to vector<1x1024xf32>
    %368 = arith.mulf %100, %367 : vector<1x1024xf32>
    %369 = arith.addf %365, %368 : vector<1x1024xf32>
    %370 = vector.extract_strided_slice %369 {offsets = [0, 96], sizes = [1, 928], strides = [1, 1]} : vector<1x1024xf32> to vector<1x928xf32>
    %371 = vector.extract_strided_slice %369 {offsets = [0, 0], sizes = [1, 96], strides = [1, 1]} : vector<1x1024xf32> to vector<1x96xf32>
    %372 = tpu.concatenate %370, %371 in 1 : vector<1x928xf32>, vector<1x96xf32> -> vector<1x1024xf32>
    %c3_i32_149 = arith.constant 3 : i32
    %373 = vector.broadcast %c3_i32_149 : i32 to vector<1x1024xi32>
    %374 = arith.addi %11, %373 : vector<1x1024xi32>
    %c0_i32_150 = arith.constant 0 : i32
    %375 = vector.broadcast %c0_i32_150 : i32 to vector<1x1024xi32>
    %376 = arith.cmpi sge, %374, %375 : vector<1x1024xi32>
    %c3_i32_151 = arith.constant 3 : i32
    %377 = vector.broadcast %c3_i32_151 : i32 to vector<1x1024xi32>
    %378 = arith.addi %11, %377 : vector<1x1024xi32>
    %c31_i32_152 = arith.constant 31 : i32
    %379 = vector.broadcast %c31_i32_152 : i32 to vector<1x1024xi32>
    %380 = arith.cmpi sle, %378, %379 : vector<1x1024xi32>
    %381 = arith.andi %376, %380 : vector<1x1024xi1>
    %382 = arith.select %381, %372, %12 : vector<1x1024xi1>, vector<1x1024xf32>
    %383 = arith.addf %342, %382 : vector<1x1024xf32>
    %cst_153 = arith.constant 0.000000e+00 : f32
    %384 = vector.broadcast %cst_153 : f32 to vector<1x1024xf32>
    %385 = arith.subf %384, %383 : vector<1x1024xf32>
    %386 = math.exp %385 : vector<1x1024xf32>
    %cst_154 = arith.constant 1.000000e+00 : f32
    %387 = vector.broadcast %cst_154 : f32 to vector<1x1024xf32>
    %388 = arith.addf %387, %386 : vector<1x1024xf32>
    %cst_155 = arith.constant 1.000000e+00 : f32
    %389 = vector.broadcast %cst_155 : f32 to vector<1x1024xf32>
    %390 = arith.divf %389, %388 : vector<1x1024xf32>
    %cst_156 = arith.constant 1.000000e+00 : f32
    %391 = vector.broadcast %cst_156 : f32 to vector<1x1024xf32>
    %392 = arith.addf %391, %390 : vector<1x1024xf32>
    %393 = vector.broadcast %392 : vector<1x1024xf32> to vector<32x1024xf32>
    %394 = arith.mulf %1, %393 : vector<32x1024xf32>
    %cst_157 = arith.constant dense<0xFF800000> : vector<32xf32>
    %395 = vector.multi_reduction <maximumf>, %394, %cst_157 [1] : vector<32x1024xf32> to vector<32xf32>
    %396 = vector.shape_cast %395 : vector<32xf32> to vector<32x1xf32>
    %c0_158 = arith.constant 0 : index
    %c0_159 = arith.constant 0 : index
    %397 = vector.load %arg6[%c0_158, %c0_159] : memref<32x2xf32, #tpu.memory_space<vmem>>, vector<32x2xf32>
    %398 = vector.broadcast %396 : vector<32x1xf32> to vector<32x2xf32>
    %399 = arith.mulf %397, %398 : vector<32x2xf32>
    %cst_160 = arith.constant dense<0.000000e+00> : vector<2xf32>
    %400 = vector.multi_reduction <add>, %399, %cst_160 [0] : vector<32x2xf32> to vector<2xf32>
    %401 = vector.shape_cast %400 : vector<2xf32> to vector<1x2xf32>
    %cst_161 = arith.constant 0.000000e+00 : f32
    %402 = vector.broadcast %cst_161 : f32 to vector<1x2xf32>
    %403 = arith.maximumf %401, %402 : vector<1x2xf32>
    %c0_162 = arith.constant 0 : index
    %c0_163 = arith.constant 0 : index
    %404 = vector.load %arg7[%c0_162, %c0_163] : memref<32x2xf32, #tpu.memory_space<vmem>>, vector<32x2xf32>
    %405 = vector.broadcast %403 : vector<1x2xf32> to vector<32x2xf32>
    %406 = arith.mulf %404, %405 : vector<32x2xf32>
    %cst_164 = arith.constant dense<0.000000e+00> : vector<32xf32>
    %407 = vector.multi_reduction <add>, %406, %cst_164 [1] : vector<32x2xf32> to vector<32xf32>
    %408 = vector.shape_cast %407 : vector<32xf32> to vector<32x1xf32>
    %cst_165 = arith.constant 0.000000e+00 : f32
    %409 = vector.broadcast %cst_165 : f32 to vector<32x1xf32>
    %410 = arith.subf %409, %408 : vector<32x1xf32>
    %411 = math.exp %410 : vector<32x1xf32>
    %cst_166 = arith.constant 1.000000e+00 : f32
    %412 = vector.broadcast %cst_166 : f32 to vector<32x1xf32>
    %413 = arith.addf %412, %411 : vector<32x1xf32>
    %cst_167 = arith.constant 1.000000e+00 : f32
    %414 = vector.broadcast %cst_167 : f32 to vector<32x1xf32>
    %415 = arith.divf %414, %413 : vector<32x1xf32>
    %416 = vector.broadcast %415 : vector<32x1xf32> to vector<32x1024xf32>
    %417 = arith.mulf %1, %416 : vector<32x1024xf32>
    %c0_168 = arith.constant 0 : index
    %c0_169 = arith.constant 0 : index
    %c0_170 = arith.constant 0 : index
    %418 = vector.load %arg9[%c0_168, %c0_169, %c0_170] : memref<1x32x1024xf32, #tpu.memory_space<vmem>>, vector<1x32x1024xf32>
    %419 = vector.shape_cast %418 : vector<1x32x1024xf32> to vector<32x1024xf32>
    %420 = vector.shape_cast %417 : vector<32x1024xf32> to vector<1x32x1024xf32>
    tpu.vector_store %arg9[%c0_168, %c0_169, %c0_170], %420 {strides = array<i32>} : memref<1x32x1024xf32, #tpu.memory_space<vmem>>, vector<1x32x1024xf32>,
    return
  }
  func.func @transform_0(%arg0: i32) -> (i32, i32, i32) {
    %c0_i32 = arith.constant 0 : i32
    %c0_i32_0 = arith.constant 0 : i32
    %c0_i32_1 = arith.constant 0 : i32
    return %arg0, %c0_i32, %c0_i32_0 : i32, i32, i32
  }
  func.func @transform_1(%arg0: i32) -> (i32, i32, i32) {
    %c0_i32 = arith.constant 0 : i32
    %c0_i32_0 = arith.constant 0 : i32
    %c0_i32_1 = arith.constant 0 : i32
    return %arg0, %c0_i32, %c0_i32_0 : i32, i32, i32
  }
  func.func @transform_2(%arg0: i32) -> (i32, i32, i32) {
    %c0_i32 = arith.constant 0 : i32
    %c0_i32_0 = arith.constant 0 : i32
    %c0_i32_1 = arith.constant 0 : i32
    return %arg0, %c0_i32, %c0_i32_0 : i32, i32, i32
  }
  func.func @transform_3(%arg0: i32) -> (i32, i32) {
    %c0_i32 = arith.constant 0 : i32
    %c0_i32_0 = arith.constant 0 : i32
    %c0_i32_1 = arith.constant 0 : i32
    return %c0_i32, %c0_i32_0 : i32, i32
  }
  func.func @transform_4(%arg0: i32) -> (i32, i32) {
    %c0_i32 = arith.constant 0 : i32
    %c0_i32_0 = arith.constant 0 : i32
    %c0_i32_1 = arith.constant 0 : i32
    return %c0_i32, %c0_i32_0 : i32, i32
  }
  func.func @transform_5(%arg0: i32) -> (i32, i32) {
    %c0_i32 = arith.constant 0 : i32
    %c0_i32_0 = arith.constant 0 : i32
    %c0_i32_1 = arith.constant 0 : i32
    return %c0_i32, %c0_i32_0 : i32, i32
  }
  func.func @transform_6(%arg0: i32) -> (i32, i32) {
    %c0_i32 = arith.constant 0 : i32
    %c0_i32_0 = arith.constant 0 : i32
    %c0_i32_1 = arith.constant 0 : i32
    return %c0_i32, %c0_i32_0 : i32, i32
  }
  func.func @transform_7(%arg0: i32) -> (i32, i32) {
    %c0_i32 = arith.constant 0 : i32
    %c0_i32_0 = arith.constant 0 : i32
    %c0_i32_1 = arith.constant 0 : i32
    return %c0_i32, %c0_i32_0 : i32, i32
  }
  func.func @transform_8(%arg0: i32) -> (i32, i32, i32) {
    %c0_i32 = arith.constant 0 : i32
    %c0_i32_0 = arith.constant 0 : i32
    %c0_i32_1 = arith.constant 0 : i32
    return %arg0, %c0_i32, %c0_i32_0 : i32, i32, i32
  }
}

</mosaic_0001>

<bundles_post_ra>
// kernel: tpu_custom_call.1
= control target key start
LH: loop header
LB: loop body
LE: loop exit
PB: predicated region body
PF: predicated region fallthrough
CT: control target
= control target key end

     0   :  { %s3671_s0 = inlined_call_operand.hbm [shape: f32[2,32,1024], index: 0, kind: input, shape index: {}]   ;;  %s3672_s1 = inlined_call_operand.hbm [shape: f32[2,32,1024], index: 1, kind: input, shape index: {}]   ;;  %s3673_s2 = inlined_call_operand.hbm [shape: f32[2,32,1024], index: 2, kind: input, shape index: {}]   ;;  %s3674_s3 = inlined_call_operand.vmem [shape: s32[1,1024], index: 3, kind: input, shape index: {}]   ;;  %s3675_s4 = inlined_call_operand.vmem [shape: s32[1,1024], index: 4, kind: input, shape index: {}]   ;;  %s3676_s5 = inlined_call_operand.vmem [shape: f32[32,2], index: 5, kind: input, shape index: {}]   ;;  %s3677_s6 = inlined_call_operand.vmem [shape: f32[32,2], index: 6, kind: input, shape index: {}]   ;;  %s3678_s7 = inlined_call_operand.vmem [shape: f32[7,7], index: 7, kind: input, shape index: {}]   ;;  %s3679_s8 = inlined_call_operand.hbm [shape: f32[2,32,1024], index: 8, kind: output, shape index: {}]  }
   0x1   :  { %3694 = sst [smem:[#allocation21_spill]] %s3672_s1 }
   0x2   :  { %3695 = sst [smem:[#allocation22_spill]] %s3678_s7 }
   0x3   :  { %3696 = sst [smem:[#allocation23_spill]] %s3679_s8 }
   0x4   :  { %13 = vsyncpa [#allocation3], 0 }
   0x5   :  { %15 = vsyncpa [#allocation3 + $0x1], 0 }
   0x6   :  { %16 = vsyncpa [#allocation7], 0 }
   0x7   :  { %18 = vsyncpa [#allocation7 + $0x1], 0 }
   0x8   :  { %19 = vsyncpa [#allocation5], 0 }
   0x9   :  { %20 = vsyncpa [#allocation4], 0 }
   0xa   :  { %22 = vsyncpa [#allocation4 + $0x1], 0  ;;  %s2392_s27 = smov 0   ;;  %s2394_s28 = smov 0  }
   0xb   :  { %s2396_s29 = smov 0   ;;  %s2398_s30 = smov 0  }
   0xc LB: > { %3697 = sst [smem:[#allocation15_spill]] %s2320_s27  ;;  %s2413_s9 = sadd.s32 1, %s2332_s30   ;;  %s2332_s30 = sphi %s2398_s30, %s3733_s30   ;;  %s2328_s29 = sphi %s2396_s29, %s3737_s29   ;;  %s2324_s28 = sphi %s2394_s28, %s3736_s28   ;;  %s2320_s27 = sphi %s2392_s27, %s3735_s27  }
   0xd   : > { %3698 = sst [smem:[#allocation16_spill]] %s2332_s30  ;;  %s35_s10 = sadd.s32 1, %s2328_s29 }
   0xe   : > { %3699 = sst [smem:[#allocation17_spill]] %s2413_s9  ;;  %s32_s11 = ssub.s32 %s2332_s30, %s2413_s9 }
   0xf   : > { %p42_p0 = scmp.ne.s32.totalorder %s2328_s29, %s2324_s28  ;;  %p33_p1 = scmp.eq.s32.totalorder %s32_s11, 0 }
  0x10   : > { %p43_p2 = scmp.eq.s32.totalorder %s2332_s30, 0  ;;  %p2053_p4 = scmp.lt.s32.totalorder %s2332_s30, 2 }
  0x11   : > { %s2424_s12 = scalar_select %p33_p1, %s2328_s29, %s35_s10  }
  0x12   : > { %p44_p5 = por %p43_p2, %p42_p0  ;;  %s3684_s13 = sand.u32 1, %s2328_s29  }
  0x13   : > { %3700 = sst [smem:[#allocation18_spill]] %s2424_s12  ;;  %s2432_s14 = sshll.u32 %s3684_s13, 8 }
  0x14   : > { %s2435_s15 = sshll.u32 %s2332_s30, 8  ;;  %p2437_p6 = pnand %p2053_p4, %p44_p5 }
  0x15   : > { %s299_s17 = sand.u32 1, %s2332_s30   ;;  %s3702_s1 = sld [smem:[#allocation21_spill]] }
  0x16   : > { %s303_s22 = scalar_lea.vmem [#allocation6], %s2432_s14  ;;  %s2447_s24 = scalar_lea.sflag [#allocation7], %s299_s17 }
  0x17   : > { %s311_s23 = sshll.u32 %s303_s22, 4  ;;  %p2157_p8 = pneg %p2437_p6  ;;  %s312_s23 = int_to_ptr.vmem [resolvable:$true] %s311_s23 }
  0x1b   : > { %s308_s20 = scalar_lea.hbm %s3702_s1, %s2435_s15  ;;  %s2160_s18 = scalar_lea.hbm %s3702_s1, 512 }
  0x1c   : > { %s309_s21 = sshll.u32 %s308_s20, 4  ;;  %s310_s21 = int_to_ptr.hbm [resolvable:$true] %s309_s21 }
  0x1d   : > { %s2153_s25 = sshra.s32 %s310_s21, 4  ;;  %s2154_s25 = int_to_ptr.hbm [resolvable:$true] %s2153_s25 }
  0x1e   : > { %s2155_s26 = scalar_lea.hbm %s2154_s25, 256  ;;  %p2161_p11 = scmp.lt.s32.totalorder %s2154_s25, %s3702_s1 }
  0x1f   : > { %p2156_p7 = scmp.ne.s32.totalorder %s2154_s25, %s2155_s26  ;;  %p2162_p12 = scmp.lt.s32.totalorder %s2160_s18, %s2155_s26 }
  0x21   : > { %p2158_p9 = pnand %p2157_p8, %p2156_p7  ;;  %p2163_p13 = por %p2162_p12, %p2161_p11 }
  0x23   : > { %p2159_p10 = pneg %p2158_p9 }
  0x25   : > { %p2164_p1 = pnand %p2163_p13, %p2159_p10 }
  0x27   : > { %2167 = shalt.err (!%p2164_p1)
}
  0x28   : > { %s3680_s17 = smov 1024   ;;  %s3682_s22 = smov 64  }
  0x29   : > { %2044 = dma.hbm_to_vmem [thread:$0]  (!%p2437_p6), %s310_s21, 4096, %s312_s23, %s2447_s24, %s3680_s17, %s3680_s17, %s3682_s22  }
  0x2a   : > { %s2467_s25 = sadd.s32 4294967295, %s2332_s30   ;;  %s1946_s26 = sadd.s32 4294967294, %s2332_s30  }
  0x2b   : > { %p48_p2 = scmp.ne.s32.totalorder %s2324_s28, %s2320_s27  ;;  %p49_p4 = scmp.eq.s32.totalorder %s2467_s25, 0 }
  0x2c   : > { %p229_p5 = scmp.eq.s32.totalorder %s2467_s25, 1  ;;  %p235_p7 = scmp.eq.s32.totalorder %s1946_s26, 1 }
  0x2d   : > { %p2476_p9 = por %p49_p4, %p48_p2  ;;  %p1947_p10 = scmp.ge.s32.totalorder %s2332_s30, 1 }
  0x2e   : > { %p2484_p11 = por %p229_p5, %p42_p0  ;;  %p2488_p12 = por %p235_p7, %p48_p2 }
  0x2f   : > { %p242_p13 = scmp.lt.s32.totalorder %s2332_s30, 3  ;;  %s3708_s7 = sld [smem:[#allocation22_spill]] }
  0x30   : > { %s3704_s21 = scalar_select %p2484_p11, 1, 0 }
  0x31   : > { %s3706_s23 = scalar_select %p2488_p12, 1, 0 }
  0x32   : > { %3705 = sst [smem:[#allocation19_spill]] %s3704_s21  ;;  %p2496_p1 = pnand %p1947_p10, %p242_p13 }
  0x33   : > { %3707 = sst [smem:[#allocation20_spill]] %s3706_s23  ;;  %s286_s22 = scalar_lea.hbm %s3671_s0, %s2435_s15 }
  0x34   : > { %p2034_p0 = pneg %p2496_p1  ;;  %s287_s13 = sshll.u32 %s286_s22, 4  ;;  %s288_s13 = int_to_ptr.hbm [resolvable:$true] %s287_s13 }
  0x35   : > { %s266_s19 = sshll.u32 %s3708_s7, 4  ;;  %s281_s1 = scalar_lea.vmem [#allocation2], %s2432_s14  ;;  %s267_s19 = int_to_ptr.vmem [resolvable:$true] %s266_s19 }
  0x36   : > { %s289_s12 = sshll.u32 %s281_s1, 4  ;;  %p2035_p2 = pnand %p2034_p0, %p49_p4  ;;  %s290_s12 = int_to_ptr.vmem [resolvable:$true] %s289_s12 }
  0x37   : > { %s330_s7 = scalar_lea.hbm %s3673_s2, %s2435_s15  ;;  %s2336_s9 = smov [#allocation9]  }
  0x38   : > { %2037 = dma.vmem_to_smem (!%p2035_p2), %s267_s19, 128, %s2336_s9, [#allocation5]  }
  0x39   : > { %s3710_s30 = sand.u32 1, %s2328_s29   ;;  %s2198_s27 = sshra.s32 %s288_s13, 4  ;;  %s2199_s27 = int_to_ptr.hbm [resolvable:$true] %s2198_s27 }
  0x3a   : > { %s278_s23 = scalar_lea.sflag [#allocation3], %s3710_s30  ;;  %s2200_s17 = scalar_lea.hbm %s2199_s27, 256 }
  0x3b   : > { %p2201_p5 = scmp.ne.s32.totalorder %s2199_s27, %s2200_s17  ;;  %s2205_s26 = scalar_lea.hbm %s3671_s0, 512 }
  0x3c   : > { %p2206_p13 = scmp.lt.s32.totalorder %s2199_s27, %s3671_s0  ;;  %p2207_p0 = scmp.lt.s32.totalorder %s2205_s26, %s2200_s17 }
  0x3d   : > { %p2203_p7 = pnand %p2201_p5, %p2157_p8 }
  0x3e   : > { %p2208_p2 = por %p2207_p0, %p2206_p13 }
  0x3f   : > { %p2204_p10 = pneg %p2203_p7 }
  0x41   : > { %p2209_p3 = pnand %p2208_p2, %p2204_p10 }
  0x43   : > { %2212 = shalt.err (!%p2209_p3)
}
  0x44   : > { %s3711_s30 = smov 64   ;;  %s3712_s9 = smov 1024  }
  0x45   : > { %2041 = dma.hbm_to_vmem [thread:$0]  (!%p2437_p6), %s288_s13, 4096, %s290_s12, %s278_s23, %s3712_s9, %s3712_s9, %s3711_s30  }
  0x46   : > { %s331_s15 = sshll.u32 %s330_s7, 4  ;;  %s325_s19 = scalar_lea.vmem [#allocation8], %s2432_s14  ;;  %s332_s15 = int_to_ptr.hbm [resolvable:$true] %s331_s15 }
  0x47   : > { %s333_s11 = sshll.u32 %s325_s19, 4  ;;  %s2228_s18 = sshra.s32 %s332_s15, 4  ;;  %s334_s11 = int_to_ptr.vmem [resolvable:$true] %s333_s11  ;;  %s2229_s18 = int_to_ptr.hbm [resolvable:$true] %s2228_s18 }
  0x48   : > { %s2230_s8 = scalar_lea.hbm %s2229_s18, 256  ;;  %s2235_s17 = scalar_lea.hbm %s3673_s2, 512 }
  0x49   : > { %p2231_p5 = scmp.ne.s32.totalorder %s2229_s18, %s2230_s8  ;;  %p2236_p10 = scmp.lt.s32.totalorder %s2229_s18, %s3673_s2 }
  0x4a   : > { %p2237_p13 = scmp.lt.s32.totalorder %s2235_s17, %s2230_s8 }
  0x4b   : > { %p2233_p3 = pnand %p2231_p5, %p2157_p8 }
  0x4c   : > { %p2238_p0 = por %p2237_p13, %p2236_p10 }
  0x4d   : > { %p2234_p7 = pneg %p2233_p3 }
  0x4f   : > { %p2239_p2 = pnand %p2238_p0, %p2234_p7 }
  0x51   : > { %2242 = shalt.err (!%p2239_p2)
}
  0x52   : > { %2047 = dma.hbm_to_vmem [thread:$0]  (!%p2437_p6), %s332_s15, 4096, %s334_s11, %s2447_s24, %s3712_s9, %s3712_s9, %s3711_s30  }
  0x53   : > { %345 = sbr.rel (%p2496_p1) target bundleno = 1010 (0x3f2), region = 52  ;;  %s2548_s7 = sand.u32 (!%p2496_p1), 1, %s2324_s28  }
  0x54   : > { %s2551_s12 = sshll.u32 (!%p2496_p1), %s2548_s7, 8  ;;  %s348_s13 = scalar_lea.sflag (!%p2496_p1), [#allocation3], %s2548_s7 }
  0x55   : > { %s2555_s14 = scalar_lea.vmem (!%p2496_p1), [#allocation2], %s2551_s12 }
  0x58   : > { %2303 = dma.done.wait (%p2476_p9), %s348_s13, 4096  }
  0x59   : > { %2305 = vsyncadd (%p2476_p9), %s348_s13, 4294963200  ;;  %s357_s16 = sand.u32 1, %s2467_s25   ;;  %s2563_s23 = scalar_lea.vmem [#allocation6], %s2551_s12 }
  0x5a   : > { %s358_s24 = scalar_lea.sflag [#allocation7], %s357_s16 }
  0x5b   : > { %2307 = dma.done.wait (%p2476_p9), %s358_s24, 8192  }
  0x5c   : > { %2309 = vsyncadd (%p2476_p9), %s358_s24, 4294959104  ;;  %s2570_s20 = scalar_lea.vmem [#allocation8], %s2551_s12 }
  0x5d   : > { %2311 = dma.done.wait (%p49_p4), [#allocation5], 128  }
  0x5e   : > { %2313 = vsyncadd (%p49_p4), [#allocation5], 4294967168 }
  0x5f   : > { %382 = sfence }
  0x60   : > { %v428_v0 = vld [vmem:[%s2570_s20 + $0x38] sm:$0xff]  ;;  %v422_v16 = vld [vmem:[%s2570_s20 + $0x8] sm:$0xff]  ;;  %v423_v59 = vld [vmem:[%s2570_s20 + $0x10] sm:$0xff]  ;;  %s2337_s10 = smov 3   ;;  %s2338_s26 = smov 2   ;;  %vm680_vm0 = vcmask 23552  }
  0x61   : > { %v436_v1 = vld [vmem:[%s2570_s20 + $0x78] sm:$0xff]  ;;  %v430_v18 = vld [vmem:[%s2570_s20 + $0x48] sm:$0xff]  ;;  %v431_v62 = vld [vmem:[%s2570_s20 + $0x50] sm:$0xff]  ;;  %s2339_s30 = smov 1   ;;  %s2340_s9 = smov 127   ;;  %vm704_vm1 = vcmask 1042434  }
  0x62   : > { %v444_v2 = vld [vmem:[%s2570_s20 + $0xb8] sm:$0xff]  ;;  %v438_v19 = vld [vmem:[%s2570_s20 + $0x88] sm:$0xff]  ;;  %v455_v63 = vld [vmem:[%s2555_s14 + $0x10] sm:$0xff]  ;;  %s2341_s15 = smov 126   ;;  %s2342_s19 = smov 125   ;;  %vm702_vm2 = vcmask 1040384  }
  0x63   : > { %v460_v3 = vld [vmem:[%s2555_s14 + $0x38] sm:$0xff]  ;;  %v454_v20 = vld [vmem:[%s2555_s14 + $0x8] sm:$0xff]  ;;  %vm706_vm3 = vcmask 1041408   ;;  %vm708_vm4 = vcmask 1044484   ;;  %vm710_vm5 = vcmask 1046534   ;;  %vm712_vm6 = vcmask 1045508  }
  0x64   : > { %v468_v4 = vld [vmem:[%s2555_s14 + $0x78] sm:$0xff]  ;;  %v462_v21 = vld [vmem:[%s2555_s14 + $0x48] sm:$0xff]  ;;  %vm3693_vm7 = vcmask 15360   ;;  %vm714_vm8 = vcmask 1043456   ;;  %s2768_s11 = sld [smem:[#allocation9]]  ;;  %vm783_vm11 = vcmask 7168  }
  0x65   : > { %v476_v5 = vld [vmem:[%s2555_s14 + $0xb8] sm:$0xff]  ;;  %v470_v24 = vld [vmem:[%s2555_s14 + $0x88] sm:$0xff]  ;;  %s2771_s18 = sld [smem:[#allocation9 + $0x80]] }
  0x66   : > { %v484_v6 = vld [vmem:[%s2555_s14 + $0xf8] sm:$0xff]  ;;  %v478_v25 = vld [vmem:[%s2555_s14 + $0xc8] sm:$0xff]  ;;  %s2773_s8 = sld [smem:[#allocation9 + $0x100]] }
  0x67   : > { %v492_v7 = vld [vmem:[%s2563_s23 + $0x38] sm:$0xff]  ;;  %v486_v26 = vld [vmem:[%s2563_s23 + $0x8] sm:$0xff]  ;;  %s2777_s27 = sld [smem:[#allocation9 + $0x180]] }
  0x68   : > { %v500_v8 = vld [vmem:[%s2563_s23 + $0x78] sm:$0xff]  ;;  %v524_v11 = vmul.f32 %v492_v7, %v460_v3  ;;  %v494_v28 = vld [vmem:[%s2563_s23 + $0x48] sm:$0xff]  ;;  %v518_v31 = vmul.f32 %v486_v26, %v454_v20  ;;  %v487_v7 = vld [vmem:[%s2563_s23 + $0x10] sm:$0xff]  ;;  %s2785_s1 = sld [smem:[#allocation9 + $0x200]] }
  0x69   : > { %v508_v9 = vld [vmem:[%s2563_s23 + $0xb8] sm:$0xff]  ;;  %v532_v13 = vmul.f32 %v500_v8, %v468_v4  ;;  %v502_v29 = vld [vmem:[%s2563_s23 + $0x88] sm:$0xff]  ;;  %v526_v34 = vmul.f32 %v494_v28, %v462_v21  ;;  %s2789_s22 = sld [smem:[#allocation9 + $0x280]] }
  0x6a   : > { %v516_v10 = vld [vmem:[%s2563_s23 + $0xf8] sm:$0xff]  ;;  %v540_v14 = vmul.f32 %v508_v9, %v476_v5  ;;  %v556_v17 = vmul.f32 %v524_v11, %v428_v0  ;;  %v510_v30 = vld [vmem:[%s2563_s23 + $0xc8] sm:$0xff]  ;;  %v534_v35 = vmul.f32 %v502_v29, %v470_v24  ;;  %v550_v38 = vmul.f32 %v518_v31, %v422_v16  ;;  %v463_v0 = vld [vmem:[%s2555_s14 + $0x50] sm:$0xff]  ;;  %s2791_s13 = sld [smem:[#allocation9 + $0x300]] }
  0x6b   : > { %v452_v12 = vld [vmem:[%s2570_s20 + $0xf8] sm:$0xff]  ;;  %v548_v15 = vmul.f32 %v516_v10, %v484_v6  ;;  %v564_v22 = vmul.f32 %v532_v13, %v436_v1  ;;  %v446_v33 = vld [vmem:[%s2570_s20 + $0xc8] sm:$0xff]  ;;  %v542_v36 = vmul.f32 %v510_v30, %v478_v25  ;;  %v558_v44 = vmul.f32 %v526_v34, %v430_v18  ;;  %v471_v5 = vld [vmem:[%s2555_s14 + $0x90] sm:$0xff]  ;;  %s2799_s16 = sld [smem:[#allocation9 + $0x81]] }
  0x6c   : > { %v572_v23 = vmul.f32 %v540_v14, %v444_v2  ;;  %v424_v37 = vld [vmem:[%s2570_s20 + $0x18] sm:$0xff]  ;;  %v566_v45 = vmul.f32 %v534_v35, %v438_v19  ;;  %v479_v6 = vld [vmem:[%s2555_s14 + $0xd0] sm:$0xff]  ;;  %v461_v24 = vld [vmem:[%s2555_s14 + $0x40] sm:$0xff]  ;;  %s2801_s24 = sld [smem:[#allocation9 + $0x101]] }
  0x6d   : > { %v580_v27 = vmul.f32 %v548_v15, %v452_v12  ;;  %v644_v32 = vmax.f32 %v556_v17, %v564_v22  ;;  %v432_v39 = vld [vmem:[%s2570_s20 + $0x58] sm:$0xff]  ;;  %v574_v49 = vmul.f32 %v542_v36, %v446_v33  ;;  %v590_v55 = vmax.f32 %v550_v38, %v558_v44  ;;  %v495_v9 = vld [vmem:[%s2563_s23 + $0x50] sm:$0xff]  ;;  %v421_v22 = vld [vmem:[%s2570_s20] sm:$0xff]  ;;  %s2900_s21 = sld [smem:[#allocation9 + $0x303]] }
  0x6e   : > { %v440_v40 = vld [vmem:[%s2570_s20 + $0x98] sm:$0xff]  ;;  %v503_v10 = vld [vmem:[%s2563_s23 + $0x90] sm:$0xff]  ;;  %v519_v12 = vmul.f32 %v487_v7, %v455_v63  ;;  %v527_v18 = vmul.f32 %v495_v9, %v463_v0  ;;  %v469_v29 = vld [vmem:[%s2555_s14 + $0x80] sm:$0xff]  ;;  %s2907_s17 = sld [smem:[#allocation9 + $0x282]] }
  0x6f   : > { %v456_v41 = vld [vmem:[%s2555_s14 + $0x18] sm:$0xff]  ;;  %v645_v43 = vmax.f32 %v644_v32, %v572_v23  ;;  %v591_v2 = vmax.f32 %v590_v55, %v566_v45  ;;  %v511_v11 = vld [vmem:[%s2563_s23 + $0xd0] sm:$0xff]  ;;  %v535_v19 = vmul.f32 %v503_v10, %v471_v5  ;;  %v453_v23 = vld [vmem:[%s2555_s14] sm:$0xff] }
  0x70   : > { %v464_v42 = vld [vmem:[%s2555_s14 + $0x58] sm:$0xff]  ;;  %v439_v16 = vld [vmem:[%s2570_s20 + $0x90] sm:$0xff]  ;;  %v543_v20 = vmul.f32 %v511_v11, %v479_v6  ;;  %v551_v21 = vmul.f32 %v519_v12, %v423_v59  ;;  %v559_v28 = vmul.f32 %v527_v18, %v431_v62  ;;  %v477_v30 = vld [vmem:[%s2555_s14 + $0xc0] sm:$0xff] }
  0x71   : > { %v472_v46 = vld [vmem:[%s2555_s14 + $0x98] sm:$0xff]  ;;  %v646_v54 = vmax.f32 %v645_v43, %v580_v27  ;;  %v592_v14 = vmax.f32 %v591_v2, %v574_v49  ;;  %v447_v17 = vld [vmem:[%s2570_s20 + $0xd0] sm:$0xff]  ;;  %v485_v31 = vld [vmem:[%s2563_s23] sm:$0xff]  ;;  %v567_v32 = vmul.f32 %v535_v19, %v439_v16 }
  0x72   : > { %v480_v47 = vld [vmem:[%s2555_s14 + $0xd8] sm:$0xff]  ;;  %v575_v33 = vmul.f32 %v543_v20, %v447_v17  ;;  %v493_v34 = vld [vmem:[%s2563_s23 + $0x40] sm:$0xff]  ;;  %v459_v16 = vld [vmem:[%s2555_s14 + $0x30] sm:$0xff] }
  0x73   : > { %v488_v48 = vld [vmem:[%s2563_s23 + $0x18] sm:$0xff]  ;;  %v647_v1 = vrot.slane %v646_v54, 4  ;;  %v593_v26 = vrot.slane %v592_v14, 4  ;;  %v501_v35 = vld [vmem:[%s2563_s23 + $0x80] sm:$0xff]  ;;  %v525_v45 = vmul.f32 %v493_v34, %v461_v24  ;;  %v467_v17 = vld [vmem:[%s2555_s14 + $0x70] sm:$0xff] }
  0x74   : > { %v496_v50 = vld [vmem:[%s2563_s23 + $0x58] sm:$0xff]  ;;  %v520_v53 = vmul.f32 %v488_v48, %v456_v41  ;;  %v509_v36 = vld [vmem:[%s2563_s23 + $0xc0] sm:$0xff]  ;;  %v599_v41 = vmax.f32 %v551_v21, %v559_v28  ;;  %v475_v18 = vld [vmem:[%s2555_s14 + $0xb0] sm:$0xff] }
  0x75   : > { %v504_v51 = vld [vmem:[%s2563_s23 + $0x98] sm:$0xff]  ;;  %v528_v57 = vmul.f32 %v496_v50, %v464_v42  ;;  %v648_v13 = vmax.f32 %v646_v54, %v647_v1  ;;  %v429_v42 = vld [vmem:[%s2570_s20 + $0x40] sm:$0xff]  ;;  %v499_v24 = vld [vmem:[%s2563_s23 + $0x70] sm:$0xff] }
  0x76   : > { %v512_v52 = vld [vmem:[%s2563_s23 + $0xd8] sm:$0xff]  ;;  %v536_v58 = vmul.f32 %v504_v51, %v472_v46  ;;  %v552_v61 = vmul.f32 %v520_v53, %v424_v37  ;;  %v517_v37 = vmul.f32 %v485_v31, %v453_v23  ;;  %v437_v43 = vld [vmem:[%s2570_s20 + $0x80] sm:$0xff]  ;;  %v533_v46 = vmul.f32 %v501_v35, %v469_v29  ;;  %v491_v23 = vld [vmem:[%s2563_s23 + $0x30] sm:$0xff] }
  0x77   : > { %v448_v56 = vld [vmem:[%s2570_s20 + $0xd8] sm:$0xff]  ;;  %v544_v60 = vmul.f32 %v512_v52, %v480_v47  ;;  %v560_v3 = vmul.f32 %v528_v57, %v432_v39  ;;  %v649_v25 = vrot.slane %v648_v13, 2  ;;  %v594_v39 = vmax.f32 %v592_v14, %v593_v26  ;;  %v445_v44 = vld [vmem:[%s2570_s20 + $0xc0] sm:$0xff]  ;;  %v483_v31 = vld [vmem:[%s2555_s14 + $0xf0] sm:$0xff] }
  0x78   : > { %v568_v4 = vmul.f32 %v536_v58, %v440_v40  ;;  %v541_v47 = vmul.f32 %v509_v36, %v477_v30  ;;  %v549_v48 = vmul.f32 %v517_v37, %v421_v22  ;;  %v457_v49 = vld [vmem:[%s2555_s14 + $0x20] sm:$0xff]  ;;  %v600_v54 = vmax.f32 %v599_v41, %v567_v32  ;;  %v427_v30 = vld [vmem:[%s2570_s20 + $0x30] sm:$0xff] }
  0x79   : > { %v576_v8 = vmul.f32 %v544_v60, %v448_v56  ;;  %v608_v15 = vmax.f32 %v552_v61, %v560_v3  ;;  %v650_v38 = vmax.f32 %v648_v13, %v649_v25  ;;  %v465_v50 = vld [vmem:[%s2555_s14 + $0x60] sm:$0xff]  ;;  %v595_v52 = vrot.slane %v594_v39, 2  ;;  %v507_v25 = vld [vmem:[%s2563_s23 + $0xb0] sm:$0xff] }
  0x7a   : > { %v473_v55 = vld [vmem:[%s2555_s14 + $0xa0] sm:$0xff]  ;;  %v557_v58 = vmul.f32 %v525_v45, %v429_v42  ;;  %v565_v59 = vmul.f32 %v533_v46, %v437_v43  ;;  %v573_v60 = vmul.f32 %v541_v47, %v445_v44  ;;  %v515_v32 = vld [vmem:[%s2563_s23 + $0xf0] sm:$0xff]  ;;  %v523_v37 = vmul.f32 %v491_v23, %v459_v16  ;;  %v458_v43 = vld [vmem:[%s2555_s14 + $0x28] sm:$0xff] }
  0x7b   : > { %v609_v27 = vmax.f32 %v608_v15, %v568_v4  ;;  %v651_v51 = vrot.slane %v650_v38, 1  ;;  %v481_v56 = vld [vmem:[%s2555_s14 + $0xe0] sm:$0xff]  ;;  %v596_v2 = vmax.f32 %v594_v39, %v595_v52  ;;  %v601_v4 = vmax.f32 %v600_v54, %v575_v33  ;;  %v435_v35 = vld [vmem:[%s2570_s20 + $0x70] sm:$0xff]  ;;  %v466_v44 = vld [vmem:[%s2555_s14 + $0x68] sm:$0xff] }
  0x7c   : > { %v489_v57 = vld [vmem:[%s2563_s23 + $0x20] sm:$0xff]  ;;  %v443_v36 = vld [vmem:[%s2570_s20 + $0xb0] sm:$0xff]  ;;  %v539_v42 = vmul.f32 %v507_v25, %v475_v18  ;;  %v547_v47 = vmul.f32 %v515_v32, %v483_v31 }
  0x7d   : > { %v610_v40 = vmax.f32 %v609_v27, %v576_v8  ;;  %v497_v61 = vld [vmem:[%s2563_s23 + $0x60] sm:$0xff]  ;;  %v521_v0 = vmul.f32 %v489_v57, %v457_v49  ;;  %v2644_v1 = vmax.f32 %v650_v38, %v651_v51  ;;  %v581_v8 = vmax.f32 %v549_v48, %v557_v58  ;;  %v451_v41 = vld [vmem:[%s2570_s20 + $0xf0] sm:$0xff]  ;;  %v474_v49 = vld [vmem:[%s2555_s14 + $0xa8] sm:$0xff] }
  0x7e   : > { %v505_v62 = vld [vmem:[%s2563_s23 + $0xa0] sm:$0xff]  ;;  %v529_v10 = vmul.f32 %v497_v61, %v465_v50  ;;  %v597_v13 = vrot.slane %v596_v2, 1  ;;  %v602_v15 = vrot.slane %v601_v4, 4  ;;  %v531_v38 = vmul.f32 %v499_v24, %v467_v17  ;;  %v490_v50 = vld [vmem:[%s2563_s23 + $0x28] sm:$0xff] }
  0x7f   : > { %v611_v53 = vrot.slane %v610_v40, 4  ;;  %v513_v63 = vld [vmem:[%s2563_s23 + $0xe0] sm:$0xff]  ;;  %v537_v11 = vmul.f32 %v505_v62, %v473_v55  ;;  %656 = vrot.lane.b32.xlu0 %v2644_v1, %s2337_s10  ;;  %v582_v19 = vmax.f32 %v581_v8, %v565_v59  ;;  %v555_v48 = vmul.f32 %v523_v37, %v427_v30  ;;  %v498_v51 = vld [vmem:[%s2563_s23 + $0x68] sm:$0xff] }
  0x80   : > { %v425_v5 = vld [vmem:[%s2570_s20 + $0x20] sm:$0xff]  ;;  %v545_v12 = vmul.f32 %v513_v63, %v481_v56  ;;  %v2658_v26 = vmax.f32 %v596_v2, %v597_v13  ;;  %v603_v28 = vmax.f32 %v601_v4, %v602_v15  ;;  %v563_v54 = vmul.f32 %v531_v38, %v435_v35  ;;  %v482_v56 = vld [vmem:[%s2555_s14 + $0xe8] sm:$0xff]  ;;  %s2797_s14 = sld [smem:[#allocation9 + $0x1]] }
  0x81   : > { %v612_v3 = vmax.f32 %v610_v40, %v611_v53  ;;  %v433_v6 = vld [vmem:[%s2570_s20 + $0x60] sm:$0xff]  ;;  %v553_v20 = vmul.f32 %v521_v0, %v425_v5  ;;  %v583_v33 = vmax.f32 %v582_v19, %v573_v60  ;;  %v571_v55 = vmul.f32 %v539_v42, %v443_v36  ;;  %v506_v57 = vld [vmem:[%s2563_s23 + $0xa8] sm:$0xff] }
  0x82   : > { %v441_v7 = vld [vmem:[%s2570_s20 + $0xa0] sm:$0xff]  ;;  %v561_v21 = vmul.f32 %v529_v10, %v433_v6  ;;  %668 = vrot.lane.b32.xlu1 %v2658_v26, %s2337_s10  ;;  %v604_v40 = vrot.slane %v603_v28, 2  ;;  %v514_v58 = vld [vmem:[%s2563_s23 + $0xe8] sm:$0xff]  ;;  %v522_v63 = vmul.f32 %v490_v50, %v458_v43  ;;  %v579_v2 = vmul.f32 %v547_v47, %v451_v41  ;;  %s2803_s23 = sld [smem:[#allocation9 + $0x181]] }
  0x83   : > { %v449_v9 = vld [vmem:[%s2570_s20 + $0xe0] sm:$0xff]  ;;  %v613_v14 = vrot.slane %v612_v3, 2  ;;  %v569_v22 = vmul.f32 %v537_v11, %v441_v7  ;;  %v584_v45 = vrot.slane %v583_v33, 4  ;;  %v426_v61 = vld [vmem:[%s2570_s20 + $0x28] sm:$0xff]  ;;  %v530_v5 = vmul.f32 %v498_v51, %v466_v44 }
  0x84   : > { %v577_v29 = vmul.f32 %v545_v12, %v449_v9  ;;  %v617_v34 = vmax.f32 %v553_v20, %v561_v21  ;;  %v605_v53 = vmax.f32 %v603_v28, %v604_v40  ;;  %v434_v62 = vld [vmem:[%s2570_s20 + $0x68] sm:$0xff]  ;;  %v538_v9 = vmul.f32 %v506_v57, %v474_v49 }
  0x85   : > { %v614_v27 = vmax.f32 %v612_v3, %v613_v14  ;;  %v585_v59 = vmax.f32 %v583_v33, %v584_v45  ;;  %v635_v3 = vmax.f32 %v555_v48, %v563_v54  ;;  %v442_v4 = vld [vmem:[%s2570_s20 + $0xa8] sm:$0xff]  ;;  %v546_v10 = vmul.f32 %v514_v58, %v482_v56 }
  0x86   : > { %v618_v46 = vmax.f32 %v617_v34, %v569_v22  ;;  %v606_v0 = vrot.slane %v605_v53, 1  ;;  %v450_v8 = vld [vmem:[%s2570_s20 + $0xe8] sm:$0xff]  ;;  %v554_v13 = vmul.f32 %v522_v63, %v426_v61  ;;  %v562_v14 = vmul.f32 %v530_v5, %v434_v62 }
  0x87   : > { %v615_v39 = vrot.slane %v614_v27, 1  ;;  %v586_v6 = vrot.slane %v585_v59, 2  ;;  %v636_v12 = vmax.f32 %v635_v3, %v571_v55  ;;  %v570_v17 = vmul.f32 %v538_v9, %v442_v4 }
  0x88   : > { %v619_v60 = vmax.f32 %v618_v46, %v577_v29  ;;  %v2684_v11 = vmax.f32 %v605_v53, %v606_v0  ;;  %v578_v19 = vmul.f32 %v546_v10, %v450_v8  ;;  %v626_v20 = vmax.f32 %v554_v13, %v562_v14 }
  0x89   : > { %v2673_v52 = vmax.f32 %v614_v27, %v615_v39  ;;  %v587_v15 = vmax.f32 %v585_v59, %v586_v6  ;;  %v637_v18 = vmax.f32 %v636_v12, %v579_v2 }
  0x8a   : > { %v620_v7 = vrot.slane %v619_v60, 4  ;;  %670 = vrot.lane.b32.xlu1 %v2684_v11, %s2337_s10  ;;  %v627_v24 = vmax.f32 %v626_v20, %v570_v17  ;;  %v2783_v20 = vld [vmem:[%s3674_s3] sm:$0xff] }
  0x8b   : > { %672 = vrot.lane.b32.xlu2 %v2673_v52, %s2337_s10  ;;  %v588_v21 = vrot.slane %v587_v15, 1  ;;  %v638_v23 = vrot.slane %v637_v18, 4 }
  0x8c   : > { %v621_v16 = vmax.f32 %v619_v60, %v620_v7  ;;  %v628_v29 = vmax.f32 %v627_v24, %v578_v19 }
  0x8d   : > { %v2688_v25 = vmax.f32 %v587_v15, %v588_v21  ;;  %v639_v28 = vmax.f32 %v637_v18, %v638_v23 }
  0x8e   : > { %v622_v22 = vrot.slane %v621_v16, 2  ;;  %v629_v32 = vrot.slane %v628_v29, 4 }
  0x8f   : > { %666 = vrot.lane.b32.xlu0 %v2688_v25, %s2337_s10  ;;  %v640_v31 = vrot.slane %v639_v28, 2 }
  0x90   : > { %v623_v27 = vmax.f32 %v621_v16, %v622_v22  ;;  %v630_v35 = vmax.f32 %v628_v29, %v629_v32 }
  0x91   : > { %v641_v34 = vmax.f32 %v639_v28, %v640_v31 }
  0x92   : > { %v624_v30 = vrot.slane %v623_v27, 1  ;;  %v631_v37 = vrot.slane %v630_v35, 2 }
  0x93   : > { %v642_v36 = vrot.slane %v641_v34, 1 }
  0x94   : > { %v2692_v33 = vmax.f32 %v623_v27, %v624_v30  ;;  %v632_v39 = vmax.f32 %v630_v35, %v631_v37  ;;  %v690_v27 = vadd.s32 4294967293, %v2783_v20 }
  0x95   : > { %v2696_v38 = vmax.f32 %v641_v34, %v642_v36 }
  0x96   : > { %674 = vrot.lane.b32.xlu2 %v2692_v33, %s2337_s10  ;;  %v633_v40 = vrot.slane %v632_v39, 1  ;;  %vm691_vm9 = vcmp.ge.s32.totalorder %v690_v27, 0  ;;  %vm692_vm10 = vcmp.le.s32.totalorder %v690_v27, 31 }
  0x97   : > { %678 = vrot.lane.b32.xlu1 %v2696_v38, %s2337_s10  ;;  %vm693_vm12 = vmand %vm691_vm9, %vm692_vm10  ;;  %vm815_vm9 = vcmp.le.s32.totalorder %v2783_v20, 31 }
  0x98   : > { %v2700_v41 = vmax.f32 %v632_v39, %v633_v40  ;;  %v823_v39 = vrot.slane %v2644_v1, 1  ;;  %v817_v40 = vrot.slane %v2658_v26, 7 }
  0x9a   : > { %676 = vrot.lane.b32.xlu0 %v2700_v41, %s2337_s10  ;;  %s2808_s10 = sld [smem:[#allocation9 + $0x201]] }
  0x9e   : > { %718 = vrot.lane.b32.xlu2 %v2644_v1, %s2338_s26 }
  0x9f   : > { %723 = vrot.lane.b32.xlu1 %v2658_v26, %s2338_s26 }
  0xa2   : > { %721 = vrot.lane.b32.xlu0 %v2688_v25, %s2338_s26 }
  0xa6   : > { %725 = vrot.lane.b32.xlu2 %v2684_v11, %s2338_s26 }
  0xa7   : > { %729 = vrot.lane.b32.xlu1 %v2692_v33, %s2338_s26 }
  0xaa   : > { %727 = vrot.lane.b32.xlu0 %v2673_v52, %s2338_s26 }
  0xae   : > { %731 = vrot.lane.b32.xlu2 %v2700_v41, %s2338_s26 }
  0xaf   : > { %766 = vrot.lane.b32.xlu1 %v2644_v1, %s2339_s30 }
  0xb2   : > { %733 = vrot.lane.b32.xlu0 %v2696_v38, %s2338_s26  ;;  %s2812_s26 = sld [smem:[#allocation9 + $0x281]] }
  0xb6   : > { %769 = vrot.lane.b32.xlu2 %v2688_v25, %s2339_s30 }
  0xb7   : > { %773 = vrot.lane.b32.xlu1 %v2684_v11, %s2339_s30 }
  0xba   : > { %771 = vrot.lane.b32.xlu0 %v2658_v26, %s2339_s30 }
  0xbe   : > { %775 = vrot.lane.b32.xlu2 %v2673_v52, %s2339_s30 }
  0xbf   : > { %779 = vrot.lane.b32.xlu1 %v2700_v41, %s2339_s30 }
  0xc2   : > { %777 = vrot.lane.b32.xlu0 %v2692_v33, %s2339_s30 }
  0xc6   : > { %781 = vrot.lane.b32.xlu2 %v2696_v38, %s2339_s30  ;;  %s2816_s30 = sld [smem:[#allocation9 + $0x301]] }
  0xc7   : > { %835 = vrot.lane.b32.xlu1 %v2658_v26, %s2340_s9 }
  0xca   : > { %833 = vrot.lane.b32.xlu0 %v2688_v25, %s2340_s9 }
  0xce   : > { %837 = vrot.lane.b32.xlu2 %v2684_v11, %s2340_s9 }
  0xcf   : > { %841 = vrot.lane.b32.xlu1 %v2692_v33, %s2340_s9 }
  0xd2   : > { %839 = vrot.lane.b32.xlu0 %v2673_v52, %s2340_s9 }
  0xd6   : > { %843 = vrot.lane.b32.xlu2 %v2700_v41, %s2340_s9 }
  0xd7   : > { %847 = vrot.lane.b32.xlu1 %v2644_v1, %s2340_s9 }
  0xda   : > { %845 = vrot.lane.b32.xlu0 %v2696_v38, %s2340_s9  ;;  %s2861_s9 = sld [smem:[#allocation9 + $0x2]] }
  0xde   : > { %881 = vrot.lane.b32.xlu2 %v2688_v25, %s2341_s15 }
  0xdf   : > { %885 = vrot.lane.b32.xlu1 %v2684_v11, %s2341_s15 }
  0xe2   : > { %883 = vrot.lane.b32.xlu0 %v2658_v26, %s2341_s15 }
  0xe5   : > { %v673_v42 = vpop.permute.xlu2 %672 }
  0xe6   : > { %887 = vrot.lane.b32.xlu2 %v2673_v52, %s2341_s15 }
  0xe7   : > { %891 = vrot.lane.b32.xlu1 %v2700_v41, %s2341_s15 }
  0xea   : > { %889 = vrot.lane.b32.xlu0 %v2692_v33, %s2341_s15 }
  0xee   : > { %893 = vrot.lane.b32.xlu2 %v2696_v38, %s2341_s15 }
  0xef   : > { %929 = vrot.lane.b32.xlu1 %v2688_v25, %s2342_s19 }
  0xf0   : > { %v675_v43 = vpop.permute.xlu2 %674 }
  0xf1   : > { %v684_v44 = vsel %vm680_vm0, %v673_v42, %v675_v43  ;;  %v657_v47 = vpop.permute.xlu0 %656 }
  0xf2   : > { %895 = vrot.lane.b32.xlu0 %v2644_v1, %s2341_s15  ;;  %v698_v7 = vrot.slane %v684_v44, 4  ;;  %s2864_s15 = sld [smem:[#allocation9 + $0x82]] }
  0xf4   : > { %v669_v45 = vpop.permute.xlu1 %668 }
  0xf6   : > { %931 = vrot.lane.b32.xlu2 %v2658_v26, %s2342_s19 }
  0xf7   : > { %935 = vrot.lane.b32.xlu1 %v2673_v52, %s2342_s19 }
  0xf8   : > { %v2739_v46 = vpop.permute.xlu2 %718 }
  0xfa   : > { %933 = vrot.lane.b32.xlu0 %v2684_v11, %s2342_s19 }
  0xfc   : > { %v671_v48 = vpop.permute.xlu1 %670 }
  0xfd   : > { %v682_v50 = vsel %vm680_vm0, %v669_v45, %v671_v48  ;;  %v683_v51 = vsel %vm680_vm0, %v671_v48, %v673_v42  ;;  %v819_v42 = vrot.slane %v2673_v52, 5  ;;  %v822_v48 = vrot.slane %v2696_v38, 2 }
  0xfe   : > { %937 = vrot.lane.b32.xlu2 %v2692_v33, %s2342_s19  ;;  %v696_v53 = vrot.slane %v682_v50, 6  ;;  %v697_v54 = vrot.slane %v683_v51, 5  ;;  %v978_v50 = vstv %s2768_s11  ;;  %v1147_v51 = vstv %s2773_s8  ;;  %s2873_s11 = sld [smem:[#allocation9 + $0x182]] }
  0xff   : > { %941 = vrot.lane.b32.xlu1 %v2696_v38, %s2342_s19  ;;  %v828_v27 = vsel %vm710_vm5, %v822_v48, %v823_v39  ;;  %s2887_s8 = sld [smem:[#allocation9 + $0x203]] }
 0x100   : > { %v2744_v49 = vpop.permute.xlu2 %725  ;;  %v705_v55 = vsel %vm704_vm1, %v696_v53, %v697_v54  ;;  %v1232_v53 = vstv %s2777_s27  ;;  %v1264_v54 = vstv %s2785_s1  ;;  %s2896_s27 = sld [smem:[#allocation9 + $0x283]] }
 0x101   : > { %v667_v56 = vpop.permute.xlu0 %666  ;;  %s2916_s1 = sld [smem:[#allocation9 + $0x302]] }
 0x102   : > { %v681_v57 = vsel %vm680_vm0, %v667_v56, %v669_v45  ;;  %v689_v58 = vsel %vm680_vm0, %v657_v47, %v667_v56  ;;  %939 = vrot.lane.b32.xlu0 %v2700_v41, %s2342_s19  ;;  %v1432_v56 = vstv %s2791_s13  ;;  %s2971_s13 = sld [smem:[#allocation9 + $0x204]] }
 0x103   : > { %v695_v59 = vrot.slane %v681_v57, 7 }
 0x105   : > { %v703_v60 = vsel %vm702_vm2, %v689_v58, %v695_v59  ;;  %v981_v58 = vstv %s2797_s14  ;;  %v1065_v59 = vstv %s2799_s16  ;;  %s2978_s14 = sld [smem:[#allocation9 + $0x284]] }
 0x106   : > { %943 = vrot.lane.b32.xlu2 %v2644_v1, %s2342_s19  ;;  %v707_v62 = vsel %vm706_vm3, %v703_v60, %v705_v55  ;;  %v820_v1 = vrot.slane %v2692_v33, 4  ;;  %v1062_v33 = vstv %s2771_s18  ;;  %v1348_v55 = vstv %s2789_s22  ;;  %s2868_s19 = sld [smem:[#allocation9 + $0x102]] }
 0x107   : > { %s2877_s18 = sld [smem:[#allocation9 + $0x202]] }
 0x108   : > { %v2755_v61 = vpop.permute.xlu2 %731  ;;  %s2928_s22 = sld [smem:[#allocation9 + $0x183]] }
 0x109   : > { %v679_v63 = vpop.permute.xlu1 %678  ;;  %s2980_s16 = sld [smem:[#allocation9 + $0x304]] }
 0x10a   : > { %v687_v0 = vsel %vm680_vm0, %v679_v63, %v657_v47 }
 0x10b   : > { %v701_v3 = vrot.slane %v687_v0, 1 }
 0x10c   : > { %v677_v4 = vpop.permute.xlu0 %676 }
 0x10d   : > { %v685_v5 = vsel %vm680_vm0, %v675_v43, %v677_v4  ;;  %v686_v6 = vsel %vm680_vm0, %v677_v4, %v679_v63  ;;  %v818_v43 = vrot.slane %v2684_v11, 6  ;;  %v745_v11 = vadd.s32 4294967294, %v2783_v20 }
 0x10e   : > { %v699_v8 = vrot.slane %v685_v5, 3  ;;  %v700_v9 = vrot.slane %v686_v6, 2  ;;  %v1235_v63 = vstv %s2803_s23  ;;  %v1267_v5 = vstv %s2808_s10  ;;  %s3013_s23 = sld [smem:[#allocation9 + $0x205]] }
 0x10f   : > { %vm746_vm13 = vcmp.ge.s32.totalorder %v745_v11, 0  ;;  %vm747_vm14 = vcmp.le.s32.totalorder %v745_v11, 31  ;;  %v1351_v6 = vstv %s2812_s26  ;;  %vm814_vm0 = vcmp.ge.s32.totalorder %v2783_v20, 0  ;;  %s3019_s10 = sld [smem:[#allocation9 + $0x285]] }
 0x110   : > { %v2759_v2 = vpop.permute.xlu2 %769  ;;  %v709_v10 = vsel %vm708_vm4, %v698_v7, %v699_v8  ;;  %v711_v12 = vsel %vm710_vm5, %v700_v9, %v701_v3  ;;  %v1435_v7 = vstv %s2816_s30  ;;  %vm748_vm15 = vmand %vm746_vm13, %vm747_vm14  ;;  %vm849_vm14 = vcmask 1039360   ;;  %s3021_s26 = sld [smem:[#allocation9 + $0x305]] }
 0x111   : > { %v724_v13 = vpop.permute.xlu1 %723  ;;  %v713_v14 = vsel %vm712_vm6, %v709_v10, %v711_v12  ;;  %vm816_vm13 = vmand %vm814_vm0, %vm815_vm9  ;;  %s3023_s30 = sld [smem:[#allocation9 + $0x3]] }
 0x112   : > { %v737_v15 = vsel %vm3693_vm7, %v724_v13, %v2744_v49  ;;  %v715_v16 = vsel %vm714_vm8, %v707_v62, %v713_v14  ;;  %v1150_v62 = vstv %s2801_s24  ;;  %s1989_s24 = sld [smem:[#allocation9 + $0x184]] }
 0x113   : > { %v751_v34 = vrot.slane %v737_v15, 6  ;;  %v717_v57 = vsel %vm693_vm12, %v715_v16, 0.0 }
 0x114   : > { %v722_v17 = vpop.permute.xlu0 %721  ;;  %v979_v4 = vmul.f32 %v978_v50, %v717_v57  ;;  %v1063_v8 = vmul.f32 %v1062_v33, %v717_v57  ;;  %v1148_v9 = vmul.f32 %v1147_v51, %v717_v57  ;;  %v1233_v10 = vmul.f32 %v1232_v53, %v717_v57 }
 0x115   : > { %v736_v19 = vsel %vm3693_vm7, %v722_v17, %v724_v13  ;;  %v744_v21 = vsel %vm3693_vm7, %v2739_v46, %v722_v17  ;;  %v1265_v14 = vmul.f32 %v1264_v54, %v717_v57  ;;  %v1433_v17 = vmul.f32 %v1432_v56, %v717_v57 }
 0x116   : > { %v750_v22 = vrot.slane %v736_v19, 7  ;;  %v793_v50 = vadd.s32 4294967295, %v2783_v20 }
 0x118   : > { %v2775_v18 = vpop.permute.xlu2 %775  ;;  %v757_v23 = vsel %vm702_vm2, %v744_v21, %v750_v22  ;;  %v825_v21 = vsel %vm704_vm1, %v818_v43, %v819_v42  ;;  %vm794_vm10 = vcmp.ge.s32.totalorder %v793_v50, 0  ;;  %vm795_vm12 = vcmp.le.s32.totalorder %v793_v50, 31 }
 0x119   : > { %v730_v24 = vpop.permute.xlu1 %729 }
 0x11a   : > { %v740_v28 = vsel %vm3693_vm7, %v730_v24, %v2755_v61 }
 0x11b   : > { %v754_v29 = vrot.slane %v740_v28, 3  ;;  %v824_v28 = vsel %vm702_vm2, %v2688_v25, %v817_v40 }
 0x11c   : > { %v728_v30 = vpop.permute.xlu0 %727 }
 0x11d   : > { %v738_v31 = vsel %vm3693_vm7, %v2744_v49, %v728_v30  ;;  %v739_v32 = vsel %vm3693_vm7, %v728_v30, %v730_v24  ;;  %v821_v49 = vrot.slane %v2700_v41, 3 }
 0x11e   : > { %v752_v35 = vrot.slane %v738_v31, 5  ;;  %v753_v36 = vrot.slane %v739_v32, 4 }
 0x11f   : > { %v827_v22 = vsel %vm708_vm4, %v820_v1, %v821_v49 }
 0x120   : > { %v2810_v37 = vpop.permute.xlu2 %781  ;;  %v758_v44 = vsel %vm704_vm1, %v751_v34, %v752_v35  ;;  %v760_v45 = vsel %vm708_vm4, %v753_v36, %v754_v29  ;;  %v829_v53 = vsel %vm712_vm6, %v827_v22, %v828_v27 }
 0x121   : > { %v2822_v47 = vpop.permute.xlu1 %766  ;;  %v759_v26 = vsel %vm706_vm3, %v757_v23, %v758_v44 }
 0x122   : > { %v2831_v52 = vsel %vm783_vm11, %v2822_v47, %v2759_v2  ;;  %v790_v33 = vsel %vm783_vm11, %v2810_v37, %v2822_v47 }
 0x124   : > { %v734_v60 = vpop.permute.xlu0 %733 }
 0x125   : > { %v741_v38 = vsel %vm3693_vm7, %v2755_v61, %v734_v60  ;;  %v742_v41 = vsel %vm3693_vm7, %v734_v60, %v2739_v46  ;;  %v1349_v46 = vmul.f32 %v1348_v55, %v717_v57 }
 0x126   : > { %v755_v0 = vrot.slane %v741_v38, 2  ;;  %v756_v3 = vrot.slane %v742_v41, 1 }
 0x128   : > { %v761_v12 = vsel %vm710_vm5, %v755_v0, %v756_v3  ;;  %v2856_v61 = vpop.permute.xlu2 %837  ;;  %v1275_v0 = vstv %s2887_s8  ;;  %s3066_s8 = sld [smem:[#allocation9 + $0x286]] }
 0x129   : > { %v774_v13 = vpop.permute.xlu1 %773  ;;  %v762_v15 = vsel %vm712_vm6, %v760_v45, %v761_v12 }
 0x12a   : > { %v786_v16 = vsel %vm783_vm11, %v774_v13, %v2775_v18  ;;  %v763_v19 = vsel %vm714_vm8, %v759_v26, %v762_v15 }
 0x12b   : > { %v765_v23 = vsel %vm748_vm15, %v763_v19, 0.0  ;;  %v800_v24 = vrot.slane %v786_v16, 5 }
 0x12c   : > { %v982_v29 = vmul.f32 %v981_v58, %v765_v23  ;;  %v1066_v30 = vmul.f32 %v1065_v59, %v765_v23  ;;  %v1151_v31 = vmul.f32 %v1150_v62, %v765_v23  ;;  %v1236_v32 = vmul.f32 %v1235_v63, %v765_v23  ;;  %v772_v34 = vpop.permute.xlu0 %771 }
 0x12d   : > { %v1268_v35 = vmul.f32 %v1267_v5, %v765_v23  ;;  %v1352_v36 = vmul.f32 %v1351_v6, %v765_v23  ;;  %v1436_v42 = vmul.f32 %v1435_v7, %v765_v23  ;;  %v784_v43 = vsel %vm783_vm11, %v2759_v2, %v772_v34 }
 0x12e   : > { %v2879_v44 = vadd.f32 %v982_v29, %v979_v4  ;;  %v2881_v39 = vadd.f32 %v1066_v30, %v1063_v8  ;;  %v2883_v25 = vadd.f32 %v1151_v31, %v1148_v9  ;;  %v2885_v40 = vadd.f32 %v1236_v32, %v1233_v10 }
 0x12f   : > { %v2889_v45 = vadd.f32 %v1268_v35, %v1265_v14  ;;  %v2891_v1 = vadd.f32 %v1352_v36, %v1349_v46  ;;  %v2893_v26 = vadd.f32 %v1436_v42, %v1433_v17  ;;  %v785_v2 = vsel %vm783_vm11, %v772_v34, %v774_v13 }
 0x130   : > { %v798_v11 = vrot.slane %v784_v43, 7  ;;  %v799_v48 = vrot.slane %v785_v2, 6  ;;  %v2914_v57 = vpop.permute.xlu2 %843  ;;  %v804_v58 = vrot.slane %v790_v33, 1  ;;  %v985_v63 = vstv %s2861_s9  ;;  %s3030_s9 = sld [smem:[#allocation9 + $0x185]] }
 0x131   : > { %v780_v49 = vpop.permute.xlu1 %779  ;;  %v1359_v5 = vstv %s2896_s27  ;;  %v1443_v6 = vstv %s2900_s21  ;;  %v1069_v8 = vstv %s2864_s15  ;;  %v1154_v9 = vstv %s2868_s19  ;;  %s3038_s15 = sld [smem:[#allocation9 + $0x4]] }
 0x132   : > { %v789_v51 = vsel %vm783_vm11, %v780_v49, %v2810_v37  ;;  %v805_v54 = vsel %vm702_vm2, %v2831_v52, %v798_v11  ;;  %v806_v55 = vsel %vm704_vm1, %v799_v48, %v800_v24  ;;  %v826_v37 = vsel %vm706_vm3, %v824_v28, %v825_v21  ;;  %s3047_s19 = sld [smem:[#allocation9 + $0x5]] }
 0x133   : > { %v803_v56 = vrot.slane %v789_v51, 2  ;;  %v807_v47 = vsel %vm706_vm3, %v805_v54, %v806_v55  ;;  %v830_v38 = vsel %vm714_vm8, %v826_v37, %v829_v53  ;;  %v1239_v10 = vstv %s2873_s11  ;;  %s3058_s11 = sld [smem:[#allocation9 + $0x6]] }
 0x134   : > { %v778_v59 = vpop.permute.xlu0 %777  ;;  %v2938_v7 = vsel %vm816_vm13, %v830_v38, 0.0  ;;  %v1271_v13 = vstv %s2877_s18  ;;  %v1355_v14 = vstv %s2907_s17  ;;  %v1439_v46 = vstv %s2916_s1  ;;  %s3063_s18 = sld [smem:[#allocation9 + $0x206]] }
 0x135   : > { %v787_v52 = vsel %vm783_vm11, %v2775_v18, %v778_v59  ;;  %v788_v60 = vsel %vm783_vm11, %v778_v59, %v780_v49  ;;  %v809_v41 = vsel %vm710_vm5, %v803_v56, %v804_v58  ;;  %vm796_vm11 = vmand %vm794_vm10, %vm795_vm12  ;;  %v1276_v17 = vmul.f32 %v1275_v0, %v2938_v7  ;;  %s3073_s27 = sld [smem:[#allocation9 + $0x306]] }
 0x136   : > { %v801_v62 = vrot.slane %v787_v52, 4  ;;  %v802_v18 = vrot.slane %v788_v60, 3  ;;  %v1360_v19 = vmul.f32 %v1359_v5, %v2938_v7  ;;  %v1444_v21 = vmul.f32 %v1443_v6, %v2938_v7  ;;  %s3076_s21 = sld [smem:[#allocation9 + $0x186]] }
 0x137   : > { %v1243_v34 = vstv %s2928_s22  ;;  %v860_v55 = vadd.s32 1, %v2783_v20  ;;  %vm897_vm10 = vcmask 1031168   ;;  %s3090_s17 = sld [smem:[#allocation9 + $0x83]] }
 0x138   : > { %v808_v3 = vsel %vm708_vm4, %v801_v62, %v802_v18  ;;  %v2951_v28 = vpop.permute.xlu2 %881  ;;  %v1244_v50 = vmul.f32 %v1243_v34, %v2938_v7  ;;  %s3094_s1 = sld [smem:[#allocation9 + $0x84]] }
 0x139   : > { %v2934_v4 = vpop.permute.xlu1 %835  ;;  %v810_v12 = vsel %vm712_vm6, %v808_v3, %v809_v41  ;;  %vm861_vm15 = vcmp.ge.s32.totalorder %v860_v55, 0  ;;  %vm862_vm0 = vcmp.le.s32.totalorder %v860_v55, 31  ;;  %s1976_s22 = sld [smem:[#allocation9 + $0x85]] }
 0x13a   : > { %v811_v15 = vsel %vm714_vm8, %v807_v47, %v810_v12  ;;  %vm863_vm9 = vmand %vm861_vm15, %vm862_vm0  ;;  %v1363_v12 = vstv %s2978_s14  ;;  %s2343_s14 = smov 96  }
 0x13b   : > { %v813_v16 = vsel %vm796_vm11, %v811_v15, 0.0 }
 0x13c   : > { %v986_v22 = vmul.f32 %v985_v63, %v813_v16  ;;  %v1070_v23 = vmul.f32 %v1069_v8, %v813_v16  ;;  %v1155_v24 = vmul.f32 %v1154_v9, %v813_v16  ;;  %v1240_v27 = vmul.f32 %v1239_v10, %v813_v16  ;;  %v834_v29 = vpop.permute.xlu0 %833 }
 0x13d   : > { %v1272_v30 = vmul.f32 %v1271_v13, %v813_v16  ;;  %v1356_v31 = vmul.f32 %v1355_v14, %v813_v16  ;;  %v1440_v32 = vmul.f32 %v1439_v46, %v813_v16  ;;  %v850_v63 = vsel %vm849_vm14, %v834_v29, %v2934_v4 }
 0x13e   : > { %v2955_v35 = vadd.f32 %v986_v22, %v2879_v44  ;;  %v2958_v36 = vadd.f32 %v1070_v23, %v2881_v39  ;;  %v2961_v42 = vadd.f32 %v1155_v24, %v2883_v25  ;;  %v1241_v48 = vadd.f32 %v1240_v27, %v2885_v40 }
 0x13f   : > { %v1273_v43 = vadd.f32 %v1272_v30, %v2889_v45  ;;  %v1357_v2 = vadd.f32 %v1356_v31, %v2891_v1  ;;  %v1441_v11 = vadd.f32 %v1440_v32, %v2893_v26  ;;  %v851_v40 = vsel %vm849_vm14, %v2934_v4, %v2856_v61 }
 0x140   : > { %v1245_v39 = vadd.f32 %v1244_v50, %v1241_v48  ;;  %v888_v54 = vpop.permute.xlu2 %887  ;;  %v865_v58 = vrot.slane %v851_v40, 7  ;;  %v1279_v9 = vstv %s2971_s13  ;;  %v1447_v13 = vstv %s2980_s16  ;;  %s1977_s13 = sld [smem:[#allocation9 + $0x86]] }
 0x141   : > { %v842_v49 = vpop.permute.xlu1 %841  ;;  %v1277_v33 = vadd.f32 %v1276_v17, %v1273_v43  ;;  %v1361_v44 = vadd.f32 %v1360_v19, %v1357_v2  ;;  %v1445_v51 = vadd.f32 %v1444_v21, %v1441_v11  ;;  %v1247_v23 = vstv %s1989_s24  ;;  %s1981_s16 = sld [smem:[#allocation9 + $0x103]] }
 0x142   : > { %v854_v47 = vsel %vm849_vm14, %v842_v49, %v2914_v57  ;;  %v872_v0 = vsel %vm702_vm2, %v850_v63, %v865_v58  ;;  %v908_v43 = vadd.s32 2, %v2783_v20  ;;  %s1982_s24 = sld [smem:[#allocation9 + $0x104]] }
 0x143   : > { %v868_v38 = vrot.slane %v854_v47, 4 }
 0x144   : > { %v840_v53 = vpop.permute.xlu0 %839  ;;  %vm909_vm12 = vcmp.ge.s32.totalorder %v908_v43, 0  ;;  %vm910_vm13 = vcmp.le.s32.totalorder %v908_v43, 31 }
 0x145   : > { %v852_v25 = vsel %vm849_vm14, %v2856_v61, %v840_v53  ;;  %v853_v45 = vsel %vm849_vm14, %v840_v53, %v842_v49  ;;  %vm911_vm11 = vmand %vm909_vm12, %vm910_vm13  ;;  %vm1114_vm12 = vcmask 523264   ;;  %vm1199_vm13 = vcmask 261120  }
 0x146   : > { %v866_v56 = vrot.slane %v852_v25, 6  ;;  %v867_v37 = vrot.slane %v853_v45, 5 }
 0x148   : > { %v873_v41 = vsel %vm704_vm1, %v866_v56, %v867_v37  ;;  %v894_v3 = vpop.permute.xlu2 %893 }
 0x149   : > { %v848_v1 = vpop.permute.xlu1 %847  ;;  %v874_v8 = vsel %vm706_vm3, %v872_v0, %v873_v41  ;;  %v989_v41 = vstv %s3023_s30  ;;  %s2345_s30 = smov 32  }
 0x14a   : > { %v859_v26 = vsel %vm849_vm14, %v848_v1, %v834_v29 }
 0x14b   : > { %v871_v59 = vrot.slane %v859_v26, 1 }
 0x14c   : > { %v846_v52 = vpop.permute.xlu0 %845 }
 0x14d   : > { %v855_v61 = vsel %vm849_vm14, %v2914_v57, %v846_v52  ;;  %v856_v60 = vsel %vm849_vm14, %v846_v52, %v848_v1  ;;  %v1283_v52 = vstv %s3013_s23  ;;  %vm945_vm14 = vcmask 1022976   ;;  %s2344_s23 = smov 64  }
 0x14e   : > { %v869_v62 = vrot.slane %v855_v61, 3  ;;  %v870_v18 = vrot.slane %v856_v60, 2  ;;  %v1367_v60 = vstv %s3019_s10  ;;  %s1983_s10 = sld [smem:[#allocation9 + $0x105]] }
 0x150   : > { %v875_v5 = vsel %vm708_vm4, %v868_v38, %v869_v62  ;;  %v876_v57 = vsel %vm710_vm5, %v870_v18, %v871_v59  ;;  %v3004_v27 = vpop.permute.xlu2 %931  ;;  %v1451_v38 = vstv %s3021_s26  ;;  %s1984_s26 = sld [smem:[#allocation9 + $0x106]] }
 0x151   : > { %v886_v6 = vpop.permute.xlu1 %885  ;;  %v877_v10 = vsel %vm712_vm6, %v875_v5, %v876_v57  ;;  %v1251_v5 = vstv %s3030_s9  ;;  %v990_v57 = vmul.f32 %v989_v41, %v2938_v7 }
 0x152   : > { %v878_v14 = vsel %vm714_vm8, %v874_v8, %v877_v10  ;;  %v900_v2 = vsel %vm897_vm10, %v886_v6, %v888_v54 }
 0x153   : > { %v2999_v4 = vsel %vm863_vm9, %v878_v14, 0.0 }
 0x154   : > { %v1280_v46 = vmul.f32 %v1279_v9, %v2999_v4  ;;  %v884_v15 = vpop.permute.xlu0 %883  ;;  %v1364_v16 = vmul.f32 %v1363_v12, %v2999_v4  ;;  %v1448_v17 = vmul.f32 %v1447_v13, %v2999_v4  ;;  %v1248_v29 = vmul.f32 %v1247_v23, %v2999_v4 }
 0x155   : > { %v899_v11 = vsel %vm897_vm10, %v884_v15, %v886_v6  ;;  %v898_v55 = vsel %vm897_vm10, %v2951_v28, %v884_v15  ;;  %v956_v15 = vadd.s32 3, %v2783_v20  ;;  %v991_v20 = vadd.f32 %v990_v57, %v2955_v35 }
 0x156   : > { %v1281_v19 = vadd.f32 %v1280_v46, %v1277_v33  ;;  %v1365_v21 = vadd.f32 %v1364_v16, %v1361_v44  ;;  %v1449_v22 = vadd.f32 %v1448_v17, %v1445_v51  ;;  %v3007_v31 = vadd.f32 %v1248_v29, %v1245_v39 }
 0x157   : > { %v914_v33 = vrot.slane %v900_v2, 6  ;;  %v913_v44 = vrot.slane %v899_v11, 7  ;;  %v993_v17 = vstv %s3038_s15  ;;  %vm957_vm15 = vcmp.ge.s32.totalorder %v956_v15, 0 }
 0x158   : > { %v3025_v53 = vpop.permute.xlu2 %937  ;;  %v994_v43 = vmul.f32 %v993_v17, %v2999_v4  ;;  %vm958_vm0 = vcmp.le.s32.totalorder %v956_v15, 31  ;;  %v1077_v57 = vstv %s3094_s1 }
 0x159   : > { %v892_v24 = vpop.permute.xlu1 %891  ;;  %v920_v56 = vsel %vm702_vm2, %v898_v55, %v913_v44  ;;  %vm959_vm9 = vmand %vm957_vm15, %vm958_vm0  ;;  %v1255_v55 = vstv %s3076_s21 }
 0x15a   : > { %v903_v48 = vsel %vm897_vm10, %v892_v24, %v894_v3  ;;  %v995_v44 = vadd.f32 %v994_v43, %v991_v20  ;;  %v1162_v20 = vstv %s1982_s24 }
 0x15b   : > { %v917_v51 = vrot.slane %v903_v48, 3 }
 0x15c   : > { %v890_v30 = vpop.permute.xlu0 %889 }
 0x15d   : > { %v901_v32 = vsel %vm897_vm10, %v888_v54, %v890_v30  ;;  %v902_v49 = vsel %vm897_vm10, %v890_v30, %v892_v24 }
 0x15e   : > { %v915_v50 = vrot.slane %v901_v32, 5  ;;  %v916_v39 = vrot.slane %v902_v49, 4  ;;  %v997_v32 = vstv %s3047_s19  ;;  %s3727_s19 = sld [smem:[#allocation23_spill]] }
 0x160   : > { %v921_v1 = vsel %vm704_vm1, %v914_v33, %v915_v50  ;;  %v923_v37 = vsel %vm708_vm4, %v916_v39, %v917_v51  ;;  %v944_v6 = vpop.permute.xlu2 %943 }
 0x161   : > { %v3010_v34 = vpop.permute.xlu1 %929  ;;  %v922_v59 = vsel %vm706_vm3, %v920_v56, %v921_v1  ;;  %v1371_v1 = vstv %s3066_s8 }
 0x162   : > { %v946_v2 = vsel %vm945_vm14, %v3010_v34, %v3004_v27 }
 0x164   : > { %v896_v54 = vpop.permute.xlu0 %895 }
 0x165   : > { %v904_v25 = vsel %vm897_vm10, %v894_v3, %v896_v54  ;;  %v907_v45 = vsel %vm897_vm10, %v896_v54, %v2951_v28  ;;  %v1001_v54 = vstv %s3058_s11  ;;  %vm1030_vm10 = vcmask 785408  }
 0x166   : > { %v918_v40 = vrot.slane %v904_v25, 2  ;;  %v919_v26 = vrot.slane %v907_v45, 1  ;;  %v1287_v25 = vstv %s3063_s18 }
 0x168   : > { %v924_v47 = vsel %vm710_vm5, %v918_v40, %v919_v26  ;;  %v1455_v40 = vstv %s3073_s27 }
 0x169   : > { %v936_v58 = vpop.permute.xlu1 %935  ;;  %v925_v61 = vsel %vm712_vm6, %v923_v37, %v924_v47 }
 0x16a   : > { %v926_v28 = vsel %vm714_vm8, %v922_v59, %v925_v61  ;;  %v949_v13 = vsel %vm945_vm14, %v936_v58, %v3025_v53 }
 0x16b   : > { %v3049_v62 = vsel %vm911_vm11, %v926_v28, 0.0  ;;  %v963_v23 = vrot.slane %v949_v13, 5  ;;  %v1073_v28 = vstv %s3090_s17 }
 0x16c   : > { %v1284_v18 = vmul.f32 %v1283_v52, %v3049_v62  ;;  %v934_v63 = vpop.permute.xlu0 %933  ;;  %v1368_v0 = vmul.f32 %v1367_v60, %v3049_v62  ;;  %v1452_v3 = vmul.f32 %v1451_v38, %v3049_v62  ;;  %v1252_v16 = vmul.f32 %v1251_v5, %v3049_v62 }
 0x16d   : > { %v947_v9 = vsel %vm945_vm14, %v3004_v27, %v934_v63  ;;  %v948_v14 = vsel %vm945_vm14, %v934_v63, %v936_v58  ;;  %v998_v51 = vmul.f32 %v997_v32, %v3049_v62 }
 0x16e   : > { %v1285_v8 = vadd.f32 %v1284_v18, %v1281_v19  ;;  %v1369_v10 = vadd.f32 %v1368_v0, %v1365_v21  ;;  %v1453_v12 = vadd.f32 %v1452_v3, %v1449_v22  ;;  %v955_v19 = vsel %vm945_vm14, %v944_v6, %v3010_v34 }
 0x16f   : > { %v961_v21 = vrot.slane %v947_v9, 7  ;;  %v962_v24 = vrot.slane %v948_v14, 6  ;;  %v1253_v30 = vadd.f32 %v1252_v16, %v3007_v31  ;;  %v967_v11 = vrot.slane %v955_v19, 1 }
 0x170   : > { %v999_v37 = vadd.f32 %v998_v51, %v995_v44  ;;  %v1078_v9 = vmul.f32 %v1077_v57, %v2999_v4 }
 0x171   : > { %v942_v46 = vpop.permute.xlu1 %941  ;;  %v968_v49 = vsel %vm702_vm2, %v946_v2, %v961_v21  ;;  %v969_v50 = vsel %vm704_vm1, %v962_v24, %v963_v23  ;;  %v1158_v24 = vstv %s1981_s16  ;;  %v1166_v2 = vstv %s1983_s10 }
 0x172   : > { %v952_v22 = vsel %vm945_vm14, %v942_v46, %v944_v6  ;;  %v1074_v6 = vmul.f32 %v1073_v28, %v2938_v7  ;;  %v1159_v43 = vmul.f32 %v1158_v24, %v2938_v7 }
 0x173   : > { %v966_v29 = vrot.slane %v952_v22, 2 }
 0x174   : > { %v940_v48 = vpop.permute.xlu0 %939 }
 0x175   : > { %v950_v31 = vsel %vm945_vm14, %v3025_v53, %v940_v48  ;;  %v951_v35 = vsel %vm945_vm14, %v940_v48, %v942_v46  ;;  %v972_v33 = vsel %vm710_vm5, %v966_v29, %v967_v11  ;;  %v970_v53 = vsel %vm706_vm3, %v968_v49, %v969_v50 }
 0x176   : > { %v964_v27 = vrot.slane %v950_v31, 4  ;;  %v965_v34 = vrot.slane %v951_v35, 3  ;;  %v1163_v11 = vmul.f32 %v1162_v20, %v2999_v4  ;;  %v1170_v48 = vstv %s1984_s26 }
 0x177   : > { %v1160_v49 = vadd.f32 %v1159_v43, %v2961_v42  ;;  %v1167_v31 = vmul.f32 %v1166_v2, %v3049_v62 }
 0x178   : > { %v971_v39 = vsel %vm708_vm4, %v964_v27, %v965_v34 }
 0x179   : > { %v973_v45 = vsel %vm712_vm6, %v971_v39, %v972_v33  ;;  %v1164_v35 = vadd.f32 %v1163_v11, %v1160_v49 }
 0x17a   : > { %v974_v26 = vsel %vm714_vm8, %v970_v53, %v973_v45 }
 0x17b   : > { %v3104_v56 = vsel %vm959_vm9, %v974_v26, 0.0  ;;  %v1168_v34 = vadd.f32 %v1167_v31, %v1164_v35 }
 0x17c   : > { %v1002_v47 = vmul.f32 %v1001_v54, %v3104_v56  ;;  %v1288_v58 = vmul.f32 %v1287_v25, %v3104_v56  ;;  %v1372_v59 = vmul.f32 %v1371_v1, %v3104_v56  ;;  %v1456_v52 = vmul.f32 %v1455_v40, %v3104_v56 }
 0x17d   : > { %v1256_v61 = vmul.f32 %v1255_v55, %v3104_v56  ;;  %v1171_v50 = vmul.f32 %v1170_v48, %v3104_v56 }
 0x17e   : > { %v1003_v60 = vadd.f32 %v1002_v47, %v999_v37  ;;  %v3111_v38 = vadd.f32 %v1288_v58, %v1285_v8  ;;  %v3114_v41 = vadd.f32 %v1372_v59, %v1369_v10  ;;  %v3116_v18 = vadd.f32 %v1456_v52, %v1453_v12 }
 0x17f   : > { %v3118_v63 = vadd.f32 %v1256_v61, %v1253_v30  ;;  %v1081_v8 = vstv %s1976_s22  ;;  %v1085_v10 = vstv %s1977_s13  ;;  %v1075_v12 = vadd.f32 %v1074_v6, %v2958_v36  ;;  %s2278_s22 = scalar_lea.hbm %s3727_s19, 512 }
 0x180   : > { %v1010_v0 = vperm.slane %v1003_v60, 1  ;;  %v1009_v3 = vperm.slane %v1003_v60, 0  ;;  %v1005_v5 = vperm.slane %v1003_v60, 7  ;;  %v1082_v13 = vmul.f32 %v1081_v8, %v3049_v62 }
 0x181   : > { %v1079_v14 = vadd.f32 %v1078_v9, %v1075_v12  ;;  %v1086_v46 = vmul.f32 %v1085_v10, %v3104_v56  ;;  %v1013_v15 = vperm.slane %v1003_v60, 4  ;;  %v1012_v16 = vperm.slane %v1003_v60, 3 }
 0x182   : > { %1018 = vrot.lane.b32.xlu2 %v1010_v0, %s2343_s14  ;;  %1016 = vrot.lane.b32.xlu1 %v1009_v3, %s2343_s14  ;;  %v1011_v17 = vperm.slane %v1003_v60, 2  ;;  %v1015_v23 = vperm.slane %v1003_v60, 6  ;;  %v1014_v36 = vperm.slane %v1003_v60, 5  ;;  %v1172_v44 = vadd.f32 %v1171_v50, %v1168_v34 }
 0x183   : > { %1006 = vrot.lane.b32.xlu0 %v1005_v5, %s2343_s14  ;;  %v1083_v19 = vadd.f32 %v1082_v13, %v1079_v14  ;;  %v1293_v1 = vperm.slane %v3111_v38, 2  ;;  %v1292_v40 = vperm.slane %v3111_v38, 1  ;;  %v1291_v26 = vperm.slane %v3111_v38, 0 }
 0x184   : > { %v1178_v4 = vperm.slane %v1172_v44, 0  ;;  %v1174_v51 = vperm.slane %v1172_v44, 7  ;;  %v1181_v42 = vperm.slane %v1172_v44, 3  ;;  %v1180_v62 = vperm.slane %v1172_v44, 2 }
 0x185   : > { %v1087_v21 = vadd.f32 %v1086_v46, %v1083_v19  ;;  %v1179_v53 = vperm.slane %v1172_v44, 1  ;;  %v1184_v54 = vperm.slane %v1172_v44, 6  ;;  %v1183_v25 = vperm.slane %v1172_v44, 5 }
 0x186   : > { %v1182_v45 = vperm.slane %v1172_v44, 4  ;;  %v1296_v55 = vperm.slane %v3111_v38, 5  ;;  %v1295_v56 = vperm.slane %v3111_v38, 4  ;;  %v1294_v37 = vperm.slane %v3111_v38, 3 }
 0x187   : > { %v1089_v22 = vperm.slane %v1087_v21, 7  ;;  %v1095_v29 = vperm.slane %v1087_v21, 2  ;;  %v1094_v30 = vperm.slane %v1087_v21, 1  ;;  %v1093_v32 = vperm.slane %v1087_v21, 0 }
 0x188   : > { %v1098_v33 = vperm.slane %v1087_v21, 5  ;;  %v1097_v27 = vperm.slane %v1087_v21, 4  ;;  %v1096_v7 = vperm.slane %v1087_v21, 3  ;;  %v1099_v39 = vperm.slane %v1087_v21, 6 }
 0x189   : > { %v1375_v47 = vperm.slane %v3114_v41, 0  ;;  %v1298_v58 = vperm.slane %v3111_v38, 7  ;;  %v1297_v59 = vperm.slane %v3111_v38, 6  ;;  %v1378_v52 = vperm.slane %v3114_v41, 3 }
 0x18a   : > { %1024 = vrot.lane.b32.xlu2 %v1013_v15, %s2343_s14  ;;  %1022 = vrot.lane.b32.xlu1 %v1012_v16, %s2343_s14  ;;  %v1377_v61 = vperm.slane %v3114_v41, 2  ;;  %v1376_v60 = vperm.slane %v3114_v41, 1  ;;  %v1381_v38 = vperm.slane %v3114_v41, 6  ;;  %v1380_v0 = vperm.slane %v3114_v41, 5 }
 0x18b   : > { %1020 = vrot.lane.b32.xlu0 %v1011_v17, %s2343_s14  ;;  %v1379_v3 = vperm.slane %v3114_v41, 4  ;;  %v1460_v57 = vperm.slane %v3116_v18, 1  ;;  %v1459_v6 = vperm.slane %v3116_v18, 0  ;;  %v1382_v8 = vperm.slane %v3114_v41, 7 }
 0x18c   : > { %v1463_v10 = vperm.slane %v3116_v18, 4  ;;  %v1462_v12 = vperm.slane %v3116_v18, 3  ;;  %v1461_v13 = vperm.slane %v3116_v18, 2  ;;  %v1466_v21 = vperm.slane %v3116_v18, 7 }
 0x192   : > { %1090 = vrot.lane.b32.xlu2 %v1089_v22, %s2344_s23  ;;  %1028 = vrot.lane.b32.xlu1 %v1015_v23, %s2343_s14  ;;  %v1465_v22 = vperm.slane %v3116_v18, 6  ;;  %v1464_v23 = vperm.slane %v3116_v18, 5 }
 0x193   : > { %1026 = vrot.lane.b32.xlu0 %v1014_v36, %s2343_s14 }
 0x19a   : > { %1104 = vrot.lane.b32.xlu2 %v1095_v29, %s2344_s23  ;;  %1102 = vrot.lane.b32.xlu1 %v1094_v30, %s2344_s23 }
 0x19b   : > { %1100 = vrot.lane.b32.xlu0 %v1093_v32, %s2344_s23 }
 0x1a2   : > { %1110 = vrot.lane.b32.xlu2 %v1098_v33, %s2344_s23  ;;  %1108 = vrot.lane.b32.xlu1 %v1097_v27, %s2344_s23 }
 0x1a3   : > { %1106 = vrot.lane.b32.xlu0 %v1096_v7, %s2344_s23 }
 0x1aa   : > { %1185 = vrot.lane.b32.xlu2 %v1178_v4, %s2345_s30  ;;  %1175 = vrot.lane.b32.xlu1 %v1174_v51, %s2345_s30 }
 0x1ab   : > { %1112 = vrot.lane.b32.xlu0 %v1099_v39, %s2344_s23 }
 0x1b2   : > { %1191 = vrot.lane.b32.xlu2 %v1181_v42, %s2345_s30  ;;  %1189 = vrot.lane.b32.xlu1 %v1180_v62, %s2345_s30 }
 0x1b3   : > { %1187 = vrot.lane.b32.xlu0 %v1179_v53, %s2345_s30 }
 0x1ba   : > { %1197 = vrot.lane.b32.xlu2 %v1184_v54, %s2345_s30  ;;  %1195 = vrot.lane.b32.xlu1 %v1183_v25, %s2345_s30 }
 0x1bb   : > { %1193 = vrot.lane.b32.xlu0 %v1182_v45, %s2345_s30 }
 0x1c2   : > { %1303 = vrot.lane.b32.xlu2 %v1293_v1, %s2343_s14  ;;  %1301 = vrot.lane.b32.xlu1 %v1292_v40, %s2343_s14 }
 0x1c3   : > { %1299 = vrot.lane.b32.xlu0 %v1291_v26, %s2343_s14 }
 0x1ca   : > { %1309 = vrot.lane.b32.xlu2 %v1296_v55, %s2343_s14  ;;  %1307 = vrot.lane.b32.xlu1 %v1295_v56, %s2343_s14 }
 0x1cb   : > { %1305 = vrot.lane.b32.xlu0 %v1294_v37, %s2343_s14 }
 0x1d2   : > { %1383 = vrot.lane.b32.xlu2 %v1375_v47, %s2344_s23  ;;  %1313 = vrot.lane.b32.xlu1 %v1298_v58, %s2343_s14 }
 0x1d3   : > { %1311 = vrot.lane.b32.xlu0 %v1297_v59, %s2343_s14 }
 0x1da   : > { %1389 = vrot.lane.b32.xlu2 %v1378_v52, %s2344_s23  ;;  %1387 = vrot.lane.b32.xlu1 %v1377_v61, %s2344_s23 }
 0x1db   : > { %1385 = vrot.lane.b32.xlu0 %v1376_v60, %s2344_s23 }
 0x1dc   : > { %v1019_v28 = vpop.permute.xlu2 %1018 }
 0x1e2   : > { %1395 = vrot.lane.b32.xlu2 %v1381_v38, %s2344_s23  ;;  %1393 = vrot.lane.b32.xlu1 %v1380_v0, %s2344_s23 }
 0x1e3   : > { %1391 = vrot.lane.b32.xlu0 %v1379_v3, %s2344_s23 }
 0x1e4   : > { %v1025_v5 = vpop.permute.xlu2 %1024 }
 0x1ea   : > { %1469 = vrot.lane.b32.xlu2 %v1460_v57, %s2345_s30  ;;  %1467 = vrot.lane.b32.xlu1 %v1459_v6, %s2345_s30 }
 0x1eb   : > { %1397 = vrot.lane.b32.xlu0 %v1382_v8, %s2344_s23 }
 0x1ec   : > { %v3191_v9 = vpop.permute.xlu2 %1090 }
 0x1f2   : > { %1475 = vrot.lane.b32.xlu2 %v1463_v10, %s2345_s30  ;;  %1473 = vrot.lane.b32.xlu1 %v1462_v12, %s2345_s30 }
 0x1f3   : > { %1471 = vrot.lane.b32.xlu0 %v1461_v13, %s2345_s30 }
 0x1f4   : > { %v1105_v41 = vpop.permute.xlu2 %1104  ;;  %v1017_v14 = vpop.permute.xlu1 %1016 }
 0x1f5   : > { %v1031_v46 = vsel %vm1030_vm10, %v1017_v14, %v1019_v28  ;;  %v1007_v15 = vpop.permute.xlu0 %1006 }
 0x1f6   : > { %v1045_v16 = vrot.slane %v1031_v46, 7  ;;  %v1039_v17 = vsel %vm1030_vm10, %v1007_v15, %v1017_v14 }
 0x1f8   : > { %v1052_v19 = vsel %vm702_vm2, %v1039_v17, %v1045_v16 }
 0x1fa   : > { %1481 = vrot.lane.b32.xlu2 %v1466_v21, %s2345_s30  ;;  %1479 = vrot.lane.b32.xlu1 %v1465_v22, %s2345_s30 }
 0x1fb   : > { %1477 = vrot.lane.b32.xlu0 %v1464_v23, %s2345_s30  ;;  %s3560_s30 = scalar_lea.vmem [#allocation10], %s2551_s12  ;;  %s2021_s12 = sshll.u32 %s2467_s25, 8 }
 0x1fc   : > { %v1111_v36 = vpop.permute.xlu2 %1110  ;;  %v1023_v24 = vpop.permute.xlu1 %1022  ;;  %s1814_s11 = scalar_lea.hbm %s3727_s19, %s2021_s12  ;;  %s1815_s25 = sshll.u32 %s3560_s30, 4  ;;  %s1816_s25 = int_to_ptr.vmem [resolvable:$true] %s1815_s25 }
 0x1fd   : > { %v1034_v29 = vsel %vm1030_vm10, %v1023_v24, %v1025_v5  ;;  %v1021_v30 = vpop.permute.xlu0 %1020  ;;  %s1817_s8 = sshll.u32 %s1814_s11, 4  ;;  %s1818_s8 = int_to_ptr.hbm [resolvable:$true] %s1817_s8 }
 0x1fe   : > { %v1032_v20 = vsel %vm1030_vm10, %v1019_v28, %v1021_v30  ;;  %v1033_v32 = vsel %vm1030_vm10, %v1021_v30, %v1023_v24  ;;  %v1048_v7 = vrot.slane %v1034_v29, 4  ;;  %v3231_v28 = vld [vmem:[%s3675_s4] sm:$0xff]  ;;  %s2272_s27 = sshra.s32 %s1818_s8, 4  ;;  %s2273_s27 = int_to_ptr.hbm [resolvable:$true] %s2272_s27 }
 0x1ff   : > { %v1046_v43 = vrot.slane %v1032_v20, 6  ;;  %v1047_v2 = vrot.slane %v1033_v32, 5  ;;  %v1040_v38 = vadd.s32 4294967293, %v3231_v28  ;;  %v1124_v6 = vadd.s32 4294967294, %v3231_v28  ;;  %s2274_s21 = scalar_lea.hbm %s2273_s27, 256  ;;  %p2279_p9 = scmp.lt.s32.totalorder %s2273_s27, %s3727_s19 }
 0x200   : > { %p2275_p6 = scmp.ne.s32.totalorder %s2273_s27, %s2274_s21  ;;  %p2280_p1 = scmp.lt.s32.totalorder %s2278_s22, %s2274_s21 }
 0x201   : > { %v1053_v11 = vsel %vm704_vm1, %v1046_v43, %v1047_v2  ;;  %vm1041_vm11 = vcmp.ge.s32.totalorder %v1040_v38, 0  ;;  %vm1042_vm14 = vcmp.le.s32.totalorder %v1040_v38, 31  ;;  %vm1125_vm15 = vcmp.ge.s32.totalorder %v1124_v6, 0 }
 0x202   : > { %v1054_v18 = vsel %vm706_vm3, %v1052_v19, %v1053_v11  ;;  %vm1126_vm0 = vcmp.le.s32.totalorder %v1124_v6, 31  ;;  %vm1043_vm9 = vmand %vm1041_vm11, %vm1042_vm14  ;;  %vm1258_vm14 = vcmp.ge.s32.totalorder %v3231_v28, 0  ;;  %p2276_p8 = pnand %p2275_p6, %p2484_p11  ;;  %p2281_p5 = por %p2280_p1, %p2279_p9 }
 0x203   : > { %vm1127_vm7 = vmand %vm1125_vm15, %vm1126_vm0  ;;  %vm1259_vm15 = vcmp.le.s32.totalorder %v3231_v28, 31 }
 0x204   : > { %v1029_v48 = vpop.permute.xlu1 %1028  ;;  %v1186_v35 = vpop.permute.xlu2 %1185  ;;  %p2277_p4 = pneg %p2276_p8 }
 0x205   : > { %v1037_v49 = vsel %vm1030_vm10, %v1029_v48, %v1007_v15  ;;  %v1027_v31 = vpop.permute.xlu0 %1026 }
 0x206   : > { %v1051_v50 = vrot.slane %v1037_v49, 1  ;;  %v1035_v33 = vsel %vm1030_vm10, %v1025_v5, %v1027_v31  ;;  %v1036_v27 = vsel %vm1030_vm10, %v1027_v31, %v1029_v48  ;;  %p2282_p3 = pnand %p2281_p5, %p2277_p4 }
 0x207   : > { %v1049_v34 = vrot.slane %v1035_v33, 3  ;;  %v1050_v44 = vrot.slane %v1036_v27, 2 }
 0x209   : > { %v1055_v4 = vsel %vm708_vm4, %v1048_v7, %v1049_v34  ;;  %v1056_v51 = vsel %vm710_vm5, %v1050_v44, %v1051_v50 }
 0x20a   : > { %v1057_v39 = vsel %vm712_vm6, %v1055_v4, %v1056_v51 }
 0x20b   : > { %v1058_v42 = vsel %vm714_vm8, %v1054_v18, %v1057_v39  ;;  %v1209_v18 = vadd.s32 4294967295, %v3231_v28 }
 0x20c   : > { %v1103_v62 = vpop.permute.xlu1 %1102  ;;  %v1192_v40 = vpop.permute.xlu2 %1191  ;;  %v1060_v19 = vsel %vm1043_vm9, %v1058_v42, 0.0  ;;  %vm1260_vm9 = vmand %vm1258_vm14, %vm1259_vm15 }
 0x20d   : > { %v1116_v53 = vsel %vm1114_vm12, %v1103_v62, %v1105_v41  ;;  %v1101_v54 = vpop.permute.xlu0 %1100  ;;  %vm1211_vm11 = vcmp.le.s32.totalorder %v1209_v18, 31 }
 0x20e   : > { %v1115_v25 = vsel %vm1114_vm12, %v1101_v54, %v1103_v62  ;;  %v1123_v45 = vsel %vm1114_vm12, %v3191_v9, %v1101_v54  ;;  %v1130_v52 = vrot.slane %v1116_v53, 6 }
 0x20f   : > { %v1129_v1 = vrot.slane %v1115_v25, 7 }
 0x211   : > { %v1136_v26 = vsel %vm702_vm2, %v1123_v45, %v1129_v1 }
 0x214   : > { %v1109_v55 = vpop.permute.xlu1 %1108  ;;  %v1198_v5 = vpop.permute.xlu2 %1197 }
 0x215   : > { %v1119_v56 = vsel %vm1114_vm12, %v1109_v55, %v1111_v36  ;;  %v1107_v37 = vpop.permute.xlu0 %1106 }
 0x216   : > { %v1133_v47 = vrot.slane %v1119_v56, 3  ;;  %v1117_v58 = vsel %vm1114_vm12, %v1105_v41, %v1107_v37  ;;  %v1118_v59 = vsel %vm1114_vm12, %v1107_v37, %v1109_v55 }
 0x217   : > { %v1131_v61 = vrot.slane %v1117_v58, 5  ;;  %v1132_v60 = vrot.slane %v1118_v59, 4 }
 0x219   : > { %v1137_v0 = vsel %vm704_vm1, %v1130_v52, %v1131_v61  ;;  %v1139_v3 = vsel %vm708_vm4, %v1132_v60, %v1133_v47 }
 0x21a   : > { %v1138_v57 = vsel %vm706_vm3, %v1136_v26, %v1137_v0 }
 0x21c   : > { %v1176_v8 = vpop.permute.xlu1 %1175  ;;  %v3245_v21 = vpop.permute.xlu2 %1303 }
 0x21d   : > { %v1208_v10 = vsel %vm1199_vm13, %v1176_v8, %v1186_v35  ;;  %v1113_v12 = vpop.permute.xlu0 %1112  ;;  %v1206_v49 = vsel %vm1199_vm13, %v1198_v5, %v1176_v8 }
 0x21e   : > { %v1120_v13 = vsel %vm1114_vm12, %v1111_v36, %v1113_v12  ;;  %v1121_v41 = vsel %vm1114_vm12, %v1113_v12, %v3191_v9  ;;  %v1220_v33 = vrot.slane %v1206_v49, 1 }
 0x21f   : > { %v1134_v14 = vrot.slane %v1120_v13, 2  ;;  %v1135_v46 = vrot.slane %v1121_v41, 1 }
 0x221   : > { %v1140_v15 = vsel %vm710_vm5, %v1134_v14, %v1135_v46 }
 0x222   : > { %v1141_v16 = vsel %vm712_vm6, %v1139_v3, %v1140_v15 }
 0x223   : > { %v1142_v17 = vsel %vm714_vm8, %v1138_v57, %v1141_v16  ;;  %v1325_v16 = vadd.s32 1, %v3231_v28 }
 0x224   : > { %v1144_v22 = vsel %vm1127_vm7, %v1142_v17, 0.0  ;;  %v1190_v23 = vpop.permute.xlu1 %1189  ;;  %vm1210_vm7 = vcmp.ge.s32.totalorder %v1209_v18, 0  ;;  %v1310_v27 = vpop.permute.xlu2 %1309 }
 0x225   : > { %v1145_v24 = vadd.f32 %v1144_v22, %v1060_v19  ;;  %v1202_v36 = vsel %vm1199_vm13, %v1190_v23, %v1192_v40  ;;  %v1188_v29 = vpop.permute.xlu0 %1187  ;;  %vm1212_vm0 = vmand %vm1210_vm7, %vm1211_vm11  ;;  %vm1326_vm7 = vcmp.ge.s32.totalorder %v1325_v16, 0  ;;  %vm1327_vm11 = vcmp.le.s32.totalorder %v1325_v16, 31 }
 0x226   : > { %v1216_v9 = vrot.slane %v1202_v36, 5  ;;  %v1200_v30 = vsel %vm1199_vm13, %v1186_v35, %v1188_v29  ;;  %v1201_v20 = vsel %vm1199_vm13, %v1188_v29, %v1190_v23 }
 0x227   : > { %v1214_v32 = vrot.slane %v1200_v30, 7  ;;  %v1215_v43 = vrot.slane %v1201_v20, 6 }
 0x229   : > { %v1221_v2 = vsel %vm702_vm2, %v1208_v10, %v1214_v32  ;;  %v1222_v11 = vsel %vm704_vm1, %v1215_v43, %v1216_v9 }
 0x22a   : > { %v1223_v48 = vsel %vm706_vm3, %v1221_v2, %v1222_v11 }
 0x22c   : > { %v1196_v31 = vpop.permute.xlu1 %1195  ;;  %v3267_v55 = vpop.permute.xlu2 %1383 }
 0x22d   : > { %v1205_v50 = vsel %vm1199_vm13, %v1196_v31, %v1198_v5  ;;  %v1194_v35 = vpop.permute.xlu0 %1193 }
 0x22e   : > { %v1219_v7 = vrot.slane %v1205_v50, 2  ;;  %v1203_v34 = vsel %vm1199_vm13, %v1192_v40, %v1194_v35  ;;  %v1204_v44 = vsel %vm1199_vm13, %v1194_v35, %v1196_v31  ;;  %v1261_v40 = vsel %vm1260_vm9, %v3118_v63, 0.0 }
 0x22f   : > { %v1217_v4 = vrot.slane %v1203_v34, 4  ;;  %v1218_v51 = vrot.slane %v1204_v44, 3 }
 0x230   : > { %v1225_v39 = vsel %vm710_vm5, %v1219_v7, %v1220_v33 }
 0x231   : > { %v1224_v42 = vsel %vm708_vm4, %v1217_v4, %v1218_v51  ;;  %v1409_v4 = vadd.s32 2, %v3231_v28 }
 0x232   : > { %v1226_v62 = vsel %vm712_vm6, %v1224_v42, %v1225_v39 }
 0x233   : > { %v1227_v53 = vsel %vm714_vm8, %v1223_v48, %v1226_v62  ;;  %vm1410_vm14 = vcmp.ge.s32.totalorder %v1409_v4, 0  ;;  %vm1411_vm15 = vcmp.le.s32.totalorder %v1409_v4, 31 }
 0x234   : > { %v1229_v54 = vsel %vm1212_vm0, %v1227_v53, 0.0  ;;  %v1302_v25 = vpop.permute.xlu1 %1301  ;;  %v1390_v47 = vpop.permute.xlu2 %1389  ;;  %vm3326_vm0 = vmand %vm1410_vm14, %vm1411_vm15 }
 0x235   : > { %v1230_v45 = vadd.f32 %v1229_v54, %v1145_v24  ;;  %v1300_v1 = vpop.permute.xlu0 %1299  ;;  %v1316_v41 = vsel %vm1030_vm10, %v1302_v25, %v3245_v21 }
 0x236   : > { %v1330_v29 = vrot.slane %v1316_v41, 7  ;;  %v1315_v31 = vsel %vm1030_vm10, %v1300_v1, %v1302_v25  ;;  %v1493_v25 = vadd.s32 3, %v3231_v28 }
 0x237   : > { %v3265_v26 = vadd.f32 %v1261_v40, %v1230_v45 }
 0x238   : > { %v1337_v7 = vsel %vm702_vm2, %v1315_v31, %v1330_v29  ;;  %vm1495_vm9 = vcmp.le.s32.totalorder %v1493_v25, 31 }
 0x23c   : > { %v1308_v56 = vpop.permute.xlu1 %1307  ;;  %v1396_v52 = vpop.permute.xlu2 %1395 }
 0x23d   : > { %v1306_v37 = vpop.permute.xlu0 %1305  ;;  %v1319_v63 = vsel %vm1030_vm10, %v1308_v56, %v1310_v27 }
 0x23e   : > { %v1317_v10 = vsel %vm1030_vm10, %v3245_v21, %v1306_v37  ;;  %v1318_v12 = vsel %vm1030_vm10, %v1306_v37, %v1308_v56  ;;  %v1333_v46 = vrot.slane %v1319_v63, 4  ;;  %v3389_v63 = vld [vmem:[%s2570_s20 + $0x8] sm:$0xff] }
 0x23f   : > { %v1331_v19 = vrot.slane %v1317_v10, 6  ;;  %v1332_v22 = vrot.slane %v1318_v12, 5 }
 0x241   : > { %v1338_v18 = vsel %vm704_vm1, %v1331_v19, %v1332_v22 }
 0x242   : > { %v1339_v51 = vsel %vm706_vm3, %v1337_v7, %v1338_v18 }
 0x244   : > { %v1314_v58 = vpop.permute.xlu1 %1313  ;;  %v3269_v3 = vpop.permute.xlu2 %1469 }
 0x245   : > { %v1312_v59 = vpop.permute.xlu0 %1311  ;;  %v1324_v57 = vsel %vm1030_vm10, %v1314_v58, %v1300_v1 }
 0x246   : > { %v1320_v5 = vsel %vm1030_vm10, %v1310_v27, %v1312_v59  ;;  %v1321_v6 = vsel %vm1030_vm10, %v1312_v59, %v1314_v58  ;;  %v1336_v15 = vrot.slane %v1324_v57, 1  ;;  %vm3307_vm10 = vmand %vm1326_vm7, %vm1327_vm11 }
 0x247   : > { %v1334_v14 = vrot.slane %v1320_v5, 3  ;;  %v1335_v17 = vrot.slane %v1321_v6, 2 }
 0x249   : > { %v1340_v9 = vsel %vm708_vm4, %v1333_v46, %v1334_v14  ;;  %v1341_v32 = vsel %vm710_vm5, %v1335_v17, %v1336_v15 }
 0x24a   : > { %v1342_v34 = vsel %vm712_vm6, %v1340_v9, %v1341_v32 }
 0x24b   : > { %v1343_v1 = vsel %vm714_vm8, %v1339_v51, %v1342_v34  ;;  %v3348_v51 = vld [vmem:[%s2570_s20 + $0x80] sm:$0xff] }
 0x24c   : > { %v1388_v61 = vpop.permute.xlu1 %1387  ;;  %v1476_v23 = vpop.permute.xlu2 %1475 }
 0x24d   : > { %v1386_v60 = vpop.permute.xlu0 %1385  ;;  %v1401_v48 = vsel %vm1114_vm12, %v1388_v61, %v1390_v47 }
 0x24e   : > { %v1400_v43 = vsel %vm1114_vm12, %v1386_v60, %v1388_v61  ;;  %v1415_v39 = vrot.slane %v1401_v48, 6  ;;  %v1399_v40 = vsel %vm1114_vm12, %v3267_v55, %v1386_v60 }
 0x24f   : > { %v1414_v44 = vrot.slane %v1400_v43, 7 }
 0x254   : > { %v1394_v38 = vpop.permute.xlu1 %1393  ;;  %v1482_v58 = vpop.permute.xlu2 %1481 }
 0x255   : > { %v1392_v0 = vpop.permute.xlu0 %1391  ;;  %v1404_v30 = vsel %vm1114_vm12, %v1394_v38, %v1396_v52 }
 0x256   : > { %v1402_v21 = vsel %vm1114_vm12, %v1390_v47, %v1392_v0  ;;  %v1403_v20 = vsel %vm1114_vm12, %v1392_v0, %v1394_v38  ;;  %v1418_v50 = vrot.slane %v1404_v30, 3  ;;  %v1421_v47 = vsel %vm702_vm2, %v1399_v40, %v1414_v44 }
 0x257   : > { %v1416_v35 = vrot.slane %v1402_v21, 5  ;;  %v1417_v33 = vrot.slane %v1403_v20, 4 }
 0x259   : > { %v1422_v56 = vsel %vm704_vm1, %v1415_v39, %v1416_v35  ;;  %v1424_v37 = vsel %vm708_vm4, %v1417_v33, %v1418_v50 }
 0x25a   : > { %v1423_v60 = vsel %vm706_vm3, %v1421_v47, %v1422_v56  ;;  %v3366_v56 = vld [vmem:[%s2570_s20 + $0x48] sm:$0xff] }
 0x25c   : > { %v3275_v8 = vpop.permute.xlu1 %1467 }
 0x25d   : > { %v1398_v13 = vpop.permute.xlu0 %1397  ;;  %v1492_v59 = vsel %vm1199_vm13, %v1482_v58, %v3275_v8  ;;  %v1483_v5 = vsel %vm1199_vm13, %v3275_v8, %v3269_v3 }
 0x25e   : > { %v1405_v24 = vsel %vm1114_vm12, %v1396_v52, %v1398_v13  ;;  %v1408_v36 = vsel %vm1114_vm12, %v1398_v13, %v3267_v55  ;;  %v1345_v55 = vsel %vm3307_vm10, %v1343_v1, 0.0  ;;  %vm1494_vm12 = vcmp.ge.s32.totalorder %v1493_v25, 0  ;;  %v3362_v1 = vld [vmem:[%s2570_s20 + $0x40] sm:$0xff] }
 0x25f   : > { %v1419_v2 = vrot.slane %v1405_v24, 2  ;;  %v1420_v11 = vrot.slane %v1408_v36, 1  ;;  %v1504_v12 = vrot.slane %v1492_v59, 1  ;;  %v1346_v19 = vadd.f32 %v1345_v55, %v3265_v26  ;;  %vm1496_vm7 = vmand %vm1494_vm12, %vm1495_vm9  ;;  %v3381_v55 = vld [vmem:[%s2570_s20] sm:$0xff] }
 0x261   : > { %v1425_v42 = vsel %vm710_vm5, %v1419_v2, %v1420_v11 }
 0x262   : > { %v1426_v28 = vsel %vm712_vm6, %v1424_v37, %v1425_v42  ;;  %v3352_v42 = vld [vmem:[%s2570_s20 + $0x88] sm:$0xff] }
 0x263   : > { %v1427_v57 = vsel %vm714_vm8, %v1423_v60, %v1426_v28 }
 0x264   : > { %v1474_v49 = vpop.permute.xlu1 %1473  ;;  %v1429_v16 = vsel %vm3326_vm0, %v1427_v57, 0.0 }
 0x265   : > { %v1472_v27 = vpop.permute.xlu0 %1471  ;;  %v1486_v62 = vsel %vm1199_vm13, %v1474_v49, %v1476_v23  ;;  %v1430_v36 = vadd.f32 %v1429_v16, %v1346_v19 }
 0x266   : > { %v1484_v53 = vsel %vm1199_vm13, %v3269_v3, %v1472_v27  ;;  %v1485_v54 = vsel %vm1199_vm13, %v1472_v27, %v1474_v49  ;;  %v1500_v52 = vrot.slane %v1486_v62, 5 }
 0x267   : > { %v1498_v61 = vrot.slane %v1484_v53, 7  ;;  %v1499_v38 = vrot.slane %v1485_v54, 6  ;;  %v3358_v54 = vld [vmem:[%s2570_s20 + $0x90] sm:$0xff] }
 0x269   : > { %v1505_v46 = vsel %vm702_vm2, %v1483_v5, %v1498_v61  ;;  %v1506_v3 = vsel %vm704_vm1, %v1499_v38, %v1500_v52  ;;  %v3377_v52 = vld [vmem:[%s2570_s20 + $0x50] sm:$0xff] }
 0x26c   : > { %v1480_v0 = vpop.permute.xlu1 %1479 }
 0x26d   : > { %v1489_v6 = vsel %vm1199_vm13, %v1480_v0, %v1482_v58  ;;  %v1478_v10 = vpop.permute.xlu0 %1477  ;;  %v3372_v58 = vld [vmem:[%s2570_s20 + $0x98] sm:$0xff] }
 0x26e   : > { %v1503_v13 = vrot.slane %v1489_v6, 2  ;;  %v1487_v41 = vsel %vm1199_vm13, %v1476_v23, %v1478_v10  ;;  %v1488_v14 = vsel %vm1199_vm13, %v1478_v10, %v1480_v0  ;;  %v1507_v23 = vsel %vm706_vm3, %v1505_v46, %v1506_v3  ;;  %v3393_v6 = vld [vmem:[%s2570_s20 + $0xa0] sm:$0xff]  ;;  %v3403_v46 = vld [vmem:[%s2570_s20 + $0x10] sm:$0xff] }
 0x26f   : > { %v1501_v8 = vrot.slane %v1487_v41, 4  ;;  %v1502_v15 = vrot.slane %v1488_v14, 3 }
 0x270   : > { %v1509_v17 = vsel %vm710_vm5, %v1503_v13, %v1504_v12  ;;  %v3398_v13 = vld [vmem:[%s2570_s20 + $0x58] sm:$0xff]  ;;  %vm3717_vm5 = vcmask 15360  }
 0x271   : > { %v1508_v22 = vsel %vm708_vm4, %v1501_v8, %v1502_v15  ;;  %v3407_v15 = vld [vmem:[%s2570_s20 + $0xc0] sm:$0xff]  ;;  %vm3720_vm13 = vmmov %vm3717_vm5 }
 0x272   : > { %v1510_v24 = vsel %vm712_vm6, %v1508_v22, %v1509_v17  ;;  %v3411_v17 = vld [vmem:[%s2570_s20 + $0xc8] sm:$0xff]  ;;  %vm3718_vm6 = vmmov %vm3717_vm5 }
 0x273   : > { %v1511_v29 = vsel %vm714_vm8, %v1507_v23, %v1510_v24  ;;  %v3415_v22 = vld [vmem:[%s2570_s20 + $0xa8] sm:$0xff]  ;;  %vm3719_vm8 = vmmov %vm3717_vm5 }
 0x274   : > { %v1513_v9 = vsel %vm1496_vm7, %v1511_v29, 0.0  ;;  %vm3721_vm11 = vmmov %vm3717_vm5 }
 0x275   : > { %v1514_v30 = vadd.f32 %v1513_v9, %v1430_v36  ;;  %v3420_v36 = vld [vmem:[%s2570_s20 + $0x60] sm:$0xff]  ;;  %vm3722_vm10 = vmmov %vm3717_vm5 }
 0x276   : > { %vm3723_vm14 = vmmov %vm3717_vm5 }
 0x277   : > { %v1515_v21 = vsub.f32 0.0, %v1514_v30  ;;  %v3425_v30 = vld [vmem:[%s2570_s20 + $0xb0] sm:$0xff]  ;;  %vm3724_vm15 = vmmov %vm3717_vm5 }
 0x279   : > { %v1516_v20 = vmul.f32 1.442695, %v1515_v21 }
 0x27b   : > { %2101 = vpow2.f32 %v1516_v20  ;;  %v3430_v20 = vld [vmem:[%s2570_s20 + $0x68] sm:$0xff] }
 0x281   : > { %v2102_v32 = vpop.eup %2101 }
 0x282   : > { %v1518_v43 = vadd.f32 1.0, %v2102_v32 }
 0x284   : > { %2103 = vrcp.f32 %v1518_v43  ;;  %v1530_v18 = vand.u32 2147483648, %v1518_v43  ;;  %v1528_v49 = vand.u32 2147483647, %v1518_v43  ;;  %vm1524_vm2 = vweird.f32 %v1518_v43 }
 0x286   : > { %v1531_v50 = vor.u32 1.1754944e-38, %v1530_v18  ;;  %vm1529_vm4 = vcmp.eq.f32.partialorder %v1528_v49, 8.507059e+37 }
 0x28a   : > { %v2104_v26 = vpop.eup %2103 }
 0x28b   : > { %v1520_v2 = vmul.f32 %v2104_v26, %v1518_v43  ;;  %vm1525_vm1 = vweird.f32 %v2104_v26  ;;  %v3435_v43 = vld [vmem:[%s2570_s20 + $0x18] sm:$0xff] }
 0x28c   : > { %vm1526_vm3 = vmor %vm1524_vm2, %vm1525_vm1 }
 0x28d   : > { %v1521_v11 = vsub.f32 1.0, %v1520_v2 }
 0x28f   : > { %v1522_v48 = vmul.f32 %v2104_v26, %v1521_v11 }
 0x291   : > { %v1523_v31 = vadd.f32 %v2104_v26, %v1522_v48  ;;  %v3440_v48 = vld [vmem:[%s2570_s20 + $0xd0] sm:$0xff] }
 0x293   : > { %v1527_v35 = vsel %vm1526_vm3, %v2104_v26, %v1523_v31 }
 0x294   : > { %v1532_v33 = vsel %vm1529_vm4, %v1531_v50, %v1527_v35  ;;  %v3444_v50 = vld [vmem:[%s2570_s20 + $0xb8] sm:$0xff] }
 0x295   : > { %v1534_v27 = vadd.f32 1.0, %v1532_v33  ;;  %v3449_v33 = vld [vmem:[%s2570_s20 + $0x70] sm:$0xff] }
 0x297   : > { %v1536_v7 = vperm.slane %v1534_v27, 0  ;;  %v1537_v34 = vperm.slane %v1534_v27, 1  ;;  %v1538_v44 = vperm.slane %v1534_v27, 2  ;;  %v3345_v4 = vperm.slane %v1534_v27, 3 }
 0x298   : > { %v3355_v53 = vperm.slane %v1534_v27, 4  ;;  %v3369_v47 = vperm.slane %v1534_v27, 5  ;;  %v3384_v0 = vperm.slane %v1534_v27, 6  ;;  %v3386_v5 = vperm.slane %v1534_v27, 7 }
 0x299   : > { %v1568_v39 = vmul.f32 %v3348_v51, %v1536_v7  ;;  %v1569_v62 = vmul.f32 %v3352_v42, %v1537_v34  ;;  %v1570_v25 = vmul.f32 %v3358_v54, %v1538_v44  ;;  %v1560_v40 = vmul.f32 %v3362_v1, %v1536_v7 }
 0x29a   : > { %v1561_v37 = vmul.f32 %v3366_v56, %v1537_v34  ;;  %v1571_v28 = vmul.f32 %v3372_v58, %v3345_v4  ;;  %v1562_v61 = vmul.f32 %v3377_v52, %v1538_v44  ;;  %v1552_v60 = vmul.f32 %v3381_v55, %v1536_v7 }
 0x29b   : > { %v1602_v45 = vmax.f32 %v1568_v39, %v1569_v62  ;;  %v1553_v57 = vmul.f32 %v3389_v63, %v1537_v34  ;;  %v1572_v10 = vmul.f32 %v3393_v6, %v3355_v53  ;;  %v1563_v41 = vmul.f32 %v3398_v13, %v3345_v4 }
 0x29c   : > { %v1593_v38 = vmax.f32 %v1560_v40, %v1561_v37  ;;  %v1554_v3 = vmul.f32 %v3403_v46, %v1538_v44  ;;  %v1576_v16 = vmul.f32 %v3407_v15, %v1536_v7  ;;  %v1577_v19 = vmul.f32 %v3411_v17, %v1537_v34  ;;  %v3454_v7 = vld [vmem:[%s2570_s20 + $0x20] sm:$0xff]  ;;  %v3464_v37 = vld [vmem:[%s2570_s20 + $0x78] sm:$0xff] }
 0x29d   : > { %v1603_v59 = vmax.f32 %v1602_v45, %v1570_v25  ;;  %v1584_v8 = vmax.f32 %v1552_v60, %v1553_v57  ;;  %v1573_v23 = vmul.f32 %v3415_v22, %v3369_v47  ;;  %v1564_v29 = vmul.f32 %v3420_v36, %v3355_v53  ;;  %v3459_v25 = vld [vmem:[%s2570_s20 + $0xd8] sm:$0xff] }
 0x29e   : > { %v1594_v14 = vmax.f32 %v1593_v38, %v1562_v61  ;;  %v1574_v21 = vmul.f32 %v3425_v30, %v3384_v0  ;;  %v1565_v32 = vmul.f32 %v3430_v20, %v3369_v47  ;;  %v1555_v26 = vmul.f32 %v3435_v43, %v3345_v4 }
 0x29f   : > { %v1604_v12 = vmax.f32 %v1603_v59, %v1571_v28  ;;  %v1585_v2 = vmax.f32 %v1584_v8, %v1554_v3  ;;  %v1578_v49 = vmul.f32 %v3440_v48, %v1538_v44  ;;  %v1611_v31 = vmax.f32 %v1576_v16, %v1577_v19  ;;  %v3469_v59 = vld [vmem:[%s2570_s20 + $0x28] sm:$0xff] }
 0x2a0   : > { %v1595_v9 = vmax.f32 %v1594_v14, %v1563_v41  ;;  %v1575_v35 = vmul.f32 %v3444_v50, %v3386_v5  ;;  %v1566_v27 = vmul.f32 %v3449_v33, %v3384_v0  ;;  %v1556_v34 = vmul.f32 %v3454_v7, %v3355_v53  ;;  %v3479_v41 = vld [vmem:[%s2570_s20 + $0x30] sm:$0xff]  ;;  %v3484_v16 = vld [vmem:[%s2570_s20 + $0xe8] sm:$0xff] }
 0x2a1   : > { %v1605_v24 = vmax.f32 %v1604_v12, %v1572_v10  ;;  %v1586_v39 = vmax.f32 %v1585_v2, %v1555_v26  ;;  %v1579_v45 = vmul.f32 %v3459_v25, %v3345_v4  ;;  %v1612_v40 = vmax.f32 %v1611_v31, %v1578_v49  ;;  %v3474_v10 = vld [vmem:[%s2570_s20 + $0xe0] sm:$0xff]  ;;  %v3499_v2 = vld [vmem:[%s2570_s20 + $0xf8] sm:$0xff]  ;;  %v1621_v31 = vld [vmem:[%s3676_s5 + $0x8] sm:$0xff] }
 0x2a2   : > { %v1596_v18 = vmax.f32 %v1595_v9, %v1564_v29  ;;  %v1567_v28 = vmul.f32 %v3464_v37, %v3386_v5  ;;  %v1557_v61 = vmul.f32 %v3469_v59, %v3369_v47  ;;  %v1580_v4 = vmul.f32 %v3474_v10, %v3355_v53  ;;  %v3494_v9 = vld [vmem:[%s2570_s20 + $0xf0] sm:$0xff] }
 0x2a3   : > { %v1606_v11 = vmax.f32 %v1605_v24, %v1573_v23  ;;  %v1587_v38 = vmax.f32 %v1586_v39, %v1556_v34  ;;  %v1613_v12 = vmax.f32 %v1612_v40, %v1579_v45  ;;  %v1558_v14 = vmul.f32 %v3479_v41, %v3384_v0  ;;  %v3489_v24 = vld [vmem:[%s2570_s20 + $0x38] sm:$0xff]  ;;  %v1620_v34 = vld [vmem:[%s3676_s5] sm:$0xff]  ;;  %s1803_s20 = scalar_lea.sflag [#allocation4], %s2548_s7 }
 0x2a4   : > { %v1597_v62 = vmax.f32 %v1596_v18, %v1565_v32  ;;  %v1581_v19 = vmul.f32 %v3484_v16, %v3369_v47  ;;  %v1559_v53 = vmul.f32 %v3489_v24, %v3386_v5  ;;  %v1583_v47 = vmul.f32 %v3499_v2, %v3386_v5  ;;  %v1623_v45 = vld [vmem:[%s3676_s5 + $0x18] sm:$0xff] }
 0x2a5   : > { %v1607_v44 = vmax.f32 %v1606_v11, %v1574_v21  ;;  %v1588_v3 = vmax.f32 %v1587_v38, %v1557_v61  ;;  %v1614_v23 = vmax.f32 %v1613_v12, %v1580_v4  ;;  %v1582_v21 = vmul.f32 %v3494_v9, %v3384_v0  ;;  %v1622_v0 = vld [vmem:[%s3676_s5 + $0x10] sm:$0xff] }
 0x2a6   : > { %v1598_v57 = vmax.f32 %v1597_v62, %v1566_v27 }
 0x2a7   : > { %v1608_v60 = vmax.f32 %v1607_v44, %v1575_v35  ;;  %v1589_v29 = vmax.f32 %v1588_v3, %v1558_v14  ;;  %v1615_v32 = vmax.f32 %v1614_v23, %v1581_v19 }
 0x2a8   : > { %v1599_v8 = vmax.f32 %v1598_v57, %v1567_v28 }
 0x2a9   : > { %1609 = vmax.xlane.f32.xlu2 %v1608_v60  ;;  %v1590_v26 = vmax.f32 %v1589_v29, %v1559_v53  ;;  %v1616_v11 = vmax.f32 %v1615_v32, %v1582_v21  ;;  %v1644_v29 = vld [vmem:[%s3677_s6 + $0x10] sm:$0xff]  ;;  %v1643_v21 = vld [vmem:[%s3677_s6 + $0x8] sm:$0xff]  ;;  %v1642_v32 = vld [vmem:[%s3677_s6] sm:$0xff] }
 0x2aa   : > { %1600 = vmax.xlane.f32.xlu1 %v1599_v8 }
 0x2ab   : > { %1591 = vmax.xlane.f32.xlu0 %v1590_v26  ;;  %v1617_v18 = vmax.f32 %v1616_v11, %v1583_v47 }
 0x2b1   : > { %1618 = vmax.xlane.f32.xlu2 %v1617_v18 }
 0x31c   : > { %v1610_v49 = vpop.xlane.xlu2 %1609 }
 0x31d   : > { %v1601_v35 = vpop.xlane.xlu1 %1600  ;;  %v1626_v39 = vmul.f32 %v1622_v0, %v1610_v49  ;;  %v1645_v0 = vld [vmem:[%s3677_s6 + $0x18] sm:$0xff] }
 0x31e   : > { %v1625_v27 = vmul.f32 %v1621_v31, %v1601_v35  ;;  %v1592_v5 = vpop.xlane.xlu0 %1591 }
 0x31f   : > { %v1624_v62 = vmul.f32 %v1620_v34, %v1592_v5  ;;  %v1631_v60 = vsel %vm3719_vm8, %v1626_v39, 0.0 }
 0x320   : > { %v1629_v44 = vsel %vm3717_vm5, %v1625_v27, 0.0 }
 0x321   : > { %v1628_v40 = vsel %vm3718_vm6, %v1624_v62, 0.0 }
 0x322   : > { %v1630_v61 = vadd.f32 %v1629_v44, %v1628_v40 }
 0x324   : > { %v1619_v28 = vpop.xlane.xlu2 %1618  ;;  %v1632_v57 = vadd.f32 %v1631_v60, %v1630_v61 }
 0x325   : > { %v1627_v38 = vmul.f32 %v1623_v45, %v1619_v28 }
 0x327   : > { %v1633_v4 = vsel %vm3720_vm13, %v1627_v38, 0.0 }
 0x328   : > { %v1634_v12 = vadd.f32 %v1633_v4, %v1632_v57 }
 0x32a   : > { %v1635_v14 = vrot.slane %v1634_v12, 4 }
 0x32c   : > { %v1636_v3 = vadd.f32 %v1635_v14, %v1634_v12 }
 0x32e   : > { %v1637_v8 = vrot.slane %v1636_v3, 2 }
 0x330   : > { %v1638_v19 = vadd.f32 %v1637_v8, %v1636_v3 }
 0x332   : > { %v1639_v23 = vrot.slane %v1638_v19, 1 }
 0x334   : > { %v1640_v53 = vadd.f32 %v1639_v23, %v1638_v19 }
 0x336   : > { %v1641_v26 = vmax.f32 %v1640_v53, 0.0 }
 0x338   : > { %v1648_v47 = vmul.f32 %v1644_v29, %v1641_v26  ;;  %v1647_v11 = vmul.f32 %v1643_v21, %v1641_v26  ;;  %v1646_v18 = vmul.f32 %v1642_v32, %v1641_v26  ;;  %v1649_v27 = vmul.f32 %v1645_v0, %v1641_v26 }
 0x33a   : > { %v1656_v49 = vsel %vm3721_vm11, %v1648_v47, 0.0  ;;  %v1653_v31 = vsel %vm3722_vm10, %v1647_v11, 0.0  ;;  %v1650_v35 = vsel %vm3723_vm14, %v1646_v18, 0.0  ;;  %v1659_v34 = vsel %vm3724_vm15, %v1649_v27, 0.0 }
 0x33b   : > { %1657 = vadd.xlane.f32.xlu2 %v1656_v49  ;;  %1654 = vadd.xlane.f32.xlu1 %v1653_v31 }
 0x33c   : > { %1651 = vadd.xlane.f32.xlu0 %v1650_v35 }
 0x344   : > { %1660 = vadd.xlane.f32.xlu0 %v1659_v34 }
 0x3ae   : > { %v1658_v5 = vpop.xlane.xlu2 %1657  ;;  %v1655_v39 = vpop.xlane.xlu1 %1654 }
 0x3af   : > { %v1664_v44 = vsub.f32 0.0, %v1658_v5  ;;  %v1663_v62 = vsub.f32 0.0, %v1655_v39  ;;  %v1652_v45 = vpop.xlane.xlu0 %1651 }
 0x3b0   : > { %v1662_v40 = vsub.f32 0.0, %v1652_v45 }
 0x3b1   : > { %v1670_v28 = vmul.f32 1.442695, %v1664_v44  ;;  %v1668_v61 = vmul.f32 1.442695, %v1663_v62 }
 0x3b2   : > { %v1666_v38 = vmul.f32 1.442695, %v1662_v40 }
 0x3b3   : > { %2105 = vpow2.f32 %v1670_v28 }
 0x3b4   : > { %2107 = vpow2.f32 %v1668_v61 }
 0x3b5   : > { %2109 = vpow2.f32 %v1666_v38 }
 0x3b7   : > { %v1661_v60 = vpop.xlane.xlu0 %1660 }
 0x3b8   : > { %v1665_v57 = vsub.f32 0.0, %v1661_v60 }
 0x3b9   : > { %v2106_v4 = vpop.eup %2105 }
 0x3ba   : > { %v2108_v12 = vpop.eup %2107  ;;  %v1676_v14 = vadd.f32 1.0, %v2106_v4  ;;  %v1672_v3 = vmul.f32 1.442695, %v1665_v57 }
 0x3bb   : > { %v2110_v8 = vpop.eup %2109  ;;  %v1675_v19 = vadd.f32 1.0, %v2108_v12 }
 0x3bc   : > { %2111 = vrcp.f32 %v1676_v14  ;;  %v3535_v23 = vadd.f32 1.0, %v2110_v8  ;;  %v1717_v49 = vand.u32 2147483647, %v1676_v14  ;;  %v1719_v31 = vand.u32 2147483648, %v1676_v14 }
 0x3bd   : > { %2113 = vrcp.f32 %v1675_v19  ;;  %vm1713_vm0 = vweird.f32 %v1676_v14  ;;  %v1704_v45 = vand.u32 2147483648, %v1675_v19  ;;  %vm1698_vm2 = vweird.f32 %v1675_v19 }
 0x3be   : > { %2115 = vpow2.f32 %v1672_v3  ;;  %v1720_v44 = vor.u32 1.1754944e-38, %v1719_v31  ;;  %vm1718_vm1 = vcmp.eq.f32.partialorder %v1717_v49, 8.507059e+37  ;;  %v1702_v28 = vand.u32 2147483647, %v1675_v19 }
 0x3bf   : > { %2117 = vrcp.f32 %v3535_v23  ;;  %vm1683_vm6 = vweird.f32 %v3535_v23 }
 0x3c0   : > { %vm1703_vm4 = vcmp.eq.f32.partialorder %v1702_v28, 8.507059e+37 }
 0x3c2   : > { %v2112_v53 = vpop.eup %2111 }
 0x3c3   : > { %v2114_v29 = vpop.eup %2113  ;;  %v1709_v21 = vmul.f32 %v2112_v53, %v1676_v14  ;;  %vm1714_vm12 = vweird.f32 %v2112_v53 }
 0x3c4   : > { %v2116_v32 = vpop.eup %2115  ;;  %v1694_v26 = vmul.f32 %v2114_v29, %v1675_v19  ;;  %vm1699_vm9 = vweird.f32 %v2114_v29  ;;  %vm1715_vm7 = vmor %vm1713_vm0, %vm1714_vm12  ;;  %v1705_v19 = vor.u32 1.1754944e-38, %v1704_v45 }
 0x3c5   : > { %v1710_v47 = vsub.f32 1.0, %v1709_v21  ;;  %v3538_v11 = vadd.f32 1.0, %v2116_v32  ;;  %v3540_v18 = vpop.eup %2117  ;;  %vm3545_vm3 = vmor %vm1698_vm2, %vm1699_vm9  ;;  %v1689_v21 = vand.u32 2147483648, %v3535_v23 }
 0x3c6   : > { %v1695_v35 = vsub.f32 1.0, %v1694_v26  ;;  %v1679_v27 = vmul.f32 %v3540_v18, %v3535_v23  ;;  %vm1684_vm5 = vweird.f32 %v3540_v18 }
 0x3c7   : > { %v1711_v0 = vmul.f32 %v2112_v53, %v1710_v47  ;;  %2119 = vrcp.f32 %v3538_v11  ;;  %vm1685_vm8 = vmor %vm1683_vm6, %vm1684_vm5  ;;  %vm1728_vm10 = vweird.f32 %v3538_v11 }
 0x3c8   : > { %v1696_v34 = vmul.f32 %v2114_v29, %v1695_v35  ;;  %v1680_v39 = vsub.f32 1.0, %v1679_v27 }
 0x3c9   : > { %v1712_v5 = vadd.f32 %v2112_v53, %v1711_v0 }
 0x3ca   : > { %v1697_v62 = vadd.f32 %v2114_v29, %v1696_v34  ;;  %v1681_v60 = vmul.f32 %v3540_v18, %v1680_v39 }
 0x3cb   : > { %v1716_v40 = vsel %vm1715_vm7, %v2112_v53, %v1712_v5 }
 0x3cc   : > { %v1721_v61 = vsel %vm1718_vm1, %v1720_v44, %v1716_v40  ;;  %v1701_v3 = vsel %vm3545_vm3, %v2114_v29, %v1697_v62 }
 0x3cd   : > { %v3550_v57 = vpop.eup %2119  ;;  %v1754_v4 = vmul.f32 %v3348_v51, %v1721_v61  ;;  %v1755_v12 = vmul.f32 %v3352_v42, %v1721_v61  ;;  %v1756_v14 = vmul.f32 %v3358_v54, %v1721_v61  ;;  %v1757_v8 = vmul.f32 %v3372_v58, %v1721_v61 }
 0x3ce   : > { %v1758_v53 = vmul.f32 %v3393_v6, %v1721_v61  ;;  %v1724_v51 = vmul.f32 %v3550_v57, %v3538_v11  ;;  %v1759_v42 = vmul.f32 %v3415_v22, %v1721_v61  ;;  %v1706_v54 = vsel %vm1703_vm4, %v1705_v19, %v1701_v3 }
 0x3cf   : > { %1786 = vst [vmem:[%s3560_s30 + $0x80] sm:$0xff] %v1754_v4  ;;  %v1760_v58 = vmul.f32 %v3425_v30, %v1721_v61  ;;  %v1682_v6 = vadd.f32 %v3540_v18, %v1681_v60  ;;  %v1761_v29 = vmul.f32 %v3444_v50, %v1721_v61  ;;  %v1746_v22 = vmul.f32 %v3362_v1, %v1706_v54 }
 0x3d0   : > { %1787 = vst [vmem:[%s3560_s30 + $0x88] sm:$0xff] %v1755_v12  ;;  %v1725_v32 = vsub.f32 1.0, %v1724_v51  ;;  %v1687_v30 = vand.u32 2147483647, %v3535_v23  ;;  %v1747_v26 = vmul.f32 %v3366_v56, %v1706_v54  ;;  %v1748_v50 = vmul.f32 %v3377_v52, %v1706_v54 }
 0x3d1   : > { %1788 = vst [vmem:[%s3560_s30 + $0x90] sm:$0xff] %v1756_v14  ;;  %v1686_v47 = vsel %vm1685_vm8, %v3540_v18, %v1682_v6  ;;  %v1749_v49 = vmul.f32 %v3398_v13, %v1706_v54  ;;  %v1690_v1 = vor.u32 1.1754944e-38, %v1689_v21  ;;  %v1750_v23 = vmul.f32 %v3420_v36, %v1706_v54 }
 0x3d2   : > { %1789 = vst [vmem:[%s3560_s30 + $0x98] sm:$0xff] %v1757_v8  ;;  %v1726_v31 = vmul.f32 %v3550_v57, %v1725_v32  ;;  %vm1688_vm13 = vcmp.eq.f32.partialorder %v1687_v30, 8.507059e+37  ;;  %v1751_v56 = vmul.f32 %v3430_v20, %v1706_v54  ;;  %v1752_v18 = vmul.f32 %v3449_v33, %v1706_v54 }
 0x3d3   : > { %1790 = vst [vmem:[%s3560_s30 + $0xa0] sm:$0xff] %v1758_v53  ;;  %v1691_v52 = vsel %vm1688_vm13, %v1690_v1, %v1686_v47  ;;  %vm1729_vm11 = vweird.f32 %v3550_v57  ;;  %v1753_v35 = vmul.f32 %v3464_v37, %v1706_v54  ;;  %v1734_v36 = vand.u32 2147483648, %v3538_v11 }
 0x3d4   : > { %1791 = vst [vmem:[%s3560_s30 + $0xa8] sm:$0xff] %v1759_v42  ;;  %v1727_v13 = vadd.f32 %v3550_v57, %v1726_v31  ;;  %v1738_v20 = vmul.f32 %v3381_v55, %v1691_v52  ;;  %v1732_v33 = vand.u32 2147483647, %v3538_v11  ;;  %v1739_v0 = vmul.f32 %v3389_v63, %v1691_v52  ;;  %vm1730_vm14 = vmor %vm1728_vm10, %vm1729_vm11 }
 0x3d5   : > { %1792 = vst [vmem:[%s3560_s30 + $0xb0] sm:$0xff] %v1760_v58  ;;  %v1740_v37 = vmul.f32 %v3403_v46, %v1691_v52  ;;  %v1741_v55 = vmul.f32 %v3435_v43, %v1691_v52  ;;  %v1735_v34 = vor.u32 1.1754944e-38, %v1734_v36  ;;  %v1742_v11 = vmul.f32 %v3454_v7, %v1691_v52 }
 0x3d6   : > { %1793 = vst [vmem:[%s3560_s30 + $0xb8] sm:$0xff] %v1761_v29  ;;  %v1731_v27 = vsel %vm1730_vm14, %v3550_v57, %v1727_v13  ;;  %vm1733_vm15 = vcmp.eq.f32.partialorder %v1732_v33, 8.507059e+37  ;;  %v1743_v63 = vmul.f32 %v3469_v59, %v1691_v52  ;;  %v1744_v46 = vmul.f32 %v3479_v41, %v1691_v52 }
 0x3d7   : > { %1778 = vst [vmem:[%s3560_s30 + $0x40] sm:$0xff] %v1746_v22  ;;  %v1736_v5 = vsel %vm1733_vm15, %v1735_v34, %v1731_v27  ;;  %v1745_v39 = vmul.f32 %v3489_v24, %v1691_v52 }
 0x3d8   : > { %1779 = vst [vmem:[%s3560_s30 + $0x48] sm:$0xff] %v1747_v26  ;;  %v1762_v43 = vmul.f32 %v3407_v15, %v1736_v5  ;;  %v1763_v7 = vmul.f32 %v3411_v17, %v1736_v5  ;;  %v1764_v59 = vmul.f32 %v3440_v48, %v1736_v5  ;;  %v1765_v41 = vmul.f32 %v3459_v25, %v1736_v5 }
 0x3d9   : > { %1780 = vst [vmem:[%s3560_s30 + $0x50] sm:$0xff] %v1748_v50  ;;  %v1766_v15 = vmul.f32 %v3474_v10, %v1736_v5  ;;  %v1767_v17 = vmul.f32 %v3484_v16, %v1736_v5  ;;  %v1768_v48 = vmul.f32 %v3494_v9, %v1736_v5  ;;  %v1769_v25 = vmul.f32 %v3499_v2, %v1736_v5 }
 0x3da   : > { %1781 = vst [vmem:[%s3560_s30 + $0x58] sm:$0xff] %v1749_v49 }
 0x3db   : > { %1782 = vst [vmem:[%s3560_s30 + $0x60] sm:$0xff] %v1750_v23 }
 0x3dc   : > { %1783 = vst [vmem:[%s3560_s30 + $0x68] sm:$0xff] %v1751_v56 }
 0x3dd   : > { %1784 = vst [vmem:[%s3560_s30 + $0x70] sm:$0xff] %v1752_v18 }
 0x3de   : > { %1785 = vst [vmem:[%s3560_s30 + $0x78] sm:$0xff] %v1753_v35 }
 0x3df   : > { %1770 = vst [vmem:[%s3560_s30] sm:$0xff] %v1738_v20 }
 0x3e0   : > { %1771 = vst [vmem:[%s3560_s30 + $0x8] sm:$0xff] %v1739_v0 }
 0x3e1   : > { %1772 = vst [vmem:[%s3560_s30 + $0x10] sm:$0xff] %v1740_v37 }
 0x3e2   : > { %1773 = vst [vmem:[%s3560_s30 + $0x18] sm:$0xff] %v1741_v55 }
 0x3e3   : > { %1774 = vst [vmem:[%s3560_s30 + $0x20] sm:$0xff] %v1742_v11 }
 0x3e4   : > { %1775 = vst [vmem:[%s3560_s30 + $0x28] sm:$0xff] %v1743_v63 }
 0x3e5   : > { %1776 = vst [vmem:[%s3560_s30 + $0x30] sm:$0xff] %v1744_v46 }
 0x3e6   : > { %1777 = vst [vmem:[%s3560_s30 + $0x38] sm:$0xff] %v1745_v39 }
 0x3e7   : > { %1794 = vst [vmem:[%s3560_s30 + $0xc0] sm:$0xff] %v1762_v43 }
 0x3e8   : > { %1795 = vst [vmem:[%s3560_s30 + $0xc8] sm:$0xff] %v1763_v7 }
 0x3e9   : > { %1796 = vst [vmem:[%s3560_s30 + $0xd0] sm:$0xff] %v1764_v59 }
 0x3ea   : > { %1797 = vst [vmem:[%s3560_s30 + $0xd8] sm:$0xff] %v1765_v41 }
 0x3eb   : > { %1798 = vst [vmem:[%s3560_s30 + $0xe0] sm:$0xff] %v1766_v15 }
 0x3ec   : > { %1799 = vst [vmem:[%s3560_s30 + $0xe8] sm:$0xff] %v1767_v17 }
 0x3ed   : > { %1800 = vst [vmem:[%s3560_s30 + $0xf0] sm:$0xff] %v1768_v48 }
 0x3ee   : > { %1801 = vst [vmem:[%s3560_s30 + $0xf8] sm:$0xff] %v1769_v25 }
 0x3ef   : > { %2285 = shalt.err (!%p2282_p3)
}
 0x3f0   : > { %s2346_s7 = smov 1024  }
 0x3f1   : > { %2032 = dma.vmem_to_hbm [thread:$0]  (%p2484_p11), %s1816_s25, 4096, %s1818_s8, %s1803_s20, %s2346_s7, %s2346_s7, %s2344_s23  }
 0x3f2 PF: > { %s3729_s16 = sld [smem:[#allocation15_spill]] }
 0x3f3   : > { %s3731_s10 = sld [smem:[#allocation16_spill]] }
 0x3f8   : > { %s1832_s26 = sand.u32 1, %s3729_s16  }
 0x3f9   : > { %p3732_p7 = scmp.ge.s32.totalorder %s3731_s10, 2  ;;  %s1833_s30 = scalar_lea.sflag [#allocation4], %s1832_s26 }
 0x3fb   : > { %p2049_p10 = pnand %p3732_p7, %p2488_p12 }
 0x3fd   : > { %p2050_p13 = pneg %p2049_p10 }
 0x3ff   : > { %2315 = dma.done.wait (%p2050_p13), %s1833_s30, 4096  }
 0x400   : > { %2317 = vsyncadd (%p2050_p13), %s1833_s30, 4294963200  ;;  %s3733_s30 = sld [smem:[#allocation17_spill]]  ;;  %s3735_s27 = smov %s2324_s28 }
 0x401   : > { %s3734_s12 = sld [smem:[#allocation18_spill]]  ;;  %s3736_s28 = smov %s2328_s29 }
 0x406   : > { %p25_p0 = scmp.ge.s32.totalorder %s3733_s30, 4  }
 0x407   : > { %s3737_s29 = smov %s3734_s12 }
 0x408   :  { %27 = sbr.rel (!%p25_p0) target bundleno = 12 (0xc), region = 126 }
 0x40d   :  { %1839 = vsyncpa [#allocation3], 1 }
 0x40e   :  { %1841 = vsyncpa [#allocation3 + $0x1], 1 }
 0x40f   :  { %1842 = vsyncpa [#allocation7], 1 }
 0x410   :  { %1844 = vsyncpa [#allocation7 + $0x1], 1 }
 0x411   :  { %1845 = vsyncpa [#allocation4], 1 }
 0x412   :  { %1847 = vsyncpa [#allocation4 + $0x1], 1 }
 0x413   :  { %1848 = vsyncpa [#allocation5], 1 }
 0x414   :  { %1850 = vsyncpa [#allocation5 + $0x1], 1 }

</bundles_post_ra>
